<compile_context>
chip_gen: v7x
topology: tpu7x:2x2x1
jax: 0.10.0
libtpu: 0.0.40
codegen_flags: <defaults>
</compile_context>

<pallas_src>
import jax
import jax.numpy as jnp
from jax.experimental import pallas as pl
from jax.experimental.pallas import tpu as pltpu


def _round_up(x: int, m: int) -> int:
    return (x + m - 1) // m * m


# --------------------------------------------------------------------------
# Pallas kernel: conv(matmul, bf16) + ReLU + masked GAP + FC + softmax
# --------------------------------------------------------------------------
def probspace_kernel(patches_ref, convw_ref, convb_ref, gapw_ref,
                     fcw_ref, fcb_ref, out_ref):
    # patches: (N_TILE, HW_p, K_p) bf16    convw: (K_p, F_p) bf16
    # convb:   (1, F_p) f32                gapw:  (HW_p, 1) f32 (masked 1/HW)
    # fcw:     (F_p, T_p) bf16             fcb:   (1, T_p) f32
    # out:     (N_TILE, T_p) f32
    n_tile, hw_p, k_p = patches_ref.shape
    f_p = convw_ref.shape[1]

    # Conv3x3 (im2col) as one big bf16 MXU matmul with f32 accumulation:
    # merge (N_TILE, HW_p) into the M dim so the MXU sees M=2048, not M=256.
    patches = patches_ref[...].reshape(n_tile * hw_p, k_p)
    feat = jnp.dot(patches, convw_ref[...],
                   preferred_element_type=jnp.float32)        # (N*HW, F_p) f32
    feat = jnp.maximum(feat + convb_ref[...], 0.0)            # bias + ReLU

    # Global average pool: VPU mask-multiply + sublane reduction (XLU).
    # gapw rows past the true HW (zero padding) are 0 -> excluded.
    feat3 = feat.reshape(n_tile, hw_p, f_p)
    pooled = jnp.sum(feat3 * gapw_ref[...][None, :, :], axis=1)   # (N_TILE, F_p)

    # FC head: bf16 operands, f32 accumulation; softmax in f32.
    # Padded classes carry a -1e30 bias -> exp == 0 -> excluded from the sum.
    logits = jnp.dot(pooled.astype(fcw_ref.dtype), fcw_ref[...],
                     preferred_element_type=jnp.float32) + fcb_ref[...]
    m = jnp.max(logits, axis=-1, keepdims=True)
    e = jnp.exp(logits - m)
    s = jnp.sum(e, axis=-1, keepdims=True)
    out_ref[...] = (e / s).astype(out_ref.dtype)              # exact normalization


# --------------------------------------------------------------------------
# Wrapper glue: NCHW -> NHWC -> im2col, light padding, one pallas_call
# --------------------------------------------------------------------------
def im2col_3x3(x_nhwc):
    """Extract 3x3 patches with padding=1. Returns (N, H*W, 9*C)."""
    N, H, W, C = x_nhwc.shape
    xp = jnp.pad(x_nhwc, ((0, 0), (1, 1), (1, 1), (0, 0)))
    taps = []
    for di in range(3):
        for dj in range(3):
            taps.append(xp[:, di:di + H, dj:dj + W, :])
    p = jnp.stack(taps, axis=3)                    # (N, H, W, 9, C)
    return p.reshape(N, H * W, 9 * C)


def probspace_forward(x_nchw, conv_w, conv_b, fc_w, fc_b, *, n_tile=8):
    """x_nchw: (N, C, H, W) float32 -> probs (N, T) float32."""
    N, C, H, W = x_nchw.shape
    HW = H * W
    K, F = conv_w.shape
    T = fc_w.shape[1]

    N_pad = _round_up(N, n_tile)          # >=8 images per grid step
    HW_p = _round_up(HW, 16)              # bf16 sublane packing
    K_p = _round_up(K, 16)                # NOT padded to 128 (lane = full dim)
    F_p = _round_up(F, 16)
    T_p = _round_up(T, 128)               # lane-dense output / softmax dim

    # im2col in the wrapper (XLA glue), cast to bf16 to halve HBM traffic.
    x_nhwc = jnp.transpose(x_nchw, (0, 2, 3, 1))
    patches = im2col_3x3(x_nhwc)                                   # (N, HW, K)
    patches = jnp.pad(patches, ((0, N_pad - N), (0, HW_p - HW), (0, K_p - K))
                      ).astype(jnp.bfloat16)                       # (Np, HWp, Kp)

    conv_w_p = jnp.pad(conv_w, ((0, K_p - K), (0, F_p - F))
                       ).astype(jnp.bfloat16)                      # (Kp, Fp)
    conv_b_p = jnp.pad(conv_b.reshape(1, F).astype(jnp.float32),
                       ((0, 0), (0, F_p - F)))                     # (1, Fp)
    # Masked 1/HW GAP weights, precomputed (padded spatial rows get 0).
    gap_w = jnp.where(jnp.arange(HW_p) < HW, 1.0 / HW, 0.0
                      ).astype(jnp.float32).reshape(HW_p, 1)       # (HWp, 1)
    fc_w_p = jnp.pad(fc_w, ((0, F_p - F), (0, T_p - T))
                     ).astype(jnp.bfloat16)                        # (Fp, Tp)
    # Padded classes get a very negative bias so softmax assigns them 0 (f32).
    fc_b_p = jnp.concatenate(
        [fc_b.reshape(1, T).astype(jnp.float32),
         jnp.full((1, T_p - T), -1e30, jnp.float32)], axis=1)      # (1, Tp)

    cost = pl.CostEstimate(
        flops=2 * N_pad * HW_p * K_p * F_p          # conv matmul
              + 2 * N_pad * HW_p * F_p              # GAP multiply + add
              + 2 * N_pad * F_p * T_p,              # FC matmul
        transcendentals=N_pad * T_p,                # exp
        bytes_accessed=(patches.size * 2 + conv_w_p.size * 2 + fc_w_p.size * 2
                        + (conv_b_p.size + gap_w.size + fc_b_p.size) * 4
                        + N_pad * T_p * 4),
    )

    out = pl.pallas_call(
        probspace_kernel,
        out_shape=jax.ShapeDtypeStruct((N_pad, T_p), jnp.float32),
        grid=(N_pad // n_tile,),
        in_specs=[
            pl.BlockSpec((n_tile, HW_p, K_p), lambda i: (i, 0, 0)),
            pl.BlockSpec((K_p, F_p), lambda i: (0, 0)),
            pl.BlockSpec((1, F_p), lambda i: (0, 0)),
            pl.BlockSpec((HW_p, 1), lambda i: (0, 0)),
            pl.BlockSpec((F_p, T_p), lambda i: (0, 0)),
            pl.BlockSpec((1, T_p), lambda i: (0, 0)),
        ],
        out_specs=pl.BlockSpec((n_tile, T_p), lambda i: (i, 0)),
        compiler_params=pltpu.CompilerParams(
            dimension_semantics=("parallel",),
            vmem_limit_bytes=32 * 1024 * 1024),
        cost_estimate=cost,
    )(patches, conv_w_p, conv_b_p, gap_w, fc_w_p, fc_b_p)

    return out[:N, :T]


# --------------------------------------------------------------------------
# Pure-JAX reference (same bf16 operand / f32 accumulation choices)
# --------------------------------------------------------------------------
def probspace_reference(x_nchw, conv_w, conv_b, fc_w, fc_b):
    x_nhwc = jnp.transpose(x_nchw, (0, 2, 3, 1))
    patches = im2col_3x3(x_nhwc)                                   # (N, HW, K)
    feat = jnp.dot(patches.astype(jnp.bfloat16),
                   conv_w.astype(jnp.bfloat16),
                   preferred_element_type=jnp.float32)
    feat = jnp.maximum(feat + conv_b.astype(jnp.float32), 0.0)
    pooled = feat.mean(axis=1)                                     # (N, F)
    logits = jnp.dot(pooled.astype(jnp.bfloat16),
                     fc_w.astype(jnp.bfloat16),
                     preferred_element_type=jnp.float32)
    logits = logits + fc_b.astype(jnp.float32)
    return jax.nn.softmax(logits, axis=1)


if __name__ == "__main__":
    # Small, deterministic configuration (NCHW like PyTorch).
    N, C, H, W = 2, 4, 16, 16
    F = 32                          # backbone conv channels ("hidden")
    T = 10                          # target_size (num classes)

    key = jax.random.PRNGKey(0)
    kx, kcw, kcb, kfw, kfb = jax.random.split(key, 5)

    x = jax.random.normal(kx, (N, C, H, W), dtype=jnp.float32)
    # Conv weight stored directly in im2col layout (9*C, F); tap order is
    # (di, dj, c), matching im2col_3x3 (used consistently by kernel and ref).
    conv_w = jax.random.normal(kcw, (9 * C, F), dtype=jnp.float32) * 0.05
    conv_b = jax.random.normal(kcb, (F,), dtype=jnp.float32) * 0.05
    fc_w = jax.random.normal(kfw, (F, T), dtype=jnp.float32) * 0.05
    fc_b = jax.random.normal(kfb, (T,), dtype=jnp.float32) * 0.05

    probs = probspace_forward(x, conv_w, conv_b, fc_w, fc_b)
    probs = jax.block_until_ready(probs)

    ref = probspace_reference(x, conv_w, conv_b, fc_w, fc_b)
    assert probs.shape == (N, T)
    assert bool(jnp.allclose(jnp.sum(probs, axis=1), 1.0, atol=2e-3))
    assert bool(jnp.allclose(probs, ref, atol=2e-3, rtol=2e-2))

    print("KERNEL_OK")
</pallas_src>

<mosaic_0001>
module attributes {stable_mosaic.version = 11 : i64} {
  func.func @probspace_kernel(%arg0: i32, %arg1: memref<8x256x48xbf16, #tpu.memory_space<vmem>>, %arg2: memref<48x32xbf16, #tpu.memory_space<vmem>>, %arg3: memref<1x32xf32, #tpu.memory_space<vmem>>, %arg4: memref<256x1xf32, #tpu.memory_space<vmem>>, %arg5: memref<32x128xbf16, #tpu.memory_space<vmem>>, %arg6: memref<1x128xf32, #tpu.memory_space<vmem>>, %arg7: memref<8x128xf32, #tpu.memory_space<vmem>>) attributes {dimension_semantics = [#tpu.dimension_semantics<parallel>], iteration_bounds = array<i64: 1>, scalar_prefetch = 0 : i64, scratch_operands = 0 : i64, tpu.core_type = #tpu.core_type<tc>, window_params = [{transform_indices = @transform_0, window_bounds = array<i64: 8, 256, 48>}, {pipeline_mode = #tpu.pipeline_mode<synchronous>, transform_indices = @transform_1, window_bounds = array<i64: 48, 32>}, {pipeline_mode = #tpu.pipeline_mode<synchronous>, transform_indices = @transform_2, window_bounds = array<i64: 1, 32>}, {pipeline_mode = #tpu.pipeline_mode<synchronous>, transform_indices = @transform_3, window_bounds = array<i64: 256, 1>}, {pipeline_mode = #tpu.pipeline_mode<synchronous>, transform_indices = @transform_4, window_bounds = array<i64: 32, 128>}, {pipeline_mode = #tpu.pipeline_mode<synchronous>, transform_indices = @transform_5, window_bounds = array<i64: 1, 128>}, {transform_indices = @transform_6, window_bounds = array<i64: 8, 128>}]} {
    %c0 = arith.constant 0 : index
    %c0_0 = arith.constant 0 : index
    %c0_1 = arith.constant 0 : index
    %0 = vector.load %arg1[%c0, %c0_0, %c0_1] : memref<8x256x48xbf16, #tpu.memory_space<vmem>>, vector<8x256x48xbf16>
    %1 = vector.shape_cast %0 : vector<8x256x48xbf16> to vector<2048x48xbf16>
    %c0_2 = arith.constant 0 : index
    %c0_3 = arith.constant 0 : index
    %2 = vector.load %arg2[%c0_2, %c0_3] : memref<48x32xbf16, #tpu.memory_space<vmem>>, vector<48x32xbf16>
    %cst = arith.constant dense<0.000000e+00> : vector<2048x32xf32>
    %3 = tpu.matmul %1, %2, %cst {dimension_numbers = #tpu.dot_dimension_numbers<[1], [0], [0], [1], [0, 0, 1, 1], [], []>} : vector<2048x48xbf16>, vector<48x32xbf16>, vector<2048x32xf32> -> vector<2048x32xf32>
    %c0_4 = arith.constant 0 : index
    %c0_5 = arith.constant 0 : index
    %4 = vector.load %arg3[%c0_4, %c0_5] : memref<1x32xf32, #tpu.memory_space<vmem>>, vector<1x32xf32>
    %5 = vector.broadcast %4 : vector<1x32xf32> to vector<2048x32xf32>
    %6 = arith.addf %3, %5 : vector<2048x32xf32>
    %cst_6 = arith.constant 0.000000e+00 : f32
    %7 = vector.broadcast %cst_6 : f32 to vector<2048x32xf32>
    %8 = arith.maximumf %6, %7 : vector<2048x32xf32>
    %9 = vector.shape_cast %8 : vector<2048x32xf32> to vector<8x256x32xf32>
    %c0_7 = arith.constant 0 : index
    %c0_8 = arith.constant 0 : index
    %10 = vector.load %arg4[%c0_7, %c0_8] : memref<256x1xf32, #tpu.memory_space<vmem>>, vector<256x1xf32>
    %11 = vector.shape_cast %10 : vector<256x1xf32> to vector<1x256x1xf32>
    %12 = vector.broadcast %11 : vector<1x256x1xf32> to vector<8x256x32xf32>
    %13 = arith.mulf %9, %12 : vector<8x256x32xf32>
    %cst_9 = arith.constant dense<0.000000e+00> : vector<8x32xf32>
    %14 = vector.multi_reduction <add>, %13, %cst_9 [1] : vector<8x256x32xf32> to vector<8x32xf32>
    %15 = arith.truncf %14 : vector<8x32xf32> to vector<8x32xbf16>
    %c0_10 = arith.constant 0 : index
    %c0_11 = arith.constant 0 : index
    %16 = vector.load %arg5[%c0_10, %c0_11] : memref<32x128xbf16, #tpu.memory_space<vmem>>, vector<32x128xbf16>
    %cst_12 = arith.constant dense<0.000000e+00> : vector<8x128xf32>
    %17 = tpu.matmul %15, %16, %cst_12 {dimension_numbers = #tpu.dot_dimension_numbers<[1], [0], [0], [1], [0, 0, 1, 1], [], []>} : vector<8x32xbf16>, vector<32x128xbf16>, vector<8x128xf32> -> vector<8x128xf32>
    %c0_13 = arith.constant 0 : index
    %c0_14 = arith.constant 0 : index
    %18 = vector.load %arg6[%c0_13, %c0_14] : memref<1x128xf32, #tpu.memory_space<vmem>>, vector<1x128xf32>
    %19 = vector.broadcast %18 : vector<1x128xf32> to vector<8x128xf32>
    %20 = arith.addf %17, %19 : vector<8x128xf32>
    %cst_15 = arith.constant dense<0xFF800000> : vector<8xf32>
    %21 = vector.multi_reduction <maximumf>, %20, %cst_15 [1] : vector<8x128xf32> to vector<8xf32>
    %22 = vector.shape_cast %21 : vector<8xf32> to vector<8x1xf32>
    %23 = vector.broadcast %22 : vector<8x1xf32> to vector<8x128xf32>
    %24 = arith.subf %20, %23 : vector<8x128xf32>
    %25 = math.exp %24 : vector<8x128xf32>
    %cst_16 = arith.constant dense<0.000000e+00> : vector<8xf32>
    %26 = vector.multi_reduction <add>, %25, %cst_16 [1] : vector<8x128xf32> to vector<8xf32>
    %27 = vector.shape_cast %26 : vector<8xf32> to vector<8x1xf32>
    %28 = vector.broadcast %27 : vector<8x1xf32> to vector<8x128xf32>
    %29 = arith.divf %25, %28 : vector<8x128xf32>
    %c0_17 = arith.constant 0 : index
    %c0_18 = arith.constant 0 : index
    %30 = vector.load %arg7[%c0_17, %c0_18] : memref<8x128xf32, #tpu.memory_space<vmem>>, vector<8x128xf32>
    tpu.vector_store %arg7[%c0_17, %c0_18], %29 {strides = array<i32>} : memref<8x128xf32, #tpu.memory_space<vmem>>, vector<8x128xf32>,
    return
  }
  func.func @transform_0(%arg0: i32) -> (i32, i32, i32) {
    %c0_i32 = arith.constant 0 : i32
    %c0_i32_0 = arith.constant 0 : i32
    %c0_i32_1 = arith.constant 0 : i32
    return %arg0, %c0_i32, %c0_i32_0 : i32, i32, i32
  }
  func.func @transform_1(%arg0: i32) -> (i32, i32) {
    %c0_i32 = arith.constant 0 : i32
    %c0_i32_0 = arith.constant 0 : i32
    %c0_i32_1 = arith.constant 0 : i32
    return %c0_i32, %c0_i32_0 : i32, i32
  }
  func.func @transform_2(%arg0: i32) -> (i32, i32) {
    %c0_i32 = arith.constant 0 : i32
    %c0_i32_0 = arith.constant 0 : i32
    %c0_i32_1 = arith.constant 0 : i32
    return %c0_i32, %c0_i32_0 : i32, i32
  }
  func.func @transform_3(%arg0: i32) -> (i32, i32) {
    %c0_i32 = arith.constant 0 : i32
    %c0_i32_0 = arith.constant 0 : i32
    %c0_i32_1 = arith.constant 0 : i32
    return %c0_i32, %c0_i32_0 : i32, i32
  }
  func.func @transform_4(%arg0: i32) -> (i32, i32) {
    %c0_i32 = arith.constant 0 : i32
    %c0_i32_0 = arith.constant 0 : i32
    %c0_i32_1 = arith.constant 0 : i32
    return %c0_i32, %c0_i32_0 : i32, i32
  }
  func.func @transform_5(%arg0: i32) -> (i32, i32) {
    %c0_i32 = arith.constant 0 : i32
    %c0_i32_0 = arith.constant 0 : i32
    %c0_i32_1 = arith.constant 0 : i32
    return %c0_i32, %c0_i32_0 : i32, i32
  }
  func.func @transform_6(%arg0: i32) -> (i32, i32) {
    %c0_i32 = arith.constant 0 : i32
    %c0_i32_0 = arith.constant 0 : i32
    return %arg0, %c0_i32 : i32, i32
  }
}

</mosaic_0001>

<bundles_post_ra>
// kernel: tpu_custom_call.1
= control target key start
LH: loop header
LB: loop body
LE: loop exit
PB: predicated region body
PF: predicated region fallthrough
CT: control target
= control target key end

     0   :  { %vm952_vm0 = vcmask 392192   ;;  %v4624_v5 = vmov 0   ;;  %s6727_s0 = inlined_call_operand.vmem [shape: bf16[8,256,48], index: 0, kind: input, shape index: {}]   ;;  %s6728_s1 = inlined_call_operand.vmem [shape: bf16[48,32], index: 1, kind: input, shape index: {}]   ;;  %s6729_s2 = inlined_call_operand.vmem [shape: f32[1,32], index: 2, kind: input, shape index: {}]   ;;  %s6730_s3 = inlined_call_operand.vmem [shape: f32[256,1], index: 3, kind: input, shape index: {}]   ;;  %s6731_s4 = inlined_call_operand.vmem [shape: bf16[32,128], index: 4, kind: input, shape index: {}]   ;;  %s6732_s5 = inlined_call_operand.vmem [shape: f32[1,128], index: 5, kind: input, shape index: {}]   ;;  %s6733_s6 = inlined_call_operand.hbm [shape: f32[8,128], index: 6, kind: output, shape index: {}]  }
   0x1   :  { %v4460_v0 = vld [vmem:[%s6728_s1] sm:$0xff]   ;;  %v4461_v1 = vld [vmem:[%s6728_s1 + $0x8] sm:$0xff]   ;;  %v4462_v3 = vld [vmem:[%s6728_s1 + $0x10] sm:$0xff]   ;;  %4458 = vset.pattern.permute.xlu0 %v4624_v5  ;;  %4459 = vset.pattern.permute.xlu1 %v4624_v5 }
   0x2   :  { %4178 = vmatprep.subr.bf16.mxu0 %v4460_v0  ;;  %4448 = vmatprep.subr.bf16.mxu1 %v4460_v0  ;;  %v4463_v2 = vld [vmem:[%s6727_s0] sm:$0xff]   ;;  %v4465_v4 = vld [vmem:[%s6727_s0 + $0x210] sm:$0xff]   ;;  %v4464_v6 = vld [vmem:[%s6727_s0 + $0x8] sm:$0xff]  }
   0x3   :  { %4179 = vmatpush3.bf16.msra.mxu0 %v4460_v0  ;;  %4451 = vmatpush3.bf16.msra.mxu1 %v4460_v0  ;;  %v4466_v7 = vld [vmem:[%s6727_s0 + $0x218] sm:$0xff]   ;;  %v4467_v8 = vld [vmem:[%s6727_s0 + $0x10] sm:$0xff]   ;;  %v4469_v9 = vld [vmem:[%s6727_s0 + $0x220] sm:$0xff]  }
   0x4   :  { %4180 = vmatprep.subr.bf16.mxu0 %v4461_v1  ;;  %4449 = vmatprep.subr.bf16.mxu1 %v4461_v1  ;;  %v4468_v10 = vld [vmem:[%s6727_s0 + $0x18] sm:$0xff]   ;;  %v4470_v11 = vld [vmem:[%s6727_s0 + $0x228] sm:$0xff]   ;;  %v4471_v12 = vld [vmem:[%s6727_s0 + $0x20] sm:$0xff]  }
   0x5   :  { %4184 = vmatprep.mubr.msk.bf16.mxu0 %vm952_vm0, %v4463_v2  ;;  %4316 = vmatprep.mubr.msk.bf16.mxu1 %vm952_vm0, %v4465_v4  ;;  %v4473_v13 = vld [vmem:[%s6727_s0 + $0x230] sm:$0xff]   ;;  %v4472_v14 = vld [vmem:[%s6727_s0 + $0x28] sm:$0xff]   ;;  %v4474_v15 = vld [vmem:[%s6727_s0 + $0x238] sm:$0xff]  }
   0x6   :  { %v4475_v16 = vld [vmem:[%s6727_s0 + $0x30] sm:$0xff]   ;;  %v4477_v17 = vld [vmem:[%s6727_s0 + $0x240] sm:$0xff]   ;;  %v4476_v18 = vld [vmem:[%s6727_s0 + $0x38] sm:$0xff]  }
   0x7   :  { %4181 = vmatpush3.bf16.msra.mxu0 %v4461_v1  ;;  %4452 = vmatpush3.bf16.msra.mxu1 %v4461_v1  ;;  %v4478_v19 = vld [vmem:[%s6727_s0 + $0x248] sm:$0xff]   ;;  %v4479_v20 = vld [vmem:[%s6727_s0 + $0x40] sm:$0xff]   ;;  %v4481_v21 = vld [vmem:[%s6727_s0 + $0x250] sm:$0xff]  }
   0x8   :  { %4182 = vmatprep.subr.bf16.mxu0 %v4462_v3  ;;  %4450 = vmatprep.subr.bf16.mxu1 %v4462_v3  ;;  %v4480_v22 = vld [vmem:[%s6727_s0 + $0x48] sm:$0xff]   ;;  %v4482_v23 = vld [vmem:[%s6727_s0 + $0x258] sm:$0xff]   ;;  %v4483_v24 = vld [vmem:[%s6727_s0 + $0x50] sm:$0xff]  }
   0x9   :  { %v4485_v25 = vld [vmem:[%s6727_s0 + $0x260] sm:$0xff]   ;;  %v2652_v27 = vld [vmem:[%s6730_s3 + $0x10] sm:$0xff]  ;;  %v4484_v28 = vld [vmem:[%s6727_s0 + $0x58] sm:$0xff]  }
   0xa   :  { %v2650_v26 = vld [vmem:[%s6730_s3] sm:$0xff]  ;;  %v4486_v29 = vld [vmem:[%s6727_s0 + $0x268] sm:$0xff]   ;;  %2694 = vperm.xlu1 %4459, %v2652_v27   ;;  %v4489_v32 = vld [vmem:[%s6727_s0 + $0x270] sm:$0xff]  }
   0xb   :  { %4183 = vmatpush3.bf16.msra.mxu0 %v4462_v3  ;;  %4453 = vmatpush3.bf16.msra.mxu1 %v4462_v3  ;;  %v2651_v30 = vld [vmem:[%s6730_s3 + $0x8] sm:$0xff]  ;;  %v4487_v31 = vld [vmem:[%s6727_s0 + $0x60] sm:$0xff]   ;;  %v2653_v33 = vld [vmem:[%s6730_s3 + $0x18] sm:$0xff] }
   0xc   :  { %2684 = vperm.xlu0 %4458, %v2650_v26   ;;  %v2654_v34 = vld [vmem:[%s6730_s3 + $0x20] sm:$0xff]  ;;  %v2655_v35 = vld [vmem:[%s6730_s3 + $0x28] sm:$0xff]  ;;  %v4490_v37 = vld [vmem:[%s6727_s0 + $0x278] sm:$0xff]  }
   0xd   :  { %v4488_v36 = vld [vmem:[%s6727_s0 + $0x68] sm:$0xff]   ;;  %v2656_v38 = vld [vmem:[%s6730_s3 + $0x30] sm:$0xff]  ;;  %v2657_v39 = vld [vmem:[%s6730_s3 + $0x38] sm:$0xff] }
   0xe   :  { %4185 = vmatmul.mubr.msk.bf16.vlgmr.msra.gmra.mrb[0].mxu0 %vm952_vm0, %v4464_v6  ;;  %4317 = vmatmul.mubr.msk.bf16.vlgmr.msra.gmra.mrb[0].mxu1 %vm952_vm0, %v4466_v7  ;;  %v4491_v40 = vld [vmem:[%s6727_s0 + $0x70] sm:$0xff]   ;;  %v4493_v41 = vld [vmem:[%s6727_s0 + $0x280] sm:$0xff]   ;;  %v2659_v43 = vld [vmem:[%s6730_s3 + $0x48] sm:$0xff] }
   0xf   :  { %4188 = vmatprep.mubr.msk.bf16.mxu0 %vm952_vm0, %v4467_v8  ;;  %4320 = vmatprep.mubr.msk.bf16.mxu1 %vm952_vm0, %v4469_v9  ;;  %v2658_v42 = vld [vmem:[%s6730_s3 + $0x40] sm:$0xff]  ;;  %v4492_v44 = vld [vmem:[%s6727_s0 + $0x78] sm:$0xff]   ;;  %v4494_v45 = vld [vmem:[%s6727_s0 + $0x288] sm:$0xff]  }
  0x10   :  { %2689 = vperm.xlu0 %4458, %v2651_v30   ;;  %2699 = vperm.xlu1 %4459, %v2653_v33   ;;  %v4495_v46 = vld [vmem:[%s6727_s0 + $0x80] sm:$0xff]   ;;  %v2660_v47 = vld [vmem:[%s6730_s3 + $0x50] sm:$0xff]  ;;  %v2661_v48 = vld [vmem:[%s6730_s3 + $0x58] sm:$0xff] }
  0x11   :  { %v4497_v49 = vld [vmem:[%s6727_s0 + $0x290] sm:$0xff]   ;;  %v2662_v50 = vld [vmem:[%s6730_s3 + $0x60] sm:$0xff]  ;;  %v2663_v51 = vld [vmem:[%s6730_s3 + $0x68] sm:$0xff] }
  0x12   :  { %v4496_v52 = vld [vmem:[%s6727_s0 + $0x88] sm:$0xff]   ;;  %v4498_v53 = vld [vmem:[%s6727_s0 + $0x298] sm:$0xff]   ;;  %v2664_v54 = vld [vmem:[%s6730_s3 + $0x70] sm:$0xff] }
  0x13   :  { %v2665_v55 = vld [vmem:[%s6730_s3 + $0x78] sm:$0xff]  ;;  %v4499_v56 = vld [vmem:[%s6727_s0 + $0x90] sm:$0xff]   ;;  %v4501_v57 = vld [vmem:[%s6727_s0 + $0x2a0] sm:$0xff]  }
  0x14   :  { %2704 = vperm.xlu0 %4458, %v2654_v34   ;;  %2709 = vperm.xlu1 %4459, %v2655_v35   ;;  %v2666_v58 = vld [vmem:[%s6730_s3 + $0x80] sm:$0xff]  ;;  %v2667_v59 = vld [vmem:[%s6730_s3 + $0x88] sm:$0xff]  ;;  %v4500_v60 = vld [vmem:[%s6727_s0 + $0x98] sm:$0xff]  }
  0x15   :  { %v4502_v61 = vld [vmem:[%s6727_s0 + $0x2a8] sm:$0xff]   ;;  %v4503_v62 = vld [vmem:[%s6727_s0 + $0xa0] sm:$0xff]   ;;  %v2668_v63 = vld [vmem:[%s6730_s3 + $0x90] sm:$0xff] }
  0x16   :  { %4189 = vmatmul.mubr.msk.bf16.gmra.mrb[4].mxu0 %vm952_vm0, %v4468_v10  ;;  %4321 = vmatmul.mubr.msk.bf16.gmra.mrb[4].mxu1 %vm952_vm0, %v4470_v11  ;;  %v2669_v0 = vld [vmem:[%s6730_s3 + $0x98] sm:$0xff]  ;;  %v4505_v1 = vld [vmem:[%s6727_s0 + $0x2b0] sm:$0xff]   ;;  %v2670_v2 = vld [vmem:[%s6730_s3 + $0xa0] sm:$0xff] }
  0x17   :  { %4192 = vmatprep.mubr.msk.bf16.mxu0 %vm952_vm0, %v4471_v12  ;;  %4324 = vmatprep.mubr.msk.bf16.mxu1 %vm952_vm0, %v4473_v13  ;;  %v2671_v3 = vld [vmem:[%s6730_s3 + $0xa8] sm:$0xff]  ;;  %v4506_v5 = vld [vmem:[%s6727_s0 + $0x2b8] sm:$0xff]   ;;  %v4507_v6 = vld [vmem:[%s6727_s0 + $0xb0] sm:$0xff]  }
  0x18   :  { %2714 = vperm.xlu0 %4458, %v2656_v38   ;;  %2719 = vperm.xlu1 %4459, %v2657_v39   ;;  %v4504_v4 = vld [vmem:[%s6727_s0 + $0xa8] sm:$0xff]   ;;  %v2672_v7 = vld [vmem:[%s6730_s3 + $0xb0] sm:$0xff]  ;;  %v2673_v8 = vld [vmem:[%s6730_s3 + $0xb8] sm:$0xff] }
  0x19   :  { %v4509_v9 = vld [vmem:[%s6727_s0 + $0x2c0] sm:$0xff]   ;;  %v2675_v11 = vld [vmem:[%s6730_s3 + $0xc8] sm:$0xff]  ;;  %v4508_v12 = vld [vmem:[%s6727_s0 + $0xb8] sm:$0xff]  }
  0x1a   :  { %v2674_v10 = vld [vmem:[%s6730_s3 + $0xc0] sm:$0xff]  ;;  %v4510_v13 = vld [vmem:[%s6727_s0 + $0x2c8] sm:$0xff]   ;;  %v4516_v26 = vld [vmem:[%s6727_s0 + $0xd8] sm:$0xff]  }
  0x1b   :  { %v4518_v27 = vld [vmem:[%s6727_s0 + $0x2e8] sm:$0xff]   ;;  %v4525_v33 = vld [vmem:[%s6727_s0 + $0x300] sm:$0xff]   ;;  %v4524_v34 = vld [vmem:[%s6727_s0 + $0xf8] sm:$0xff]  }
  0x1c   :  { %2724 = vperm.xlu0 %4458, %v2658_v42   ;;  %2729 = vperm.xlu1 %4459, %v2659_v43   ;;  %v4520_v30 = vld [vmem:[%s6727_s0 + $0xe8] sm:$0xff]   ;;  %v4530_v39 = vld [vmem:[%s6727_s0 + $0x318] sm:$0xff]  }
  0x1d   :  { %v4526_v35 = vld [vmem:[%s6727_s0 + $0x308] sm:$0xff]  }
  0x1e   :  { %4193 = vmatmul.mubr.msk.bf16.gmra.mrb[8].mxu0 %vm952_vm0, %v4472_v14  ;;  %4325 = vmatmul.mubr.msk.bf16.gmra.mrb[8].mxu1 %vm952_vm0, %v4474_v15  ;;  %v4511_v14 = vld [vmem:[%s6727_s0 + $0xc0] sm:$0xff]   ;;  %v2676_v15 = vld [vmem:[%s6730_s3 + $0xd0] sm:$0xff]  ;;  %v4528_v38 = vld [vmem:[%s6727_s0 + $0x108] sm:$0xff]  }
  0x1f   :  { %4196 = vmatprep.mubr.msk.bf16.mxu0 %vm952_vm0, %v4475_v16  ;;  %4328 = vmatprep.mubr.msk.bf16.mxu1 %vm952_vm0, %v4477_v17  ;;  %v2677_v16 = vld [vmem:[%s6730_s3 + $0xd8] sm:$0xff]  ;;  %v4513_v17 = vld [vmem:[%s6727_s0 + $0x2d0] sm:$0xff]  }
  0x20   :  { %2734 = vperm.xlu0 %4458, %v2660_v47   ;;  %2739 = vperm.xlu1 %4459, %v2661_v48  }
  0x24   :  { %2744 = vperm.xlu0 %4458, %v2662_v50   ;;  %2749 = vperm.xlu1 %4459, %v2663_v51  }
  0x26   :  { %4197 = vmatmul.mubr.msk.bf16.gmra.mrb[12].mxu0 %vm952_vm0, %v4476_v18  ;;  %4329 = vmatmul.mubr.msk.bf16.gmra.mrb[12].mxu1 %vm952_vm0, %v4478_v19  ;;  %v2678_v18 = vld [vmem:[%s6730_s3 + $0xe0] sm:$0xff]  ;;  %v2679_v19 = vld [vmem:[%s6730_s3 + $0xe8] sm:$0xff] }
  0x27   :  { %4200 = vmatprep.mubr.msk.bf16.mxu0 %vm952_vm0, %v4479_v20  ;;  %4332 = vmatprep.mubr.msk.bf16.mxu1 %vm952_vm0, %v4481_v21  ;;  %v4512_v20 = vld [vmem:[%s6727_s0 + $0xc8] sm:$0xff]   ;;  %v4514_v21 = vld [vmem:[%s6727_s0 + $0x2d8] sm:$0xff]  }
  0x28   :  { %2754 = vperm.xlu0 %4458, %v2664_v54   ;;  %2759 = vperm.xlu1 %4459, %v2665_v55  }
  0x2c   :  { %2764 = vperm.xlu0 %4458, %v2666_v58   ;;  %2769 = vperm.xlu1 %4459, %v2667_v59  }
  0x2e   :  { %4201 = vmatmul.mubr.msk.bf16.gmra.mrb[16].mxu0 %vm952_vm0, %v4480_v22  ;;  %4333 = vmatmul.mubr.msk.bf16.gmra.mrb[16].mxu1 %vm952_vm0, %v4482_v23  ;;  %v4515_v22 = vld [vmem:[%s6727_s0 + $0xd0] sm:$0xff]  }
  0x2f   :  { %4204 = vmatprep.mubr.msk.bf16.mxu0 %vm952_vm0, %v4483_v24  ;;  %4336 = vmatprep.mubr.msk.bf16.mxu1 %vm952_vm0, %v4485_v25  ;;  %v2680_v23 = vld [vmem:[%s6730_s3 + $0xf0] sm:$0xff]  ;;  %v2681_v24 = vld [vmem:[%s6730_s3 + $0xf8] sm:$0xff]  ;;  %v4517_v25 = vld [vmem:[%s6727_s0 + $0x2e0] sm:$0xff]  }
  0x30   :  { %2774 = vperm.xlu0 %4458, %v2668_v63   ;;  %2779 = vperm.xlu1 %4459, %v2669_v0  }
  0x34   :  { %2784 = vperm.xlu0 %4458, %v2670_v2   ;;  %2789 = vperm.xlu1 %4459, %v2671_v3  }
  0x36   :  { %4205 = vmatmul.mubr.msk.bf16.gmra.mrb[20].mxu0 %vm952_vm0, %v4484_v28  ;;  %4337 = vmatmul.mubr.msk.bf16.gmra.mrb[20].mxu1 %vm952_vm0, %v4486_v29  ;;  %v4519_v28 = vld [vmem:[%s6727_s0 + $0xe0] sm:$0xff]   ;;  %v4521_v29 = vld [vmem:[%s6727_s0 + $0x2f0] sm:$0xff]  }
  0x37   :  { %4208 = vmatprep.mubr.msk.bf16.mxu0 %vm952_vm0, %v4487_v31  ;;  %4340 = vmatprep.mubr.msk.bf16.mxu1 %vm952_vm0, %v4489_v32  ;;  %v4522_v31 = vld [vmem:[%s6727_s0 + $0x2f8] sm:$0xff]   ;;  %v4523_v32 = vld [vmem:[%s6727_s0 + $0xf0] sm:$0xff]  }
  0x38   :  { %2794 = vperm.xlu0 %4458, %v2672_v7   ;;  %2799 = vperm.xlu1 %4459, %v2673_v8  }
  0x3c   :  { %2804 = vperm.xlu0 %4458, %v2674_v10   ;;  %2809 = vperm.xlu1 %4459, %v2675_v11  }
  0x3e   :  { %4209 = vmatmul.mubr.msk.bf16.gmra.mrb[24].mxu0 %vm952_vm0, %v4488_v36  ;;  %4341 = vmatmul.mubr.msk.bf16.gmra.mrb[24].mxu1 %vm952_vm0, %v4490_v37  ;;  %v4527_v36 = vld [vmem:[%s6727_s0 + $0x100] sm:$0xff]   ;;  %v4529_v37 = vld [vmem:[%s6727_s0 + $0x310] sm:$0xff]  }
  0x3f   :  { %4212 = vmatprep.mubr.msk.bf16.mxu0 %vm952_vm0, %v4491_v40  ;;  %4344 = vmatprep.mubr.msk.bf16.mxu1 %vm952_vm0, %v4493_v41  ;;  %v4531_v40 = vld [vmem:[%s6727_s0 + $0x110] sm:$0xff]   ;;  %v4533_v41 = vld [vmem:[%s6727_s0 + $0x320] sm:$0xff]  }
  0x40   :  { %2814 = vperm.xlu0 %4458, %v2676_v15   ;;  %2819 = vperm.xlu1 %4459, %v2677_v16  }
  0x44   :  { %2824 = vperm.xlu0 %4458, %v2678_v18   ;;  %2829 = vperm.xlu1 %4459, %v2679_v19  }
  0x46   :  { %4213 = vmatmul.mubr.msk.bf16.gmra.mrb[28].mxu0 %vm952_vm0, %v4492_v44  ;;  %4345 = vmatmul.mubr.msk.bf16.gmra.mrb[28].mxu1 %vm952_vm0, %v4494_v45 }
  0x47   :  { %4216 = vmatprep.mubr.msk.bf16.mxu0 %vm952_vm0, %v4495_v46  ;;  %4348 = vmatprep.mubr.msk.bf16.mxu1 %vm952_vm0, %v4497_v49 }
  0x48   :  { %2834 = vperm.xlu0 %4458, %v2680_v23   ;;  %2839 = vperm.xlu1 %4459, %v2681_v24  }
  0x4e   :  { %4217 = vmatmul.mubr.msk.bf16.gmra.mrb[32].mxu0 %vm952_vm0, %v4496_v52  ;;  %4349 = vmatmul.mubr.msk.bf16.gmra.mrb[32].mxu1 %vm952_vm0, %v4498_v53 }
  0x4f   :  { %4220 = vmatprep.mubr.msk.bf16.mxu0 %vm952_vm0, %v4499_v56  ;;  %4352 = vmatprep.mubr.msk.bf16.mxu1 %vm952_vm0, %v4501_v57 }
  0x56   :  { %4221 = vmatmul.mubr.msk.bf16.gmra.mrb[36].mxu0 %vm952_vm0, %v4500_v60  ;;  %4353 = vmatmul.mubr.msk.bf16.gmra.mrb[36].mxu1 %vm952_vm0, %v4502_v61 }
  0x57   :  { %4224 = vmatprep.mubr.msk.bf16.mxu0 %vm952_vm0, %v4503_v62  ;;  %4356 = vmatprep.mubr.msk.bf16.mxu1 %vm952_vm0, %v4505_v1 }
  0x5e   :  { %4225 = vmatmul.mubr.msk.bf16.gmra.mrb[40].mxu0 %vm952_vm0, %v4504_v4  ;;  %4357 = vmatmul.mubr.msk.bf16.gmra.mrb[40].mxu1 %vm952_vm0, %v4506_v5 }
  0x5f   :  { %4228 = vmatprep.mubr.msk.bf16.mxu0 %vm952_vm0, %v4507_v6  ;;  %4360 = vmatprep.mubr.msk.bf16.mxu1 %vm952_vm0, %v4509_v9 }
  0x66   :  { %4229 = vmatmul.mubr.msk.bf16.gmra.mrb[44].mxu0 %vm952_vm0, %v4508_v12  ;;  %4361 = vmatmul.mubr.msk.bf16.gmra.mrb[44].mxu1 %vm952_vm0, %v4510_v13 }
  0x67   :  { %4232 = vmatprep.mubr.msk.bf16.mxu0 %vm952_vm0, %v4511_v14  ;;  %4364 = vmatprep.mubr.msk.bf16.mxu1 %vm952_vm0, %v4513_v17 }
  0x6e   :  { %4233 = vmatmul.mubr.msk.bf16.gmra.mrb[48].mxu0 %vm952_vm0, %v4512_v20  ;;  %4365 = vmatmul.mubr.msk.bf16.gmra.mrb[48].mxu1 %vm952_vm0, %v4514_v21 }
  0x6f   :  { %4236 = vmatprep.mubr.msk.bf16.mxu0 %vm952_vm0, %v4515_v22  ;;  %4368 = vmatprep.mubr.msk.bf16.mxu1 %vm952_vm0, %v4517_v25 }
  0x76   :  { %4237 = vmatmul.mubr.msk.bf16.gmra.mrb[52].mxu0 %vm952_vm0, %v4516_v26  ;;  %4369 = vmatmul.mubr.msk.bf16.gmra.mrb[52].mxu1 %vm952_vm0, %v4518_v27 }
  0x77   :  { %4240 = vmatprep.mubr.msk.bf16.mxu0 %vm952_vm0, %v4519_v28  ;;  %4372 = vmatprep.mubr.msk.bf16.mxu1 %vm952_vm0, %v4521_v29 }
  0x7e   :  { %4241 = vmatmul.mubr.msk.bf16.gmra.mrb[56].mxu0 %vm952_vm0, %v4520_v30  ;;  %4373 = vmatmul.mubr.msk.bf16.gmra.mrb[56].mxu1 %vm952_vm0, %v4522_v31 }
  0x7f   :  { %4244 = vmatprep.mubr.msk.bf16.mxu0 %vm952_vm0, %v4523_v32  ;;  %4376 = vmatprep.mubr.msk.bf16.mxu1 %vm952_vm0, %v4525_v33 }
  0x86   :  { %4245 = vmatmul.mubr.msk.bf16.gmra.mrb[60].mxu0 %vm952_vm0, %v4524_v34  ;;  %4377 = vmatmul.mubr.msk.bf16.gmra.mrb[60].mxu1 %vm952_vm0, %v4526_v35 }
  0x87   :  { %4248 = vmatprep.mubr.msk.bf16.mxu0 %vm952_vm0, %v4527_v36  ;;  %4380 = vmatprep.mubr.msk.bf16.mxu1 %vm952_vm0, %v4529_v37 }
  0x8e   :  { %4249 = vmatmul.mubr.msk.bf16.gmra.mrb[64].mxu0 %vm952_vm0, %v4528_v38  ;;  %4381 = vmatmul.mubr.msk.bf16.gmra.mrb[64].mxu1 %vm952_vm0, %v4530_v39 }
  0x8f   :  { %4252 = vmatprep.mubr.msk.bf16.mxu0 %vm952_vm0, %v4531_v40  ;;  %4384 = vmatprep.mubr.msk.bf16.mxu1 %vm952_vm0, %v4533_v41 }
  0x90   :  { %11 = vsyncpa [#allocation3], 0  ;;  %v4532_v42 = vld [vmem:[%s6727_s0 + $0x118] sm:$0xff]   ;;  %v4534_v43 = vld [vmem:[%s6727_s0 + $0x328] sm:$0xff]   ;;  %v5126_v62 = vpop.permute.xlu0 %2684  ;;  %v5128_v63 = vpop.permute.xlu1 %2694  ;;  %v6734_v21 = vmov 0.0   ;;  %vm3098_vm1 = vcmask 261120  }
  0x91   :  { %v4535_v44 = vld [vmem:[%s6727_s0 + $0x120] sm:$0xff]   ;;  %v4537_v45 = vld [vmem:[%s6727_s0 + $0x330] sm:$0xff]   ;;  %v4536_v46 = vld [vmem:[%s6727_s0 + $0x128] sm:$0xff]   ;;  %6827 = vst [vmem:[#allocation5_spill] sm:$0xff] %v5126_v62  ;;  %4440 = vmatprep.subr.bf16.mxu1 %v6734_v21  ;;  %vm3686_vm2 = vcmask 1041409   ;;  %vm3688_vm3 = vcmask 1042434  }
  0x92   :  { %v4538_v47 = vld [vmem:[%s6727_s0 + $0x338] sm:$0xff]   ;;  %v4539_v48 = vld [vmem:[%s6727_s0 + $0x130] sm:$0xff]   ;;  %v4541_v49 = vld [vmem:[%s6727_s0 + $0x340] sm:$0xff]   ;;  %6828 = vst [vmem:[#allocation6_spill] sm:$0xff] %v5128_v63  ;;  %vm4626_vm4 = vmmov 0   ;;  %vm3690_vm5 = vcmask 1043459  }
  0x93   :  { %v4540_v50 = vld [vmem:[%s6727_s0 + $0x138] sm:$0xff]   ;;  %v4542_v51 = vld [vmem:[%s6727_s0 + $0x348] sm:$0xff]   ;;  %v4543_v52 = vld [vmem:[%s6727_s0 + $0x140] sm:$0xff]   ;;  %vm3692_vm6 = vcmask 1044484   ;;  %vm3694_vm7 = vcmask 1045509   ;;  %vm3696_vm8 = vcmask 1046534  }
  0x94   :  { %v4545_v53 = vld [vmem:[%s6727_s0 + $0x350] sm:$0xff]   ;;  %v4544_v54 = vld [vmem:[%s6727_s0 + $0x148] sm:$0xff]   ;;  %v4546_v55 = vld [vmem:[%s6727_s0 + $0x358] sm:$0xff]   ;;  %v5144_v4 = vpop.permute.xlu0 %2689  ;;  %v5146_v5 = vpop.permute.xlu1 %2699  ;;  %vm3698_vm9 = vcmask 1047559   ;;  %s4627_s3 = smov [#allocation2]  }
  0x95   :  { %v4547_v56 = vld [vmem:[%s6727_s0 + $0x150] sm:$0xff]   ;;  %v4549_v57 = vld [vmem:[%s6727_s0 + $0x360] sm:$0xff]   ;;  %v4548_v58 = vld [vmem:[%s6727_s0 + $0x158] sm:$0xff]   ;;  %6829 = vst [vmem:[#allocation7_spill] sm:$0xff] %v5144_v4  ;;  %s3772_s27 = sshll.u32 %s4627_s3, 4  ;;  %s3773_s27 = int_to_ptr.vmem [resolvable:$true] %s3772_s27 }
  0x96   :  { %4253 = vmatmul.mubr.msk.bf16.gmra.mrb[68].mxu0 %vm952_vm0, %v4532_v42  ;;  %4385 = vmatmul.mubr.msk.bf16.gmra.mrb[68].mxu1 %vm952_vm0, %v4534_v43  ;;  %v4550_v59 = vld [vmem:[%s6727_s0 + $0x368] sm:$0xff]   ;;  %v4551_v60 = vld [vmem:[%s6727_s0 + $0x160] sm:$0xff]   ;;  %v4553_v61 = vld [vmem:[%s6727_s0 + $0x370] sm:$0xff]   ;;  %6830 = vst [vmem:[#allocation8_spill] sm:$0xff] %v5146_v5  ;;  %p4605_p1 = scmp.lt.s32.totalorder %s3773_s27, %s3773_s27 }
  0x97   :  { %4256 = vmatprep.mubr.msk.bf16.mxu0 %vm952_vm0, %v4535_v44  ;;  %4388 = vmatprep.mubr.msk.bf16.mxu1 %vm952_vm0, %v4537_v45  ;;  %v4552_v0 = vld [vmem:[%s6727_s0 + $0x168] sm:$0xff]   ;;  %v4554_v1 = vld [vmem:[%s6727_s0 + $0x378] sm:$0xff]   ;;  %v4555_v2 = vld [vmem:[%s6727_s0 + $0x170] sm:$0xff]  }
  0x98   :  { %v4557_v3 = vld [vmem:[%s6727_s0 + $0x380] sm:$0xff]   ;;  %v4556_v6 = vld [vmem:[%s6727_s0 + $0x178] sm:$0xff]   ;;  %v4558_v7 = vld [vmem:[%s6727_s0 + $0x388] sm:$0xff]   ;;  %v5158_v8 = vpop.permute.xlu0 %2704  ;;  %v5160_v9 = vpop.permute.xlu1 %2709 }
  0x99   :  { %6831 = vst [vmem:[#allocation9_spill] sm:$0xff] %v5158_v8  ;;  %6832 = vst [vmem:[#allocation10_spill] sm:$0xff] %v5160_v9  ;;  %v4559_v10 = vld [vmem:[%s6727_s0 + $0x180] sm:$0xff]   ;;  %v4561_v11 = vld [vmem:[%s6727_s0 + $0x390] sm:$0xff]  }
  0x9a   :  { %v4560_v14 = vld [vmem:[%s6727_s0 + $0x188] sm:$0xff]   ;;  %v4562_v15 = vld [vmem:[%s6727_s0 + $0x398] sm:$0xff]   ;;  %v4563_v16 = vld [vmem:[%s6727_s0 + $0x190] sm:$0xff]  }
  0x9b   :  { %v4565_v17 = vld [vmem:[%s6727_s0 + $0x3a0] sm:$0xff]   ;;  %v4564_v22 = vld [vmem:[%s6727_s0 + $0x198] sm:$0xff]   ;;  %v4566_v23 = vld [vmem:[%s6727_s0 + $0x3a8] sm:$0xff]  }
  0x9c   :  { %v5172_v12 = vpop.permute.xlu0 %2714  ;;  %v5174_v13 = vpop.permute.xlu1 %2719  ;;  %v4591_v20 = vld [vmem:[%s6731_s4] sm:$0xff]   ;;  %v4569_v25 = vld [vmem:[%s6727_s0 + $0x3b0] sm:$0xff]   ;;  %v4568_v28 = vld [vmem:[%s6727_s0 + $0x1a8] sm:$0xff]  }
  0x9d   :  { %6833 = vst [vmem:[#allocation11_spill] sm:$0xff] %v5172_v12  ;;  %6834 = vst [vmem:[#allocation12_spill] sm:$0xff] %v5174_v13  ;;  %4441 = vmatpush3.bf16.msra.mxu1 %v4591_v20  ;;  %v4567_v24 = vld [vmem:[%s6727_s0 + $0x1a0] sm:$0xff]   ;;  %v4570_v29 = vld [vmem:[%s6727_s0 + $0x3b8] sm:$0xff]  }
  0x9e   :  { %4257 = vmatmul.mubr.msk.bf16.gmra.mrb[72].mxu0 %vm952_vm0, %v4536_v46  ;;  %4389 = vmatmul.mubr.msk.bf16.gmra.mrb[72].mxu1 %vm952_vm0, %v4538_v47  ;;  %v4571_v32 = vld [vmem:[%s6727_s0 + $0x1b0] sm:$0xff]   ;;  %v4573_v33 = vld [vmem:[%s6727_s0 + $0x3c0] sm:$0xff]   ;;  %v4572_v41 = vld [vmem:[%s6727_s0 + $0x1b8] sm:$0xff]  }
  0x9f   :  { %4260 = vmatprep.mubr.msk.bf16.mxu0 %vm952_vm0, %v4539_v48  ;;  %4392 = vmatprep.mubr.msk.bf16.mxu1 %vm952_vm0, %v4541_v49  ;;  %v5242_v34 = vld [vmem:[%s6729_s2] ss:$0 sm:$0xff]  ;;  %v4574_v42 = vld [vmem:[%s6727_s0 + $0x3c8] sm:$0xff]   ;;  %v4577_v47 = vld [vmem:[%s6727_s0 + $0x3d0] sm:$0xff]  }
  0xa0   :  { %v5190_v18 = vpop.permute.xlu0 %2724  ;;  %v5192_v19 = vpop.permute.xlu1 %2729  ;;  %4442 = vmatprep.subr.bf16.mxu1 %v6734_v21  ;;  %v4575_v46 = vld [vmem:[%s6727_s0 + $0x1c0] sm:$0xff]   ;;  %v4579_v20 = vld [vmem:[%s6727_s0 + $0x1d0] sm:$0xff]  }
  0xa1   :  { %6835 = vst [vmem:[#allocation13_spill] sm:$0xff] %v5190_v18  ;;  %6836 = vst [vmem:[#allocation14_spill] sm:$0xff] %v5192_v19 }
  0xa4   :  { %v5213_v26 = vpop.permute.xlu0 %2734  ;;  %v5215_v27 = vpop.permute.xlu1 %2739 }
  0xa5   :  { %6837 = vst [vmem:[#allocation15_spill] sm:$0xff] %v5213_v26  ;;  %6838 = vst [vmem:[#allocation16_spill] sm:$0xff] %v5215_v27 }
  0xa6   :  { %4261 = vmatmul.mubr.msk.bf16.gmra.mrb[76].mxu0 %vm952_vm0, %v4540_v50  ;;  %4393 = vmatmul.mubr.msk.bf16.gmra.mrb[76].mxu1 %vm952_vm0, %v4542_v51 }
  0xa7   :  { %4264 = vmatprep.mubr.msk.bf16.mxu0 %vm952_vm0, %v4543_v52  ;;  %4396 = vmatprep.mubr.msk.bf16.mxu1 %vm952_vm0, %v4545_v53 }
  0xa8   :  { %v5227_v30 = vpop.permute.xlu0 %2744  ;;  %v5229_v31 = vpop.permute.xlu1 %2749 }
  0xa9   :  { %6839 = vst [vmem:[#allocation17_spill] sm:$0xff] %v5227_v30  ;;  %6840 = vst [vmem:[#allocation18_spill] sm:$0xff] %v5229_v31 }
  0xac   :  { %v5246_v35 = vpop.permute.xlu0 %2754  ;;  %v5248_v36 = vpop.permute.xlu1 %2759 }
  0xad   :  { %6841 = vst [vmem:[#allocation19_spill] sm:$0xff] %v5246_v35  ;;  %6842 = vst [vmem:[#allocation20_spill] sm:$0xff] %v5248_v36 }
  0xae   :  { %4265 = vmatmul.mubr.msk.bf16.gmra.mrb[80].mxu0 %vm952_vm0, %v4544_v54  ;;  %4397 = vmatmul.mubr.msk.bf16.gmra.mrb[80].mxu1 %vm952_vm0, %v4546_v55 }
  0xaf   :  { %4268 = vmatprep.mubr.msk.bf16.mxu0 %vm952_vm0, %v4547_v56  ;;  %4400 = vmatprep.mubr.msk.bf16.mxu1 %vm952_vm0, %v4549_v57 }
  0xb6   :  { %4269 = vmatmul.mubr.msk.bf16.gmra.mrb[84].mxu0 %vm952_vm0, %v4548_v58  ;;  %4401 = vmatmul.mubr.msk.bf16.gmra.mrb[84].mxu1 %vm952_vm0, %v4550_v59  ;;  %v5279_v58 = vpop.permute.xlu0 %2764  ;;  %v5281_v59 = vpop.permute.xlu1 %2769 }
  0xb7   :  { %4272 = vmatprep.mubr.msk.bf16.mxu0 %vm952_vm0, %v4551_v60  ;;  %4404 = vmatprep.mubr.msk.bf16.mxu1 %vm952_vm0, %v4553_v61  ;;  %6847 = vst [vmem:[#allocation25_spill] sm:$0xff] %v5279_v58  ;;  %6848 = vst [vmem:[#allocation26_spill] sm:$0xff] %v5281_v59 }
  0xbe   :  { %4273 = vmatmul.mubr.msk.bf16.gmra.mrb[88].mxu0 %vm952_vm0, %v4552_v0  ;;  %4405 = vmatmul.mubr.msk.bf16.gmra.mrb[88].mxu1 %vm952_vm0, %v4554_v1 }
  0xbf   :  { %4276 = vmatprep.mubr.msk.bf16.mxu0 %vm952_vm0, %v4555_v2  ;;  %4408 = vmatprep.mubr.msk.bf16.mxu1 %vm952_vm0, %v4557_v3 }
  0xc6   :  { %4277 = vmatmul.mubr.msk.bf16.gmra.mrb[92].mxu0 %vm952_vm0, %v4556_v6  ;;  %4409 = vmatmul.mubr.msk.bf16.gmra.mrb[92].mxu1 %vm952_vm0, %v4558_v7  ;;  %v4576_v6 = vld [vmem:[%s6727_s0 + $0x1c8] sm:$0xff]   ;;  %v4578_v7 = vld [vmem:[%s6727_s0 + $0x3d8] sm:$0xff]  }
  0xc7   :  { %4280 = vmatprep.mubr.msk.bf16.mxu0 %vm952_vm0, %v4559_v10  ;;  %4412 = vmatprep.mubr.msk.bf16.mxu1 %vm952_vm0, %v4561_v11 }
  0xce   :  { %4281 = vmatmul.mubr.msk.bf16.gmra.mrb[96].mxu0 %vm952_vm0, %v4560_v14  ;;  %4413 = vmatmul.mubr.msk.bf16.gmra.mrb[96].mxu1 %vm952_vm0, %v4562_v15 }
  0xcf   :  { %4284 = vmatprep.mubr.msk.bf16.mxu0 %vm952_vm0, %v4563_v16  ;;  %4416 = vmatprep.mubr.msk.bf16.mxu1 %vm952_vm0, %v4565_v17 }
  0xd6   :  { %4285 = vmatmul.mubr.msk.bf16.gmra.mrb[100].mxu0 %vm952_vm0, %v4564_v22  ;;  %4417 = vmatmul.mubr.msk.bf16.gmra.mrb[100].mxu1 %vm952_vm0, %v4566_v23  ;;  %v4581_v22 = vld [vmem:[%s6727_s0 + $0x3e0] sm:$0xff]  }
  0xd7   :  { %4288 = vmatprep.mubr.msk.bf16.mxu0 %vm952_vm0, %v4567_v24  ;;  %4420 = vmatprep.mubr.msk.bf16.mxu1 %vm952_vm0, %v4569_v25 }
  0xde   :  { %4289 = vmatmul.mubr.msk.bf16.gmra.mrb[104].mxu0 %vm952_vm0, %v4568_v28  ;;  %4421 = vmatmul.mubr.msk.bf16.gmra.mrb[104].mxu1 %vm952_vm0, %v4570_v29 }
  0xdf   :  { %4292 = vmatprep.mubr.msk.bf16.mxu0 %vm952_vm0, %v4571_v32  ;;  %4424 = vmatprep.mubr.msk.bf16.mxu1 %vm952_vm0, %v4573_v33 }
  0xe1   :  { %v4186_v37 = vpop.f32.mrb[0].mxu0  ;;  %v5250_v38 = vpop.f32.mrb[0].mxu1 }
  0xe2   :  { %6843 = vst [vmem:[#allocation21_spill] sm:$0xff] %v5250_v38  ;;  %v1380_v39 = vadd.f32 %v4186_v37, %v5242_v34  ;;  %v1371_v40 = vpop.f32.mrb[1].mxu0  ;;  %v5259_v43 = vpop.f32.mrb[1].mxu1 }
  0xe3   :  { %6844 = vst [vmem:[#allocation22_spill] sm:$0xff] %v5259_v43  ;;  %v1372_v44 = vadd.f32 %v5242_v34, %v1371_v40  ;;  %v4187_v45 = vpop.f32.mrb[2].mxu0  ;;  %v5270_v53 = vpop.f32.mrb[2].mxu1 }
  0xe4   :  { %v1383_v48 = vadd.f32 %v4187_v45, %v5242_v34  ;;  %v1374_v49 = vpop.f32.mrb[3].mxu0  ;;  %v2396_v50 = vmax.f32 %v1380_v39, 0.0  ;;  %6845 = vst [vmem:[#allocation23_spill] sm:$0xff] %v5270_v53  ;;  %v5274_v54 = vpop.f32.mrb[3].mxu1 }
  0xe5   :  { %v2394_v51 = vmax.f32 %v1372_v44, 0.0  ;;  %v1375_v52 = vadd.f32 %v5242_v34, %v1374_v49  ;;  %6846 = vst [vmem:[#allocation24_spill] sm:$0xff] %v5274_v54 }
  0xe6   :  { %4293 = vmatmul.mubr.msk.bf16.gmra.mrb[108].mxu0 %vm952_vm0, %v4572_v41  ;;  %4425 = vmatmul.mubr.msk.bf16.gmra.mrb[108].mxu1 %vm952_vm0, %v4574_v42  ;;  %v2397_v56 = vmax.f32 %v1383_v48, 0.0  ;;  %v2844_v0 = vmul.f32 %v5128_v63, %v2396_v50  ;;  %v5321_v48 = vpop.permute.xlu1 %2779 }
  0xe7   :  { %v2842_v55 = vmul.f32 %v5126_v62, %v2394_v51  ;;  %v2395_v57 = vmax.f32 %v1375_v52, 0.0  ;;  %4296 = vmatprep.mubr.msk.bf16.mxu0 %vm952_vm0, %v4575_v46  ;;  %4428 = vmatprep.mubr.msk.bf16.mxu1 %vm952_vm0, %v4577_v47  ;;  %v5319_v47 = vpop.permute.xlu0 %2774  ;;  %6854 = vst [vmem:[#allocation32_spill] sm:$0xff] %v5321_v48 }
  0xe8   :  { %v2845_v15 = vmul.f32 %v5146_v5, %v2397_v56  ;;  %v3102_v32 = vsel %vm3098_vm1, %v2844_v0, 0.0  ;;  %6853 = vst [vmem:[#allocation31_spill] sm:$0xff] %v5319_v47  ;;  %v4582_v0 = vld [vmem:[%s6727_s0 + $0x3e8] sm:$0xff]  }
  0xe9   :  { %v4190_v60 = vpop.f32.mrb[4].mxu0  ;;  %v2843_v61 = vmul.f32 %v5144_v4, %v2395_v57  ;;  %v5285_v1 = vpop.f32.mrb[4].mxu1  ;;  %v3099_v11 = vsel %vm3098_vm1, %v2842_v55, 0.0 }
  0xea   :  { %6849 = vst [vmem:[#allocation27_spill] sm:$0xff] %v5285_v1  ;;  %v1396_v2 = vadd.f32 %v4190_v60, %v5242_v34  ;;  %v1387_v3 = vpop.f32.mrb[5].mxu0  ;;  %v5294_v10 = vpop.f32.mrb[5].mxu1  ;;  %v3104_v42 = vsel %vm3098_vm1, %v2845_v15, 0.0  ;;  %v4585_v15 = vld [vmem:[%s6727_s0 + $0x3f0] sm:$0xff]  }
  0xeb   :  { %6850 = vst [vmem:[#allocation28_spill] sm:$0xff] %v5294_v10  ;;  %v1388_v14 = vadd.f32 %v5242_v34, %v1387_v3  ;;  %v3100_v16 = vsel %vm3098_vm1, %v2843_v61, 0.0  ;;  %v4191_v17 = vpop.f32.mrb[6].mxu0  ;;  %v5309_v37 = vpop.f32.mrb[6].mxu1  ;;  %v4580_v61 = vld [vmem:[%s6727_s0 + $0x1d8] sm:$0xff]  }
  0xec   :  { %v3101_v23 = vadd.f32 %v3100_v16, %v3099_v11  ;;  %v1399_v24 = vadd.f32 %v4191_v17, %v5242_v34  ;;  %v1390_v25 = vpop.f32.mrb[7].mxu0  ;;  %v2400_v28 = vmax.f32 %v1396_v2, 0.0  ;;  %6851 = vst [vmem:[#allocation29_spill] sm:$0xff] %v5309_v37  ;;  %v5313_v40 = vpop.f32.mrb[7].mxu1 }
  0xed   :  { %v2398_v29 = vmax.f32 %v1388_v14, 0.0  ;;  %v1391_v33 = vadd.f32 %v5242_v34, %v1390_v25  ;;  %6852 = vst [vmem:[#allocation30_spill] sm:$0xff] %v5313_v40  ;;  %v4583_v14 = vld [vmem:[%s6727_s0 + $0x1e0] sm:$0xff]  }
  0xee   :  { %v3103_v39 = vadd.f32 %v3102_v32, %v3101_v23  ;;  %4297 = vmatmul.mubr.msk.bf16.gmra.mrb[112].mxu0 %vm952_vm0, %v4576_v6  ;;  %4429 = vmatmul.mubr.msk.bf16.gmra.mrb[112].mxu1 %vm952_vm0, %v4578_v7  ;;  %v2401_v44 = vmax.f32 %v1399_v24, 0.0  ;;  %v2848_v52 = vmul.f32 %v5172_v12, %v2400_v28 }
  0xef   :  { %v2846_v41 = vmul.f32 %v5158_v8, %v2398_v29  ;;  %v2399_v45 = vmax.f32 %v1391_v33, 0.0  ;;  %4300 = vmatprep.mubr.msk.bf16.mxu0 %vm952_vm0, %v4579_v20  ;;  %4432 = vmatprep.mubr.msk.bf16.mxu1 %vm952_vm0, %v4581_v22 }
  0xf0   :  { %v3105_v46 = vadd.f32 %v3104_v42, %v3103_v39  ;;  %v2849_v7 = vmul.f32 %v5174_v13, %v2401_v44  ;;  %v3110_v28 = vsel %vm3098_vm1, %v2848_v52, 0.0 }
  0xf1   :  { %v3106_v49 = vsel %vm3098_vm1, %v2846_v41, 0.0  ;;  %v2847_v50 = vmul.f32 %v5160_v9, %v2399_v45  ;;  %v4194_v51 = vpop.f32.mrb[8].mxu0  ;;  %v5326_v55 = vpop.f32.mrb[8].mxu1 }
  0xf2   :  { %6855 = vst [vmem:[#allocation33_spill] sm:$0xff] %v5326_v55  ;;  %v3107_v56 = vadd.f32 %v3106_v49, %v3105_v46  ;;  %v1412_v57 = vadd.f32 %v4194_v51, %v5242_v34  ;;  %v1403_v60 = vpop.f32.mrb[9].mxu0  ;;  %v5335_v2 = vpop.f32.mrb[9].mxu1  ;;  %v3112_v39 = vsel %vm3098_vm1, %v2849_v7, 0.0 }
  0xf3   :  { %6856 = vst [vmem:[#allocation34_spill] sm:$0xff] %v5335_v2  ;;  %v3108_v3 = vsel %vm3098_vm1, %v2847_v50, 0.0  ;;  %v1404_v6 = vadd.f32 %v5242_v34, %v1403_v60  ;;  %v4195_v11 = vpop.f32.mrb[10].mxu0  ;;  %v5346_v16 = vpop.f32.mrb[10].mxu1 }
  0xf4   :  { %6857 = vst [vmem:[#allocation35_spill] sm:$0xff] %v5346_v16  ;;  %v3109_v17 = vadd.f32 %v3108_v3, %v3107_v56  ;;  %v1415_v20 = vadd.f32 %v4195_v11, %v5242_v34  ;;  %v1406_v22 = vpop.f32.mrb[11].mxu0  ;;  %v5349_v23 = vpop.f32.mrb[11].mxu1  ;;  %v2404_v24 = vmax.f32 %v1412_v57, 0.0  ;;  %v4586_v3 = vld [vmem:[%s6727_s0 + $0x3f8] sm:$0xff]  }
  0xf5   :  { %6858 = vst [vmem:[#allocation36_spill] sm:$0xff] %v5349_v23  ;;  %v2402_v25 = vmax.f32 %v1404_v6, 0.0  ;;  %v1407_v29 = vadd.f32 %v5242_v34, %v1406_v22  ;;  %v5359_v45 = vpop.permute.xlu0 %2784  ;;  %v5361_v46 = vpop.permute.xlu1 %2789 }
  0xf6   :  { %v3111_v32 = vadd.f32 %v3110_v28, %v3109_v17  ;;  %4301 = vmatmul.mubr.msk.bf16.gmra.mrb[116].mxu0 %vm952_vm0, %v4580_v61  ;;  %4433 = vmatmul.mubr.msk.bf16.gmra.mrb[116].mxu1 %vm952_vm0, %v4582_v0  ;;  %v2405_v41 = vmax.f32 %v1415_v20, 0.0  ;;  %6859 = vst [vmem:[#allocation37_spill] sm:$0xff] %v5359_v45  ;;  %6860 = vst [vmem:[#allocation38_spill] sm:$0xff] %v5361_v46  ;;  %v2852_v52 = vmul.f32 %v5213_v26, %v2404_v24  ;;  %v4584_v0 = vld [vmem:[%s6727_s0 + $0x1e8] sm:$0xff]   ;;  %v4587_v17 = vld [vmem:[%s6727_s0 + $0x1f0] sm:$0xff]  }
  0xf7   :  { %v2850_v33 = vmul.f32 %v5190_v18, %v2402_v25  ;;  %v2403_v42 = vmax.f32 %v1407_v29, 0.0  ;;  %4304 = vmatprep.mubr.msk.bf16.mxu0 %vm952_vm0, %v4583_v14  ;;  %4436 = vmatprep.mubr.msk.bf16.mxu1 %vm952_vm0, %v4585_v15 }
  0xf8   :  { %v3113_v44 = vadd.f32 %v3112_v39, %v3111_v32  ;;  %v2853_v14 = vmul.f32 %v5215_v27, %v2405_v41 }
  0xf9   :  { %v3114_v49 = vsel %vm3098_vm1, %v2850_v33, 0.0  ;;  %v2851_v50 = vmul.f32 %v5192_v19, %v2403_v42  ;;  %v4198_v51 = vpop.f32.mrb[12].mxu0  ;;  %v5366_v56 = vpop.f32.mrb[12].mxu1  ;;  %v3118_v33 = vsel %vm3098_vm1, %v2852_v52, 0.0 }
  0xfa   :  { %6861 = vst [vmem:[#allocation39_spill] sm:$0xff] %v5366_v56  ;;  %v3115_v57 = vadd.f32 %v3114_v49, %v3113_v44  ;;  %v1428_v60 = vadd.f32 %v4198_v51, %v5242_v34  ;;  %v1419_v61 = vpop.f32.mrb[13].mxu0  ;;  %v5375_v6 = vpop.f32.mrb[13].mxu1  ;;  %v3120_v44 = vsel %vm3098_vm1, %v2853_v14, 0.0 }
  0xfb   :  { %6862 = vst [vmem:[#allocation40_spill] sm:$0xff] %v5375_v6  ;;  %v3116_v7 = vsel %vm3098_vm1, %v2851_v50, 0.0  ;;  %v1420_v11 = vadd.f32 %v5242_v34, %v1419_v61  ;;  %v4199_v15 = vpop.f32.mrb[14].mxu0  ;;  %v5383_v20 = vpop.f32.mrb[14].mxu1 }
  0xfc   :  { %6863 = vst [vmem:[#allocation41_spill] sm:$0xff] %v5383_v20  ;;  %v3117_v22 = vadd.f32 %v3116_v7, %v3115_v57  ;;  %v1431_v24 = vadd.f32 %v4199_v15, %v5242_v34  ;;  %v1422_v25 = vpop.f32.mrb[15].mxu0  ;;  %v5386_v28 = vpop.f32.mrb[15].mxu1  ;;  %v2408_v29 = vmax.f32 %v1428_v60, 0.0 }
  0xfd   :  { %6864 = vst [vmem:[#allocation42_spill] sm:$0xff] %v5386_v28  ;;  %v2406_v32 = vmax.f32 %v1420_v11, 0.0  ;;  %v1423_v39 = vadd.f32 %v5242_v34, %v1422_v25  ;;  %v5395_v57 = vpop.permute.xlu0 %2794  ;;  %v5397_v60 = vpop.permute.xlu1 %2799 }
  0xfe   :  { %v3119_v41 = vadd.f32 %v3118_v33, %v3117_v22  ;;  %4305 = vmatmul.mubr.msk.bf16.gmra.mrb[120].mxu0 %vm952_vm0, %v4584_v0  ;;  %4437 = vmatmul.mubr.msk.bf16.gmra.mrb[120].mxu1 %vm952_vm0, %v4586_v3  ;;  %v2409_v49 = vmax.f32 %v1431_v24, 0.0  ;;  %6865 = vst [vmem:[#allocation43_spill] sm:$0xff] %v5395_v57  ;;  %6866 = vst [vmem:[#allocation44_spill] sm:$0xff] %v5397_v60  ;;  %v2856_v3 = vmul.f32 %v5246_v35, %v2408_v29  ;;  %v4589_v29 = vld [vmem:[%s6727_s0 + $0x200] sm:$0xff]  }
  0xff   :  { %v2854_v42 = vmul.f32 %v5227_v30, %v2406_v32  ;;  %v2407_v50 = vmax.f32 %v1423_v39, 0.0  ;;  %4308 = vmatprep.mubr.msk.bf16.mxu0 %vm952_vm0, %v4587_v17  ;;  %v4588_v17 = vld [vmem:[%s6727_s0 + $0x1f8] sm:$0xff]  }
 0x100   :  { %v3121_v51 = vadd.f32 %v3120_v44, %v3119_v41  ;;  %v2857_v32 = vmul.f32 %v5248_v36, %v2409_v49 }
 0x101   :  { %v3122_v52 = vsel %vm3098_vm1, %v2854_v42, 0.0  ;;  %v2855_v61 = vmul.f32 %v5229_v31, %v2407_v50  ;;  %v4202_v0 = vpop.f32.mrb[16].mxu0  ;;  %v5402_v7 = vpop.f32.mrb[16].mxu1 }
 0x102   :  { %6867 = vst [vmem:[#allocation45_spill] sm:$0xff] %v5402_v7  ;;  %v3123_v11 = vadd.f32 %v3122_v52, %v3121_v51  ;;  %v1444_v14 = vadd.f32 %v4202_v0, %v5242_v34  ;;  %v1435_v15 = vpop.f32.mrb[17].mxu0  ;;  %v5408_v22 = vpop.f32.mrb[17].mxu1  ;;  %v3128_v21 = vsel %vm3098_vm1, %v2857_v32, 0.0 }
 0x103   :  { %6868 = vst [vmem:[#allocation46_spill] sm:$0xff] %v5408_v22  ;;  %v3124_v24 = vsel %vm3098_vm1, %v2855_v61, 0.0  ;;  %v1436_v25 = vadd.f32 %v5242_v34, %v1435_v15  ;;  %v4203_v33 = vpop.f32.mrb[18].mxu0  ;;  %v5416_v39 = vpop.f32.mrb[18].mxu1  ;;  %v3126_v61 = vsel %vm3098_vm1, %v2856_v3, 0.0 }
 0x104   :  { %6869 = vst [vmem:[#allocation47_spill] sm:$0xff] %v5416_v39  ;;  %v3125_v41 = vadd.f32 %v3124_v24, %v3123_v11  ;;  %v1447_v42 = vadd.f32 %v4203_v33, %v5242_v34  ;;  %v1438_v44 = vpop.f32.mrb[19].mxu0  ;;  %v5419_v50 = vpop.f32.mrb[19].mxu1  ;;  %v2412_v51 = vmax.f32 %v1444_v14, 0.0 }
 0x105   :  { %6870 = vst [vmem:[#allocation48_spill] sm:$0xff] %v5419_v50  ;;  %v2410_v52 = vmax.f32 %v1436_v25, 0.0  ;;  %v1439_v0 = vadd.f32 %v5242_v34, %v1438_v44  ;;  %v5427_v33 = vpop.permute.xlu0 %2804  ;;  %v5429_v14 = vpop.permute.xlu1 %2809 }
 0x106   :  { %v3127_v49 = vadd.f32 %v3126_v61, %v3125_v41  ;;  %4309 = vmatmul.mubr.msk.bf16.gmra.mrb[124].mxu0 %vm952_vm0, %v4588_v17  ;;  %v2413_v39 = vmax.f32 %v1447_v42, 0.0  ;;  %6871 = vst [vmem:[#allocation49_spill] sm:$0xff] %v5427_v33  ;;  %6872 = vst [vmem:[#allocation50_spill] sm:$0xff] %v5429_v14  ;;  %v2860_v17 = vmul.f32 %v5319_v47, %v2412_v51 }
 0x107   :  { %v2858_v15 = vmul.f32 %v5279_v58, %v2410_v52  ;;  %v2411_v11 = vmax.f32 %v1439_v0, 0.0  ;;  %4312 = vmatprep.mubr.msk.bf16.mxu0 %vm952_vm0, %v4589_v29 }
 0x108   :  { %v3129_v24 = vadd.f32 %v3128_v21, %v3127_v49  ;;  %v4590_v21 = vld [vmem:[%s6727_s0 + $0x208] sm:$0xff]   ;;  %v2861_v49 = vmul.f32 %v5321_v48, %v2413_v39  ;;  %v3134_v50 = vsel %vm3098_vm1, %v2860_v17, 0.0 }
 0x109   :  { %v3130_v3 = vsel %vm3098_vm1, %v2858_v15, 0.0  ;;  %v2859_v25 = vmul.f32 %v5281_v59, %v2411_v11  ;;  %v4206_v41 = vpop.f32.mrb[20].mxu0  ;;  %v5434_v44 = vpop.f32.mrb[20].mxu1 }
 0x10a   :  { %6873 = vst [vmem:[#allocation51_spill] sm:$0xff] %v5434_v44  ;;  %v3131_v52 = vadd.f32 %v3130_v3, %v3129_v24  ;;  %v1460_v32 = vadd.f32 %v4206_v41, %v5242_v34  ;;  %v1451_v42 = vpop.f32.mrb[21].mxu0  ;;  %v5440_v29 = vpop.f32.mrb[21].mxu1 }
 0x10b   :  { %6874 = vst [vmem:[#allocation52_spill] sm:$0xff] %v5440_v29  ;;  %v3132_v61 = vsel %vm3098_vm1, %v2859_v25, 0.0  ;;  %v1452_v0 = vadd.f32 %v5242_v34, %v1451_v42  ;;  %v4207_v15 = vpop.f32.mrb[22].mxu0  ;;  %v5445_v51 = vpop.f32.mrb[22].mxu1  ;;  %v3136_v42 = vsel %vm3098_vm1, %v2861_v49, 0.0 }
 0x10c   :  { %6875 = vst [vmem:[#allocation53_spill] sm:$0xff] %v5445_v51  ;;  %v3133_v11 = vadd.f32 %v3132_v61, %v3131_v52  ;;  %v1463_v24 = vadd.f32 %v4207_v15, %v5242_v34  ;;  %v1454_v3 = vpop.f32.mrb[23].mxu0  ;;  %v5448_v41 = vpop.f32.mrb[23].mxu1  ;;  %v2416_v44 = vmax.f32 %v1460_v32, 0.0 }
 0x10d   :  { %6876 = vst [vmem:[#allocation54_spill] sm:$0xff] %v5448_v41  ;;  %v2414_v7 = vmax.f32 %v1452_v0, 0.0  ;;  %v1455_v29 = vadd.f32 %v5242_v34, %v1454_v3  ;;  %v5455_v15 = vpop.permute.xlu0 %2814  ;;  %v5457_v22 = vpop.permute.xlu1 %2819 }
 0x10e   :  { %v3135_v25 = vadd.f32 %v3134_v50, %v3133_v11  ;;  %4313 = vmatmul.mubr.msk.bf16.gmra.mrb[128].mxu0 %vm952_vm0, %v4590_v21  ;;  %v2417_v51 = vmax.f32 %v1463_v24, 0.0  ;;  %6877 = vst [vmem:[#allocation55_spill] sm:$0xff] %v5455_v15  ;;  %6878 = vst [vmem:[#allocation56_spill] sm:$0xff] %v5457_v22  ;;  %v2864_v50 = vmul.f32 %v5395_v57, %v2416_v44 }
 0x10f   :  { %v2862_v39 = vmul.f32 %v5359_v45, %v2414_v7  ;;  %v2415_v52 = vmax.f32 %v1455_v29, 0.0 }
 0x110   :  { %v3137_v61 = vadd.f32 %v3136_v42, %v3135_v25  ;;  %v2865_v25 = vmul.f32 %v5397_v60, %v2417_v51 }
 0x111   :  { %v3138_v32 = vsel %vm3098_vm1, %v2862_v39, 0.0  ;;  %v2863_v17 = vmul.f32 %v5361_v46, %v2415_v52  ;;  %v4210_v0 = vpop.f32.mrb[24].mxu0  ;;  %v5462_v11 = vpop.f32.mrb[24].mxu1 }
 0x112   :  { %6879 = vst [vmem:[#allocation57_spill] sm:$0xff] %v5462_v11  ;;  %v3139_v21 = vadd.f32 %v3138_v32, %v3137_v61  ;;  %v1476_v7 = vadd.f32 %v4210_v0, %v5242_v34  ;;  %v1467_v49 = vpop.f32.mrb[25].mxu0  ;;  %v5465_v24 = vpop.f32.mrb[25].mxu1  ;;  %v3142_v0 = vsel %vm3098_vm1, %v2864_v50, 0.0  ;;  %v3144_v51 = vsel %vm3098_vm1, %v2865_v25, 0.0 }
 0x113   :  { %6880 = vst [vmem:[#allocation58_spill] sm:$0xff] %v5465_v24  ;;  %v3140_v29 = vsel %vm3098_vm1, %v2863_v17, 0.0  ;;  %v1468_v3 = vadd.f32 %v5242_v34, %v1467_v49  ;;  %v4211_v39 = vpop.f32.mrb[26].mxu0  ;;  %v5470_v42 = vpop.f32.mrb[26].mxu1 }
 0x114   :  { %6881 = vst [vmem:[#allocation59_spill] sm:$0xff] %v5470_v42  ;;  %v3141_v52 = vadd.f32 %v3140_v29, %v3139_v21  ;;  %v1479_v44 = vadd.f32 %v4211_v39, %v5242_v34  ;;  %v1470_v41 = vpop.f32.mrb[27].mxu0  ;;  %v5473_v11 = vpop.f32.mrb[27].mxu1  ;;  %v2420_v61 = vmax.f32 %v1476_v7, 0.0 }
 0x115   :  { %6882 = vst [vmem:[#allocation60_spill] sm:$0xff] %v5473_v11  ;;  %v2418_v32 = vmax.f32 %v1468_v3, 0.0  ;;  %v1471_v24 = vadd.f32 %v5242_v34, %v1470_v41  ;;  %v5479_v21 = vpop.permute.xlu0 %2824  ;;  %v5481_v29 = vpop.permute.xlu1 %2829 }
 0x116   :  { %v3143_v17 = vadd.f32 %v3142_v0, %v3141_v52  ;;  %v2421_v20 = vmax.f32 %v1479_v44, 0.0  ;;  %6883 = vst [vmem:[#allocation61_spill] sm:$0xff] %v5479_v21  ;;  %6884 = vst [vmem:[#allocation62_spill] sm:$0xff] %v5481_v29  ;;  %v2868_v50 = vmul.f32 %v5455_v15, %v2420_v61 }
 0x117   :  { %v2866_v49 = vmul.f32 %v5427_v33, %v2418_v32  ;;  %v2419_v56 = vmax.f32 %v1471_v24, 0.0 }
 0x118   :  { %v3145_v42 = vadd.f32 %v3144_v51, %v3143_v17  ;;  %v2869_v17 = vmul.f32 %v5457_v22, %v2421_v20 }
 0x119   :  { %v3146_v39 = vsel %vm3098_vm1, %v2866_v49, 0.0  ;;  %v2867_v7 = vmul.f32 %v5429_v14, %v2419_v56  ;;  %v4214_v3 = vpop.f32.mrb[28].mxu0  ;;  %v5486_v41 = vpop.f32.mrb[28].mxu1 }
 0x11a   :  { %v3147_v52 = vadd.f32 %v3146_v39, %v3145_v42  ;;  %v1492_v32 = vadd.f32 %v4214_v3, %v5242_v34  ;;  %v1483_v25 = vpop.f32.mrb[29].mxu0  ;;  %v5489_v44 = vpop.f32.mrb[29].mxu1  ;;  %v3150_v3 = vsel %vm3098_vm1, %v2868_v50, 0.0 }
 0x11b   :  { %v3148_v24 = vsel %vm3098_vm1, %v2867_v7, 0.0  ;;  %v1484_v0 = vadd.f32 %v5242_v34, %v1483_v25  ;;  %v4215_v49 = vpop.f32.mrb[30].mxu0  ;;  %v5494_v51 = vpop.f32.mrb[30].mxu1  ;;  %v3152_v25 = vsel %vm3098_vm1, %v2869_v17, 0.0 }
 0x11c   :  { %v3149_v56 = vadd.f32 %v3148_v24, %v3147_v52  ;;  %v1495_v61 = vadd.f32 %v4215_v49, %v5242_v34  ;;  %v1486_v11 = vpop.f32.mrb[31].mxu0  ;;  %v5497_v28 = vpop.f32.mrb[31].mxu1  ;;  %v2424_v42 = vmax.f32 %v1492_v32, 0.0 }
 0x11d   :  { %v2422_v39 = vmax.f32 %v1484_v0, 0.0  ;;  %v1487_v6 = vadd.f32 %v5242_v34, %v1486_v11  ;;  %v5501_v16 = vpop.permute.xlu0 %2834  ;;  %v5505_v49 = vpop.permute.xlu1 %2839 }
 0x11e   :  { %v3151_v7 = vadd.f32 %v3150_v3, %v3149_v56  ;;  %6885 = vst [vmem:[#allocation63_spill] sm:$0xff] %v5501_v16  ;;  %v2425_v55 = vmax.f32 %v1495_v61, 0.0  ;;  %6886 = vst [vmem:[#allocation64_spill] sm:$0xff] %v5505_v49  ;;  %v2872_v50 = vmul.f32 %v5501_v16, %v2424_v42 }
 0x11f   :  { %v2870_v20 = vmul.f32 %v5479_v21, %v2422_v39  ;;  %v2423_v52 = vmax.f32 %v1487_v6, 0.0 }
 0x120   :  { %v3153_v24 = vadd.f32 %v3152_v25, %v3151_v7  ;;  %v2873_v17 = vmul.f32 %v5505_v49, %v2425_v55 }
 0x121   :  { %v3154_v23 = vsel %vm3098_vm1, %v2870_v20, 0.0  ;;  %v2871_v32 = vmul.f32 %v5481_v29, %v2423_v52  ;;  %v4218_v0 = vpop.f32.mrb[32].mxu0  ;;  %v5510_v11 = vpop.f32.mrb[32].mxu1 }
 0x122   :  { %v3155_v56 = vadd.f32 %v3154_v23, %v3153_v24  ;;  %v1508_v3 = vadd.f32 %v4218_v0, %v5242_v34  ;;  %v1499_v39 = vpop.f32.mrb[33].mxu0  ;;  %v5513_v2 = vpop.f32.mrb[33].mxu1  ;;  %v3158_v23 = vsel %vm3098_vm1, %v2872_v50, 0.0  ;;  %v3160_v55 = vsel %vm3098_vm1, %v2873_v17, 0.0 }
 0x123   :  { %v3156_v6 = vsel %vm3098_vm1, %v2871_v32, 0.0  ;;  %v1500_v61 = vadd.f32 %v5242_v34, %v1499_v39  ;;  %v4219_v7 = vpop.f32.mrb[34].mxu0  ;;  %v5518_v20 = vpop.f32.mrb[34].mxu1 }
 0x124   :  { %v3157_v25 = vadd.f32 %v3156_v6, %v3155_v56  ;;  %v1511_v42 = vadd.f32 %v4219_v7, %v5242_v34  ;;  %v1502_v52 = vpop.f32.mrb[35].mxu0  ;;  %v5521_v37 = vpop.f32.mrb[35].mxu1  ;;  %v2428_v24 = vmax.f32 %v1508_v3, 0.0 }
 0x125   :  { %v2426_v0 = vmax.f32 %v1500_v61, 0.0  ;;  %v1503_v1 = vadd.f32 %v5242_v34, %v1502_v52 }
 0x126   :  { %v3159_v32 = vadd.f32 %v3158_v23, %v3157_v25  ;;  %v2429_v40 = vmax.f32 %v1511_v42, 0.0  ;;  %v2876_v56 = vmul.f32 %v5128_v63, %v2428_v24 }
 0x127   :  { %v2874_v39 = vmul.f32 %v5126_v62, %v2426_v0  ;;  %v2427_v10 = vmax.f32 %v1503_v1, 0.0 }
 0x128   :  { %v3161_v53 = vadd.f32 %v3160_v55, %v3159_v32  ;;  %v2877_v3 = vmul.f32 %v5146_v5, %v2429_v40 }
 0x129   :  { %v2875_v6 = vmul.f32 %v5144_v4, %v2427_v10  ;;  %v4222_v7 = vpop.f32.mrb[36].mxu0  ;;  %v5529_v38 = vpop.f32.mrb[36].mxu1  ;;  %v3168_v17 = vsel %vm3098_vm1, %v2874_v39, 0.0  ;;  %v2020_v10 = vadd.f32 %v5486_v41, %v5242_v34  ;;  %v3171_v39 = vsel %vm3098_vm1, %v2876_v56, 0.0 }
 0x12a   :  { %v3162_v50 = vrot.slane %v3161_v53, 4  ;;  %v1524_v61 = vadd.f32 %v4222_v7, %v5242_v34  ;;  %v1515_v25 = vpop.f32.mrb[37].mxu0  ;;  %v5533_v42 = vpop.f32.mrb[37].mxu1 }
 0x12b   :  { %v3169_v1 = vsel %vm3098_vm1, %v2875_v6, 0.0  ;;  %v1516_v52 = vadd.f32 %v5242_v34, %v1515_v25  ;;  %v4223_v23 = vpop.f32.mrb[38].mxu0  ;;  %v5540_v24 = vpop.f32.mrb[38].mxu1  ;;  %v2556_v25 = vmax.f32 %v2020_v10, 0.0 }
 0x12c   :  { %v3163_v0 = vadd.f32 %v3162_v50, %v3161_v53  ;;  %v3170_v32 = vadd.f32 %v3169_v1, %v3168_v17  ;;  %v2432_v40 = vmax.f32 %v1524_v61, 0.0  ;;  %v1527_v55 = vadd.f32 %v4223_v23, %v5242_v34  ;;  %v1518_v7 = vpop.f32.mrb[39].mxu0  ;;  %v5543_v54 = vpop.f32.mrb[39].mxu1 }
 0x12d   :  { %v2430_v43 = vmax.f32 %v1516_v52, 0.0  ;;  %v1519_v6 = vadd.f32 %v5242_v34, %v1518_v7  ;;  %v3173_v53 = vsel %vm3098_vm1, %v2877_v3, 0.0  ;;  %v2012_v17 = vadd.f32 %v5242_v34, %v5489_v44 }
 0x12e   :  { %v3164_v49 = vrot.slane %v3163_v0, 2  ;;  %v3172_v29 = vadd.f32 %v3171_v39, %v3170_v32  ;;  %v2880_v41 = vmul.f32 %v5172_v12, %v2432_v40  ;;  %v2433_v21 = vmax.f32 %v1527_v55, 0.0 }
 0x12f   :  { %v2878_v50 = vmul.f32 %v5158_v8, %v2430_v43  ;;  %v2431_v61 = vmax.f32 %v1519_v6, 0.0  ;;  %v3004_v56 = vmul.f32 %v5128_v63, %v2556_v25  ;;  %v2554_v7 = vmax.f32 %v2012_v17, 0.0 }
 0x130   :  { %v3174_v1 = vadd.f32 %v3173_v53, %v3172_v29  ;;  %v3165_v52 = vadd.f32 %v3164_v49, %v3163_v0  ;;  %v3179_v3 = vsel %vm3098_vm1, %v2880_v41, 0.0  ;;  %v2881_v43 = vmul.f32 %v5174_v13, %v2433_v21 }
 0x131   :  { %v3175_v23 = vsel %vm3098_vm1, %v2878_v50, 0.0  ;;  %v2879_v10 = vmul.f32 %v5160_v9, %v2431_v61  ;;  %v4226_v32 = vpop.f32.mrb[40].mxu0  ;;  %v5555_v40 = vpop.f32.mrb[40].mxu1  ;;  %v3002_v25 = vmul.f32 %v5126_v62, %v2554_v7  ;;  %v2023_v53 = vadd.f32 %v5494_v51, %v5242_v34 }
 0x132   :  { %v3176_v55 = vadd.f32 %v3175_v23, %v3174_v1  ;;  %v1540_v39 = vadd.f32 %v4226_v32, %v5242_v34  ;;  %v1531_v44 = vpop.f32.mrb[41].mxu0  ;;  %v5560_v29 = vpop.f32.mrb[41].mxu1  ;;  %v2015_v1 = vadd.f32 %v5242_v34, %v5497_v28 }
 0x133   :  { %v3177_v49 = vsel %vm3098_vm1, %v2879_v10, 0.0  ;;  %v1532_v0 = vadd.f32 %v5242_v34, %v1531_v44  ;;  %v4227_v6 = vpop.f32.mrb[42].mxu0  ;;  %v5567_v50 = vpop.f32.mrb[42].mxu1  ;;  %v3166_v10 = vrot.slane %v3165_v52, 1  ;;  %v2557_v7 = vmax.f32 %v2023_v53, 0.0 }
 0x134   :  { %v3178_v41 = vadd.f32 %v3177_v49, %v3176_v55  ;;  %v2436_v61 = vmax.f32 %v1540_v39, 0.0  ;;  %v1543_v21 = vadd.f32 %v4227_v6, %v5242_v34  ;;  %v1534_v17 = vpop.f32.mrb[43].mxu0  ;;  %v5572_v23 = vpop.f32.mrb[43].mxu1  ;;  %v2555_v16 = vmax.f32 %v2015_v1, 0.0 }
 0x135   :  { %6887 = vst [vmem:[#allocation65_spill] sm:$0xff] %v5572_v23  ;;  %v2434_v32 = vmax.f32 %v1532_v0, 0.0  ;;  %v1535_v44 = vadd.f32 %v5242_v34, %v1534_v17  ;;  %v3181_v55 = vsel %vm3098_vm1, %v2881_v43, 0.0  ;;  %v3005_v6 = vmul.f32 %v5146_v5, %v2557_v7 }
 0x136   :  { %v3180_v63 = vadd.f32 %v3179_v3, %v3178_v41  ;;  %v2884_v51 = vmul.f32 %v5213_v26, %v2436_v61  ;;  %v2437_v62 = vmax.f32 %v1543_v21, 0.0  ;;  %v3444_v0 = vsel %vm3098_vm1, %v3002_v25, 0.0 }
 0x137   :  { %v2882_v39 = vmul.f32 %v5190_v18, %v2434_v32  ;;  %v2435_v49 = vmax.f32 %v1535_v44, 0.0  ;;  %v3003_v17 = vmul.f32 %v5144_v4, %v2555_v16  ;;  %v3447_v61 = vsel %vm3098_vm1, %v3004_v56, 0.0 }
 0x138   :  { %v3182_v28 = vadd.f32 %v3181_v55, %v3180_v63  ;;  %v2885_v23 = vmul.f32 %v5215_v27, %v2437_v62  ;;  %v5585_v43 = vadd.f32 %v3166_v10, %v3165_v52  ;;  %v3187_v1 = vsel %vm3098_vm1, %v2884_v51, 0.0 }
 0x139   :  { %v3183_v3 = vsel %vm3098_vm1, %v2882_v39, 0.0  ;;  %v2883_v53 = vmul.f32 %v5192_v19, %v2435_v49  ;;  %v4230_v41 = vpop.f32.mrb[44].mxu0  ;;  %v5587_v21 = vpop.f32.mrb[44].mxu1  ;;  %v3445_v25 = vsel %vm3098_vm1, %v3003_v17, 0.0  ;;  %v3449_v56 = vsel %vm3098_vm1, %v3005_v6, 0.0 }
 0x13a   :  { %v3184_v63 = vadd.f32 %v3183_v3, %v3182_v28  ;;  %v1556_v62 = vadd.f32 %v4230_v41, %v5242_v34  ;;  %v1547_v32 = vpop.f32.mrb[45].mxu0  ;;  %v5592_v16 = vpop.f32.mrb[45].mxu1  ;;  %v3446_v52 = vadd.f32 %v3445_v25, %v3444_v0  ;;  %v3189_v51 = vsel %vm3098_vm1, %v2885_v23, 0.0 }
 0x13b   :  { %v3185_v44 = vsel %vm3098_vm1, %v2883_v53, 0.0  ;;  %v1548_v7 = vadd.f32 %v5242_v34, %v1547_v32  ;;  %v4231_v55 = vpop.f32.mrb[46].mxu0  ;;  %v5597_v10 = vpop.f32.mrb[46].mxu1  ;;  %v2036_v32 = vadd.f32 %v5510_v11, %v5242_v34  ;;  %v2028_v23 = vadd.f32 %v5242_v34, %v5513_v2 }
 0x13c   :  { %v3186_v39 = vadd.f32 %v3185_v44, %v3184_v63  ;;  %v2440_v49 = vmax.f32 %v1556_v62, 0.0  ;;  %v1559_v28 = vadd.f32 %v4231_v55, %v5242_v34  ;;  %v1550_v3 = vpop.f32.mrb[47].mxu0  ;;  %v5601_v17 = vpop.f32.mrb[47].mxu1  ;;  %v3448_v4 = vadd.f32 %v3447_v61, %v3446_v52 }
 0x13d   :  { %6888 = vst [vmem:[#allocation66_spill] sm:$0xff] %v5601_v17  ;;  %v2438_v41 = vmax.f32 %v1548_v7, 0.0  ;;  %v1551_v53 = vadd.f32 %v5242_v34, %v1550_v3  ;;  %v2560_v44 = vmax.f32 %v2036_v32, 0.0  ;;  %v2558_v52 = vmax.f32 %v2028_v23, 0.0 }
 0x13e   :  { %v3188_v6 = vadd.f32 %v3187_v1, %v3186_v39  ;;  %v2888_v0 = vmul.f32 %v5246_v35, %v2440_v49  ;;  %v2441_v25 = vmax.f32 %v1559_v28, 0.0  ;;  %v3450_v55 = vadd.f32 %v3449_v56, %v3448_v4 }
 0x13f   :  { %v2886_v63 = vmul.f32 %v5227_v30, %v2438_v41  ;;  %v2439_v62 = vmax.f32 %v1551_v53, 0.0  ;;  %v2039_v2 = vadd.f32 %v5518_v20, %v5242_v34  ;;  %v3008_v3 = vmul.f32 %v5172_v12, %v2560_v44 }
 0x140   :  { %v3190_v17 = vadd.f32 %v3189_v51, %v3188_v6  ;;  %v2889_v7 = vmul.f32 %v5248_v36, %v2441_v25  ;;  %v3195_v11 = vsel %vm3098_vm1, %v2888_v0, 0.0  ;;  %v3006_v41 = vmul.f32 %v5158_v8, %v2558_v52 }
 0x141   :  { %v3191_v1 = vsel %vm3098_vm1, %v2886_v63, 0.0  ;;  %v2887_v39 = vmul.f32 %v5229_v31, %v2439_v62  ;;  %v4234_v49 = vpop.f32.mrb[48].mxu0  ;;  %v5618_v28 = vpop.f32.mrb[48].mxu1  ;;  %v2561_v20 = vmax.f32 %v2039_v2, 0.0 }
 0x142   :  { %v3192_v4 = vadd.f32 %v3191_v1, %v3190_v17  ;;  %v1572_v56 = vadd.f32 %v4234_v49, %v5242_v34  ;;  %v1563_v51 = vpop.f32.mrb[49].mxu0  ;;  %v5623_v53 = vpop.f32.mrb[49].mxu1  ;;  %v3197_v32 = vsel %vm3098_vm1, %v2889_v7, 0.0  ;;  %v3451_v44 = vsel %vm3098_vm1, %v3006_v41, 0.0 }
 0x143   :  { %6889 = vst [vmem:[#allocation67_spill] sm:$0xff] %v5623_v53  ;;  %v3193_v6 = vsel %vm3098_vm1, %v2887_v39, 0.0  ;;  %v1564_v0 = vadd.f32 %v5242_v34, %v1563_v51  ;;  %v4235_v25 = vpop.f32.mrb[50].mxu0  ;;  %v5628_v23 = vpop.f32.mrb[50].mxu1  ;;  %v3452_v61 = vadd.f32 %v3451_v44, %v3450_v55  ;;  %v3009_v39 = vmul.f32 %v5174_v13, %v2561_v20 }
 0x144   :  { %v3194_v17 = vadd.f32 %v3193_v6, %v3192_v4  ;;  %v2444_v63 = vmax.f32 %v1572_v56, 0.0  ;;  %v1575_v62 = vadd.f32 %v4235_v25, %v5242_v34  ;;  %v1566_v1 = vpop.f32.mrb[51].mxu0  ;;  %v5632_v52 = vpop.f32.mrb[51].mxu1  ;;  %v2031_v4 = vadd.f32 %v5242_v34, %v5521_v37 }
 0x145   :  { %6890 = vst [vmem:[#allocation68_spill] sm:$0xff] %v5632_v52  ;;  %v2442_v49 = vmax.f32 %v1564_v0, 0.0  ;;  %v1567_v7 = vadd.f32 %v5242_v34, %v1566_v1  ;;  %v3455_v41 = vsel %vm3098_vm1, %v3008_v3, 0.0  ;;  %v2052_v0 = vadd.f32 %v5529_v38, %v5242_v34 }
 0x146   :  { %v3196_v51 = vadd.f32 %v3195_v11, %v3194_v17  ;;  %v2892_v2 = vmul.f32 %v5319_v47, %v2444_v63  ;;  %v2445_v53 = vmax.f32 %v1575_v62, 0.0  ;;  %v3457_v20 = vsel %vm3098_vm1, %v3009_v39, 0.0 }
 0x147   :  { %v2890_v56 = vmul.f32 %v5279_v58, %v2442_v49  ;;  %v2443_v6 = vmax.f32 %v1567_v7, 0.0  ;;  %v2559_v11 = vmax.f32 %v2031_v4, 0.0  ;;  %v2564_v37 = vmax.f32 %v2052_v0, 0.0 }
 0x148   :  { %v3198_v25 = vadd.f32 %v3197_v32, %v3196_v51  ;;  %v2893_v55 = vmul.f32 %v5321_v48, %v2445_v53  ;;  %v2044_v1 = vadd.f32 %v5242_v34, %v5533_v42  ;;  %v3203_v3 = vsel %vm3098_vm1, %v2892_v2, 0.0 }
 0x149   :  { %v3199_v17 = vsel %vm3098_vm1, %v2890_v56, 0.0  ;;  %v2891_v63 = vmul.f32 %v5281_v59, %v2443_v6  ;;  %v4238_v62 = vpop.f32.mrb[52].mxu0  ;;  %v5649_v44 = vpop.f32.mrb[52].mxu1  ;;  %v3007_v49 = vmul.f32 %v5160_v9, %v2559_v11  ;;  %v3012_v56 = vmul.f32 %v5213_v26, %v2564_v37 }
 0x14a   :  { %6891 = vst [vmem:[#allocation69_spill] sm:$0xff] %v5649_v44  ;;  %v3200_v38 = vadd.f32 %v3199_v17, %v3198_v25  ;;  %v1588_v32 = vadd.f32 %v4238_v62, %v5242_v34  ;;  %v1579_v53 = vpop.f32.mrb[53].mxu0  ;;  %v5654_v7 = vpop.f32.mrb[53].mxu1  ;;  %v2562_v42 = vmax.f32 %v2044_v1, 0.0 }
 0x14b   :  { %6892 = vst [vmem:[#allocation70_spill] sm:$0xff] %v5654_v7  ;;  %v3201_v39 = vsel %vm3098_vm1, %v2891_v63, 0.0  ;;  %v1580_v51 = vadd.f32 %v5242_v34, %v1579_v53  ;;  %v4239_v4 = vpop.f32.mrb[54].mxu0  ;;  %v5659_v6 = vpop.f32.mrb[54].mxu1  ;;  %v3453_v62 = vsel %vm3098_vm1, %v3007_v49, 0.0  ;;  %v3205_v7 = vsel %vm3098_vm1, %v2893_v55, 0.0 }
 0x14c   :  { %v3202_v0 = vadd.f32 %v3201_v39, %v3200_v38  ;;  %v2448_v2 = vmax.f32 %v1588_v32, 0.0  ;;  %v1591_v25 = vadd.f32 %v4239_v4, %v5242_v34  ;;  %v1582_v17 = vpop.f32.mrb[55].mxu0  ;;  %v5663_v11 = vpop.f32.mrb[55].mxu1  ;;  %v3454_v44 = vadd.f32 %v3453_v62, %v3452_v61 }
 0x14d   :  { %6893 = vst [vmem:[#allocation71_spill] sm:$0xff] %v5663_v11  ;;  %v2446_v63 = vmax.f32 %v1580_v51, 0.0  ;;  %v1583_v53 = vadd.f32 %v5242_v34, %v1582_v17  ;;  %v3010_v38 = vmul.f32 %v5190_v18, %v2562_v42  ;;  %v2055_v49 = vadd.f32 %v5540_v24, %v5242_v34 }
 0x14e   :  { %v3204_v52 = vadd.f32 %v3203_v3, %v3202_v0  ;;  %v2896_v37 = vmul.f32 %v5395_v57, %v2448_v2  ;;  %v2449_v1 = vmax.f32 %v1591_v25, 0.0  ;;  %v3456_v4 = vadd.f32 %v3455_v41, %v3454_v44 }
 0x14f   :  { %v2894_v32 = vmul.f32 %v5359_v45, %v2446_v63  ;;  %v2447_v39 = vmax.f32 %v1583_v53, 0.0  ;;  %v3463_v51 = vsel %vm3098_vm1, %v3012_v56, 0.0  ;;  %v3459_v61 = vsel %vm3098_vm1, %v3010_v38, 0.0 }
 0x150   :  { %v3206_v11 = vadd.f32 %v3205_v7, %v3204_v52  ;;  %v2897_v55 = vmul.f32 %v5397_v60, %v2449_v1  ;;  %v3458_v42 = vadd.f32 %v3457_v20, %v3456_v4  ;;  %v2565_v25 = vmax.f32 %v2055_v49, 0.0 }
 0x151   :  { %v3207_v3 = vsel %vm3098_vm1, %v2894_v32, 0.0  ;;  %v2895_v0 = vmul.f32 %v5361_v46, %v2447_v39  ;;  %v4242_v2 = vpop.f32.mrb[56].mxu0  ;;  %v5677_v17 = vpop.f32.mrb[56].mxu1  ;;  %v3211_v41 = vsel %vm3098_vm1, %v2896_v37, 0.0  ;;  %v2047_v7 = vadd.f32 %v5242_v34, %v5543_v54  ;;  %v5693_v32 = vld [vmem:[%s6729_s2] ss:$0 sm:$0xff] }
 0x152   :  { %v3208_v44 = vadd.f32 %v3207_v3, %v3206_v11  ;;  %v1604_v24 = vadd.f32 %v4242_v2, %v5242_v34  ;;  %v1595_v52 = vpop.f32.mrb[57].mxu0  ;;  %v5683_v56 = vpop.f32.mrb[57].mxu1  ;;  %v3460_v20 = vadd.f32 %v3459_v61, %v3458_v42  ;;  %v3013_v1 = vmul.f32 %v5215_v27, %v2565_v25 }
 0x153   :  { %v3209_v62 = vsel %vm3098_vm1, %v2895_v0, 0.0  ;;  %v1596_v63 = vadd.f32 %v5242_v34, %v1595_v52  ;;  %v4243_v53 = vpop.f32.mrb[58].mxu0  ;;  %v5688_v38 = vpop.f32.mrb[58].mxu1  ;;  %v2563_v4 = vmax.f32 %v2047_v7, 0.0  ;;  %v3213_v34 = vsel %vm3098_vm1, %v2897_v55, 0.0 }
 0x154   :  { %v3210_v37 = vadd.f32 %v3209_v62, %v3208_v44  ;;  %v2452_v11 = vmax.f32 %v1604_v24, 0.0  ;;  %v1607_v54 = vadd.f32 %v5693_v32, %v4243_v53  ;;  %v1598_v39 = vpop.f32.mrb[59].mxu0  ;;  %v5696_v49 = vpop.f32.mrb[59].mxu1  ;;  %v2068_v0 = vadd.f32 %v5693_v32, %v5555_v40 }
 0x155   :  { %v2450_v61 = vmax.f32 %v1596_v63, 0.0  ;;  %v1599_v3 = vadd.f32 %v5693_v32, %v1598_v39  ;;  %v3011_v44 = vmul.f32 %v5192_v19, %v2563_v4  ;;  %v2060_v62 = vadd.f32 %v5693_v32, %v5560_v29 }
 0x156   :  { %v3212_v2 = vadd.f32 %v3211_v41, %v3210_v37  ;;  %v2900_v42 = vmul.f32 %v5455_v15, %v2452_v11  ;;  %v2453_v25 = vmax.f32 %v1607_v54, 0.0  ;;  %v2568_v7 = vmax.f32 %v2068_v0, 0.0 }
 0x157   :  { %v2898_v24 = vmul.f32 %v5427_v33, %v2450_v61  ;;  %v2451_v52 = vmax.f32 %v1599_v3, 0.0  ;;  %v3465_v53 = vsel %vm3098_vm1, %v3013_v1, 0.0  ;;  %v3461_v40 = vsel %vm3098_vm1, %v3011_v44, 0.0 }
 0x158   :  { %v3214_v55 = vadd.f32 %v3213_v34, %v3212_v2  ;;  %v2901_v63 = vmul.f32 %v5457_v22, %v2453_v25  ;;  %v3219_v41 = vsel %vm3098_vm1, %v2900_v42, 0.0  ;;  %v3462_v39 = vadd.f32 %v3461_v40, %v3460_v20 }
 0x159   :  { %v3215_v37 = vsel %vm3098_vm1, %v2898_v24, 0.0  ;;  %v2899_v11 = vmul.f32 %v5429_v14, %v2451_v52  ;;  %v4246_v54 = vpop.f32.mrb[60].mxu0  ;;  %v5713_v4 = vpop.f32.mrb[60].mxu1  ;;  %v3016_v3 = vmul.f32 %v5246_v35, %v2568_v7  ;;  %v2566_v0 = vmax.f32 %v2060_v62, 0.0 }
 0x15a   :  { %6894 = vst [vmem:[#allocation72_spill] sm:$0xff] %v5713_v4  ;;  %v3216_v61 = vadd.f32 %v3215_v37, %v3214_v55  ;;  %v1620_v29 = vadd.f32 %v5693_v32, %v4246_v54  ;;  %v1611_v34 = vpop.f32.mrb[61].mxu0  ;;  %v5717_v1 = vpop.f32.mrb[61].mxu1  ;;  %v3221_v2 = vsel %vm3098_vm1, %v2901_v63, 0.0  ;;  %v3464_v24 = vadd.f32 %v3463_v51, %v3462_v39  ;;  %v6897_v51 = vld [vmem:[#allocation63_spill] sm:$0xff] }
 0x15b   :  { %6895 = vst [vmem:[#allocation73_spill] sm:$0xff] %v5717_v1  ;;  %v3217_v42 = vsel %vm3098_vm1, %v2899_v11, 0.0  ;;  %v1612_v25 = vadd.f32 %v5693_v32, %v1611_v34  ;;  %v4247_v44 = vpop.f32.mrb[62].mxu0  ;;  %v5722_v20 = vpop.f32.mrb[62].mxu1  ;;  %v3014_v7 = vmul.f32 %v5227_v30, %v2566_v0  ;;  %v2071_v11 = vadd.f32 %v5693_v32, %v5567_v50  ;;  %v6900_v50 = vld [vmem:[#allocation65_spill] sm:$0xff] }
 0x15c   :  { %6896 = vst [vmem:[#allocation74_spill] sm:$0xff] %v5722_v20  ;;  %v3218_v52 = vadd.f32 %v3217_v42, %v3216_v61  ;;  %v2456_v55 = vmax.f32 %v1620_v29, 0.0  ;;  %v1623_v40 = vadd.f32 %v5693_v32, %v4247_v44  ;;  %v1614_v37 = vpop.f32.mrb[63].mxu0  ;;  %v5726_v62 = vpop.f32.mrb[63].mxu1  ;;  %v3466_v35 = vadd.f32 %v3465_v53, %v3464_v24  ;;  %v6898_v29 = vld [vmem:[#allocation61_spill] sm:$0xff] }
 0x15d   :  { %v2454_v54 = vmax.f32 %v1612_v25, 0.0  ;;  %v1615_v63 = vadd.f32 %v5693_v32, %v1614_v37  ;;  %v3467_v61 = vsel %vm3098_vm1, %v3014_v7, 0.0  ;;  %v2569_v0 = vmax.f32 %v2071_v11, 0.0 }
 0x15e   :  { %v3220_v34 = vadd.f32 %v3219_v41, %v3218_v52  ;;  %v2904_v39 = vmul.f32 %v6897_v51, %v2456_v55  ;;  %v2457_v20 = vmax.f32 %v1623_v40, 0.0  ;;  %v3468_v1 = vadd.f32 %v3467_v61, %v3466_v35  ;;  %v6901_v55 = vld [vmem:[#allocation62_spill] sm:$0xff] }
 0x15f   :  { %v2902_v42 = vmul.f32 %v6898_v29, %v2454_v54  ;;  %v2455_v44 = vmax.f32 %v1615_v63, 0.0  ;;  %v6899_v25 = vpack.c.bf16 %v5585_v43, %v5585_v43  ;;  %v3471_v53 = vsel %vm3098_vm1, %v3016_v3, 0.0  ;;  %v6903_v54 = vld [vmem:[#allocation64_spill] sm:$0xff] }
 0x160   :  { %v3222_v4 = vadd.f32 %v3221_v2, %v3220_v34  ;;  %v2063_v41 = vadd.f32 %v5693_v32, %v6900_v50  ;;  %v3227_v24 = vsel %vm3098_vm1, %v2904_v39, 0.0  ;;  %v2084_v35 = vadd.f32 %v5693_v32, %v5587_v21 }
 0x161   :  { %v5737_v37 = vunpack.c.l.b16 %v6899_v25  ;;  %v3223_v52 = vsel %vm3098_vm1, %v2902_v42, 0.0  ;;  %v2903_v40 = vmul.f32 %v6901_v55, %v2455_v44  ;;  %v4250_v7 = vpop.f32.mrb[64].mxu0  ;;  %v5747_v2 = vpop.f32.mrb[64].mxu1  ;;  %v2905_v63 = vmul.f32 %v6903_v54, %v2457_v20 }
 0x162   :  { %6902 = vst [vmem:[#allocation65_spill] sm:$0xff] %v5747_v2  ;;  %v3224_v43 = vadd.f32 %v3223_v52, %v3222_v4  ;;  %v1636_v3 = vadd.f32 %v5693_v32, %v4250_v7  ;;  %v1627_v11 = vpop.f32.mrb[65].mxu0  ;;  %v2567_v34 = vmax.f32 %v2063_v41, 0.0  ;;  %v5751_v61 = vpop.f32.mrb[65].mxu1  ;;  %v3017_v25 = vmul.f32 %v5248_v36, %v2569_v0 }
 0x163   :  { %6904 = vst [vmem:[#allocation75_spill] sm:$0xff] %v5751_v61  ;;  %v3225_v39 = vsel %vm3098_vm1, %v2903_v40, 0.0  ;;  %v1628_v42 = vadd.f32 %v5693_v32, %v1627_v11  ;;  %v4251_v44 = vpop.f32.mrb[66].mxu0  ;;  %v2572_v50 = vmax.f32 %v2084_v35, 0.0  ;;  %v5756_v21 = vpop.f32.mrb[66].mxu1  ;;  %v2076_v0 = vadd.f32 %v5693_v32, %v5592_v16 }
 0x164   :  { %6905 = vst [vmem:[#allocation76_spill] sm:$0xff] %v5756_v21  ;;  %v3226_v2 = vadd.f32 %v3225_v39, %v3224_v43  ;;  %v2460_v4 = vmax.f32 %v1636_v3, 0.0  ;;  %v1639_v20 = vadd.f32 %v5693_v32, %v4251_v44  ;;  %v1630_v52 = vpop.f32.mrb[67].mxu0  ;;  %v3015_v7 = vmul.f32 %v5229_v31, %v2567_v34  ;;  %v5760_v41 = vpop.f32.mrb[67].mxu1  ;;  %v6907_v39 = vld [vmem:[#allocation5_spill] sm:$0xff]  ;;  %v6908_v31 = vld [vmem:[#allocation6_spill] sm:$0xff] }
 0x165   :  { %6906 = vst [vmem:[#allocation77_spill] sm:$0xff] %v5760_v41  ;;  %v2458_v61 = vmax.f32 %v1628_v42, 0.0  ;;  %v1631_v40 = vadd.f32 %v5693_v32, %v1630_v52  ;;  %v3020_v11 = vmul.f32 %v5319_v47, %v2572_v50  ;;  %v3229_v35 = vsel %vm3098_vm1, %v2905_v63, 0.0  ;;  %v6909_v63 = vld [vmem:[#allocation7_spill] sm:$0xff] }
 0x166   :  { %v3228_v21 = vadd.f32 %v3227_v24, %v3226_v2  ;;  %v2461_v43 = vmax.f32 %v1639_v20, 0.0  ;;  %v3469_v3 = vsel %vm3098_vm1, %v3015_v7, 0.0  ;;  %v3473_v34 = vsel %vm3098_vm1, %v3017_v25, 0.0 }
 0x167   :  { %v2906_v44 = vmul.f32 %v6907_v39, %v2458_v61  ;;  %v2459_v36 = vmax.f32 %v1631_v40, 0.0  ;;  %v3470_v41 = vadd.f32 %v3469_v3, %v3468_v1  ;;  %v2908_v52 = vmul.f32 %v6908_v31, %v2460_v4 }
 0x168   :  { %v3230_v42 = vadd.f32 %v3229_v35, %v3228_v21  ;;  %v5772_v50 = vsel %vm3098_vm1, %v3020_v11, 0.0  ;;  %v2570_v47 = vmax.f32 %v2076_v0, 0.0  ;;  %v2909_v16 = vmul.f32 %v5146_v5, %v2461_v43 }
 0x169   :  { %v2907_v24 = vmul.f32 %v6909_v63, %v2459_v36  ;;  %v4254_v2 = vpop.f32.mrb[68].mxu0  ;;  %v3472_v20 = vadd.f32 %v3471_v53, %v3470_v41  ;;  %v2087_v61 = vadd.f32 %v5693_v32, %v5597_v10  ;;  %v5778_v7 = vpop.f32.mrb[68].mxu1  ;;  %v3237_v1 = vsel %vm3098_vm1, %v2906_v44, 0.0 }
 0x16a   :  { %6910 = vst [vmem:[#allocation78_spill] sm:$0xff] %v5778_v7  ;;  %v3231_v25 = vrot.slane %v3230_v42, 4  ;;  %v1652_v21 = vadd.f32 %v5693_v32, %v4254_v2  ;;  %v1643_v4 = vpop.f32.mrb[69].mxu0  ;;  %v3018_v40 = vmul.f32 %v5279_v58, %v2570_v47  ;;  %v5783_v11 = vpop.f32.mrb[69].mxu1  ;;  %v3240_v47 = vsel %vm3098_vm1, %v2908_v52, 0.0 }
 0x16b   :  { %6911 = vst [vmem:[#allocation79_spill] sm:$0xff] %v5783_v11  ;;  %v3238_v0 = vsel %vm3098_vm1, %v2907_v24, 0.0  ;;  %v1644_v36 = vadd.f32 %v5693_v32, %v1643_v4  ;;  %v4255_v53 = vpop.f32.mrb[70].mxu0  ;;  %v3474_v41 = vadd.f32 %v3473_v34, %v3472_v20  ;;  %v2573_v35 = vmax.f32 %v2087_v61, 0.0  ;;  %v5787_v10 = vpop.f32.mrb[70].mxu1 }
 0x16c   :  { %v3232_v43 = vadd.f32 %v3231_v25, %v3230_v42  ;;  %v3239_v3 = vadd.f32 %v3238_v0, %v3237_v1  ;;  %v2464_v7 = vmax.f32 %v1652_v21, 0.0  ;;  %v1655_v44 = vadd.f32 %v5693_v32, %v4255_v53  ;;  %v1646_v2 = vpop.f32.mrb[71].mxu0  ;;  %v5790_v63 = vpop.f32.mrb[71].mxu1 }
 0x16d   :  { %6912 = vst [vmem:[#allocation80_spill] sm:$0xff] %v5790_v63  ;;  %v2462_v11 = vmax.f32 %v1644_v36, 0.0  ;;  %v3475_v24 = vsel %vm3098_vm1, %v3018_v40, 0.0  ;;  %v1647_v4 = vadd.f32 %v5693_v32, %v1646_v2  ;;  %v3242_v42 = vsel %vm3098_vm1, %v2909_v16, 0.0  ;;  %v6913_v2 = vld [vmem:[#allocation66_spill] sm:$0xff] }
 0x16e   :  { %v3233_v58 = vrot.slane %v3232_v43, 2  ;;  %v3241_v34 = vadd.f32 %v3240_v47, %v3239_v3  ;;  %v2912_v20 = vmul.f32 %v5172_v12, %v2464_v7  ;;  %v2465_v61 = vmax.f32 %v1655_v44, 0.0  ;;  %v6915_v47 = vld [vmem:[#allocation67_spill] sm:$0xff] }
 0x16f   :  { %v2910_v25 = vmul.f32 %v5158_v8, %v2462_v11  ;;  %v3476_v1 = vadd.f32 %v3475_v24, %v3474_v41  ;;  %v2463_v21 = vmax.f32 %v1647_v4, 0.0  ;;  %v3021_v40 = vmul.f32 %v5321_v48, %v2573_v35 }
 0x170   :  { %v3234_v0 = vadd.f32 %v3233_v58, %v3232_v43  ;;  %v3248_v52 = vsel %vm3098_vm1, %v2912_v20, 0.0  ;;  %v3243_v36 = vadd.f32 %v3242_v42, %v3241_v34  ;;  %v2079_v7 = vadd.f32 %v5693_v32, %v6913_v2 }
 0x171   :  { %v3244_v53 = vsel %vm3098_vm1, %v2910_v25, 0.0  ;;  %v2911_v3 = vmul.f32 %v5160_v9, %v2463_v21  ;;  %v2100_v16 = vadd.f32 %v5693_v32, %v5618_v28  ;;  %v4258_v44 = vpop.f32.mrb[72].mxu0  ;;  %v5806_v11 = vpop.f32.mrb[72].mxu1  ;;  %v2913_v43 = vmul.f32 %v5174_v13, %v2465_v61 }
 0x172   :  { %6914 = vst [vmem:[#allocation66_spill] sm:$0xff] %v5806_v11  ;;  %v3235_v41 = vrot.slane %v3234_v0, 1  ;;  %v3245_v58 = vadd.f32 %v3244_v53, %v3243_v36  ;;  %v2092_v35 = vadd.f32 %v5693_v32, %v6915_v47  ;;  %v1659_v24 = vpop.f32.mrb[73].mxu0  ;;  %v5811_v4 = vpop.f32.mrb[73].mxu1  ;;  %v2571_v20 = vmax.f32 %v2079_v7, 0.0 }
 0x173   :  { %6916 = vst [vmem:[#allocation67_spill] sm:$0xff] %v5811_v4  ;;  %v3246_v34 = vsel %vm3098_vm1, %v2911_v3, 0.0  ;;  %v2576_v42 = vmax.f32 %v2100_v16, 0.0  ;;  %v2103_v28 = vadd.f32 %v5693_v32, %v5628_v23  ;;  %v4259_v25 = vpop.f32.mrb[74].mxu0  ;;  %v5816_v21 = vpop.f32.mrb[74].mxu1  ;;  %v1668_v61 = vadd.f32 %v5693_v32, %v4258_v44  ;;  %v6918_v16 = vld [vmem:[#allocation68_spill] sm:$0xff] }
 0x174   :  { %6917 = vst [vmem:[#allocation81_spill] sm:$0xff] %v5816_v21  ;;  %v3236_v2 = vadd.f32 %v3235_v41, %v3234_v0  ;;  %v3247_v36 = vadd.f32 %v3246_v34, %v3245_v58  ;;  %v2574_v53 = vmax.f32 %v2092_v35, 0.0  ;;  %v1662_v11 = vpop.f32.mrb[75].mxu0  ;;  %v5819_v47 = vpop.f32.mrb[75].mxu1  ;;  %v3019_v4 = vmul.f32 %v5281_v59, %v2571_v20 }
 0x175   :  { %v3024_v3 = vmul.f32 %v5395_v57, %v2576_v42  ;;  %v2577_v7 = vmax.f32 %v2103_v28, 0.0  ;;  %v2095_v48 = vadd.f32 %v5693_v32, %v6918_v16  ;;  %v2468_v0 = vmax.f32 %v1668_v61, 0.0 }
 0x176   :  { %v3652_v23 = vpack.c.bf16 %v3236_v2, %v3236_v2  ;;  %v3249_v63 = vadd.f32 %v3248_v52, %v3247_v36  ;;  %v3022_v21 = vmul.f32 %v5359_v45, %v2574_v53  ;;  %v3250_v41 = vsel %vm3098_vm1, %v2913_v43, 0.0 }
 0x177   :  { %v3481_v44 = vsel %vm3098_vm1, %v3021_v40, 0.0  ;;  %v3477_v58 = vsel %vm3098_vm1, %v3019_v4, 0.0  ;;  %v2575_v35 = vmax.f32 %v2095_v48, 0.0  ;;  %v3487_v42 = vsel %vm3098_vm1, %v3024_v3, 0.0  ;;  %v6920_v4 = vld [vmem:[#allocation69_spill] sm:$0xff] }
 0x178   :  { %v3679_v34 = vunpack.c.l.b16 %v3652_v23  ;;  %v3478_v20 = vadd.f32 %v3477_v58, %v3476_v1  ;;  %v3025_v28 = vmul.f32 %v5397_v60, %v2577_v7  ;;  %v3483_v16 = vsel %vm3098_vm1, %v3022_v21, 0.0  ;;  %v6921_v23 = vld [vmem:[#allocation70_spill] sm:$0xff] }
 0x179   :  { %v3023_v52 = vmul.f32 %v5361_v46, %v2575_v35  ;;  %v1660_v2 = vadd.f32 %v5693_v32, %v1659_v24  ;;  %v3251_v36 = vadd.f32 %v3250_v41, %v3249_v63  ;;  %v4262_v53 = vpop.f32.mrb[76].mxu0  ;;  %v5834_v43 = vpop.f32.mrb[76].mxu1  ;;  %v2916_v1 = vmul.f32 %v5213_v26, %v2468_v0 }
 0x17a   :  { %v5838_v40 = vsel %vm3686_vm2, %v3679_v34, %v5737_v37  ;;  %v3480_v48 = vadd.f32 %v5772_v50, %v3478_v20  ;;  %v2116_v61 = vadd.f32 %v5693_v32, %v6920_v4  ;;  %v1675_v21 = vpop.f32.mrb[77].mxu0  ;;  %v5844_v3 = vpop.f32.mrb[77].mxu1  ;;  %v1671_v7 = vadd.f32 %v5693_v32, %v4259_v25 }
 0x17b   :  { %6919 = vst [vmem:[#allocation68_spill] sm:$0xff] %v5838_v40  ;;  %v3485_v24 = vsel %vm3098_vm1, %v3023_v52, 0.0  ;;  %v2466_v63 = vmax.f32 %v1660_v2, 0.0  ;;  %v2108_v41 = vadd.f32 %v5693_v32, %v6921_v23  ;;  %v5850_v37 = vpop.f32.mrb[78].mxu0  ;;  %v5852_v58 = vpop.f32.mrb[78].mxu1  ;;  %v1663_v35 = vadd.f32 %v5693_v32, %v1662_v11  ;;  %v6923_v23 = vld [vmem:[#allocation71_spill] sm:$0xff] }
 0x17c   :  { %v3482_v50 = vadd.f32 %v3481_v44, %v3480_v48  ;;  %v2580_v0 = vmax.f32 %v2116_v61, 0.0  ;;  %v2119_v34 = vadd.f32 %v5693_v32, %v5659_v6  ;;  %v5857_v20 = vpop.f32.mrb[79].mxu0  ;;  %v5859_v52 = vpop.f32.mrb[79].mxu1  ;;  %v2469_v2 = vmax.f32 %v1671_v7, 0.0 }
 0x17d   :  { %6922 = vst [vmem:[#allocation69_spill] sm:$0xff] %v5859_v52  ;;  %v2914_v25 = vmul.f32 %v5190_v18, %v2466_v63  ;;  %v2578_v4 = vmax.f32 %v2108_v41, 0.0  ;;  %v2111_v40 = vadd.f32 %v5693_v32, %v6923_v23  ;;  %v3489_v44 = vsel %vm3098_vm1, %v3025_v28, 0.0 }
 0x17e   :  { %v3484_v46 = vadd.f32 %v3483_v16, %v3482_v50  ;;  %v3028_v48 = vmul.f32 %v5455_v15, %v2580_v0  ;;  %v2467_v11 = vmax.f32 %v1663_v35, 0.0  ;;  %v2581_v60 = vmax.f32 %v2119_v34, 0.0 }
 0x17f   :  { %v3252_v61 = vsel %vm3098_vm1, %v2914_v25, 0.0  ;;  %v3026_v6 = vmul.f32 %v5427_v33, %v2578_v4  ;;  %v2579_v57 = vmax.f32 %v2111_v40, 0.0  ;;  %v3256_v52 = vsel %vm3098_vm1, %v2916_v1, 0.0 }
 0x180   :  { %v3486_v63 = vadd.f32 %v3485_v24, %v3484_v46  ;;  %v3253_v7 = vadd.f32 %v3252_v61, %v3251_v36  ;;  %v2915_v41 = vmul.f32 %v5192_v19, %v2467_v11  ;;  %v3495_v23 = vsel %vm3098_vm1, %v3028_v48, 0.0 }
 0x181   :  { %v2917_v16 = vmul.f32 %v5215_v27, %v2469_v2  ;;  %v3491_v28 = vsel %vm3098_vm1, %v3026_v6, 0.0  ;;  %v3027_v50 = vmul.f32 %v5429_v14, %v2579_v57  ;;  %v5874_v0 = vpop.f32.mrb[80].mxu0  ;;  %v5876_v35 = vpop.f32.mrb[80].mxu1  ;;  %v2132_v46 = vadd.f32 %v5693_v32, %v5677_v17 }
 0x182   :  { %v3488_v34 = vadd.f32 %v3487_v42, %v3486_v63  ;;  %v3254_v40 = vsel %vm3098_vm1, %v2915_v41, 0.0  ;;  %v2124_v36 = vadd.f32 %v5693_v32, %v5683_v56  ;;  %v5883_v1 = vpop.f32.mrb[81].mxu0  ;;  %v5885_v24 = vpop.f32.mrb[81].mxu1  ;;  %v3029_v57 = vmul.f32 %v5457_v22, %v2581_v60 }
 0x183   :  { %v3255_v25 = vadd.f32 %v3254_v40, %v3253_v7  ;;  %v3493_v2 = vsel %vm3098_vm1, %v3027_v50, 0.0  ;;  %v2135_v42 = vadd.f32 %v5693_v32, %v5688_v38  ;;  %v5891_v4 = vpop.f32.mrb[82].mxu0  ;;  %v5893_v48 = vpop.f32.mrb[82].mxu1  ;;  %v2584_v11 = vmax.f32 %v2132_v46, 0.0 }
 0x184   :  { %v3490_v17 = vadd.f32 %v3489_v44, %v3488_v34  ;;  %v2582_v61 = vmax.f32 %v2124_v36, 0.0  ;;  %v1684_v56 = vadd.f32 %v5693_v32, %v4262_v53  ;;  %v5896_v6 = vpop.f32.mrb[83].mxu0  ;;  %v5898_v63 = vpop.f32.mrb[83].mxu1  ;;  %v2127_v41 = vadd.f32 %v5693_v32, %v5696_v49 }
 0x185   :  { %v3257_v7 = vadd.f32 %v3256_v52, %v3255_v25  ;;  %v2585_v60 = vmax.f32 %v2135_v42, 0.0  ;;  %v1676_v38 = vadd.f32 %v5693_v32, %v1675_v21  ;;  %v3258_v50 = vsel %vm3098_vm1, %v2917_v16, 0.0 }
 0x186   :  { %v3492_v40 = vadd.f32 %v3491_v28, %v3490_v17  ;;  %v3032_v44 = vmul.f32 %v6897_v51, %v2584_v11  ;;  %v3030_v34 = vmul.f32 %v6898_v29, %v2582_v61  ;;  %v2472_v46 = vmax.f32 %v1684_v56, 0.0  ;;  %v6924_v28 = vld [vmem:[#allocation72_spill] sm:$0xff] }
 0x187   :  { %v2583_v53 = vmax.f32 %v2127_v41, 0.0  ;;  %v2470_v36 = vmax.f32 %v1676_v38, 0.0  ;;  %v3259_v22 = vadd.f32 %v3258_v50, %v3257_v7  ;;  %v3497_v14 = vsel %vm3098_vm1, %v3029_v57, 0.0  ;;  %v4592_v38 = vld [vmem:[%s6731_s4 + $0x8] sm:$0xff]   ;;  %v6926_v50 = vld [vmem:[#allocation19_spill] sm:$0xff] }
 0x188   :  { %v3494_v52 = vadd.f32 %v3493_v2, %v3492_v40  ;;  %v3033_v25 = vmul.f32 %v6903_v54, %v2585_v60  ;;  %v3503_v49 = vsel %vm3098_vm1, %v3032_v44, 0.0  ;;  %v2148_v42 = vadd.f32 %v5693_v32, %v6924_v28  ;;  %v6925_v2 = vld [vmem:[#allocation73_spill] sm:$0xff]  ;;  %4443 = vmatpush3.bf16.msra.mxu1 %v4592_v38  ;;  %v6932_v38 = vld [vmem:[#allocation18_spill] sm:$0xff] }
 0x189   :  { %v3031_v21 = vmul.f32 %v6901_v55, %v2583_v53  ;;  %v2918_v16 = vmul.f32 %v5227_v30, %v2470_v36  ;;  %v5913_v17 = vpop.f32.mrb[84].mxu0  ;;  %v5915_v11 = vpop.f32.mrb[84].mxu1  ;;  %v3499_v56 = vsel %vm3098_vm1, %v3030_v34, 0.0  ;;  %v1687_v57 = vadd.f32 %v5693_v32, %v5850_v37 }
 0x18a   :  { %v3496_v61 = vadd.f32 %v3495_v23, %v3494_v52  ;;  %v2140_v7 = vadd.f32 %v5693_v32, %v6925_v2  ;;  %v5922_v60 = vpop.f32.mrb[85].mxu0  ;;  %v5924_v41 = vpop.f32.mrb[85].mxu1  ;;  %v2920_v40 = vmul.f32 %v6926_v50, %v2472_v46  ;;  %v2588_v44 = vmax.f32 %v2148_v42, 0.0  ;;  %v6929_v42 = vld [vmem:[#allocation74_spill] sm:$0xff] }
 0x18b   :  { %v3260_v23 = vsel %vm3098_vm1, %v2918_v16, 0.0  ;;  %v1679_v34 = vadd.f32 %v5693_v32, %v5857_v20  ;;  %v5933_v37 = vpop.f32.mrb[86].mxu0  ;;  %v5935_v53 = vpop.f32.mrb[86].mxu1  ;;  %v2473_v28 = vmax.f32 %v1687_v57, 0.0  ;;  %v3501_v46 = vsel %vm3098_vm1, %v3031_v21, 0.0 }
 0x18c   :  { %6927 = vst [vmem:[#allocation70_spill] sm:$0xff] %v5935_v53  ;;  %v3498_v36 = vadd.f32 %v3497_v14, %v3496_v61  ;;  %v3261_v52 = vadd.f32 %v3260_v23, %v3259_v22  ;;  %v2586_v2 = vmax.f32 %v2140_v7, 0.0  ;;  %v5937_v54 = vpop.f32.mrb[87].mxu0  ;;  %v5939_v51 = vpop.f32.mrb[87].mxu1  ;;  %v2151_v55 = vadd.f32 %v5693_v32, %v6929_v42  ;;  %v6930_v61 = vld [vmem:[#allocation65_spill] sm:$0xff]  ;;  %v6931_v7 = vld [vmem:[#allocation20_spill] sm:$0xff] }
 0x18d   :  { %6928 = vst [vmem:[#allocation71_spill] sm:$0xff] %v5939_v51  ;;  %v2471_v16 = vmax.f32 %v1679_v34, 0.0  ;;  %v2143_v20 = vadd.f32 %v5693_v32, %v5726_v62  ;;  %v3036_v14 = vmul.f32 %v6908_v31, %v2588_v44  ;;  %v2164_v57 = vadd.f32 %v5693_v32, %v6930_v61  ;;  %v6934_v31 = vld [vmem:[#allocation75_spill] sm:$0xff] }
 0x18e   :  { %v3500_v29 = vadd.f32 %v3499_v56, %v3498_v36  ;;  %v3034_v22 = vmul.f32 %v6907_v39, %v2586_v2  ;;  %v2921_v23 = vmul.f32 %v6931_v7, %v2473_v28  ;;  %v2589_v21 = vmax.f32 %v2151_v55, 0.0  ;;  %v6933_v36 = vld [vmem:[#allocation7_spill] sm:$0xff] }
 0x18f   :  { %v2919_v51 = vmul.f32 %v6932_v38, %v2471_v16  ;;  %v2587_v34 = vmax.f32 %v2143_v20, 0.0  ;;  %v3505_v53 = vsel %vm3098_vm1, %v3033_v25, 0.0  ;;  %v2592_v62 = vmax.f32 %v2164_v57, 0.0 }
 0x190   :  { %v3502_v42 = vadd.f32 %v3501_v46, %v3500_v29  ;;  %v3513_v33 = vsel %vm3098_vm1, %v3034_v22, 0.0  ;;  %v3037_v44 = vmul.f32 %v5146_v5, %v2589_v21  ;;  %v2156_v61 = vadd.f32 %v5693_v32, %v6934_v31  ;;  %v6935_v46 = vld [vmem:[#allocation76_spill] sm:$0xff] }
 0x191   :  { %v3262_v56 = vsel %vm3098_vm1, %v2919_v51, 0.0  ;;  %v3035_v2 = vmul.f32 %v6933_v36, %v2587_v34  ;;  %v5959_v28 = vpop.f32.mrb[88].mxu0  ;;  %v5961_v16 = vpop.f32.mrb[88].mxu1  ;;  %v3264_v55 = vsel %vm3098_vm1, %v2920_v40, 0.0  ;;  %v2167_v20 = vadd.f32 %v5693_v32, %v6935_v46 }
 0x192   :  { %v3504_v25 = vadd.f32 %v3503_v49, %v3502_v42  ;;  %v3263_v29 = vadd.f32 %v3262_v56, %v3261_v52  ;;  %v5966_v22 = vpop.f32.mrb[89].mxu0  ;;  %v5968_v51 = vpop.f32.mrb[89].mxu1  ;;  %v3516_v57 = vsel %vm3098_vm1, %v3036_v14, 0.0  ;;  %v3266_v21 = vsel %vm3098_vm1, %v2921_v23, 0.0 }
 0x193   :  { %6936 = vst [vmem:[#allocation72_spill] sm:$0xff] %v5968_v51  ;;  %v3514_v31 = vsel %vm3098_vm1, %v3035_v2, 0.0  ;;  %v2590_v34 = vmax.f32 %v2156_v61, 0.0  ;;  %v5973_v36 = vpop.f32.mrb[90].mxu0  ;;  %v5975_v5 = vpop.f32.mrb[90].mxu1  ;;  %v3040_v42 = vmul.f32 %v5172_v12, %v2592_v62  ;;  %v3518_v14 = vsel %vm3098_vm1, %v3037_v44, 0.0 }
 0x194   :  { %v5977_v49 = vadd.f32 %v3505_v53, %v3504_v25  ;;  %v3265_v40 = vadd.f32 %v3264_v55, %v3263_v29  ;;  %v3515_v52 = vadd.f32 %v3514_v31, %v3513_v33  ;;  %v5980_v56 = vpop.f32.mrb[91].mxu0  ;;  %v5982_v46 = vpop.f32.mrb[91].mxu1  ;;  %v2593_v2 = vmax.f32 %v2167_v20, 0.0  ;;  %v6938_v61 = vld [vmem:[#allocation77_spill] sm:$0xff]  ;;  %v6939_v44 = vld [vmem:[#allocation78_spill] sm:$0xff]  ;;  %v6945_v12 = vld [vmem:[#allocation31_spill] sm:$0xff] }
 0x195   :  { %v3038_v23 = vmul.f32 %v5158_v8, %v2590_v34  ;;  %v2159_v39 = vadd.f32 %v5693_v32, %v6938_v61  ;;  %v1700_v53 = vadd.f32 %v5693_v32, %v5874_v0  ;;  %v1692_v33 = vadd.f32 %v5693_v32, %v5883_v1 }
 0x196   :  { %6937 = vst [vmem:[#allocation73_spill] sm:$0xff] %v5977_v49  ;;  %v3517_v51 = vadd.f32 %v3516_v57, %v3515_v52  ;;  %v3267_v62 = vadd.f32 %v3266_v21, %v3265_v40  ;;  %v2180_v34 = vadd.f32 %v5693_v32, %v6939_v44  ;;  %v3041_v20 = vmul.f32 %v5174_v13, %v2593_v2 }
 0x197   :  { %v3520_v55 = vsel %vm3098_vm1, %v3038_v23, 0.0  ;;  %v2591_v25 = vmax.f32 %v2159_v39, 0.0  ;;  %v2474_v31 = vmax.f32 %v1692_v33, 0.0  ;;  %v1703_v57 = vadd.f32 %v5693_v32, %v5891_v4 }
 0x198   :  { %v3519_v29 = vadd.f32 %v3518_v14, %v3517_v51  ;;  %v3524_v1 = vsel %vm3098_vm1, %v3040_v42, 0.0  ;;  %v2476_v39 = vmax.f32 %v1700_v53, 0.0  ;;  %v6940_v51 = vld [vmem:[#allocation25_spill] sm:$0xff]  ;;  %v2596_v33 = vmax.f32 %v2180_v34, 0.0 }
 0x199   :  { %v3039_v61 = vmul.f32 %v5160_v9, %v2591_v25  ;;  %v5999_v0 = vpop.f32.mrb[92].mxu0  ;;  %v6001_v52 = vpop.f32.mrb[92].mxu1  ;;  %v2922_v40 = vmul.f32 %v6940_v51, %v2474_v31  ;;  %v6942_v25 = vld [vmem:[#allocation79_spill] sm:$0xff]  ;;  %v1695_v44 = vadd.f32 %v5693_v32, %v5896_v6  ;;  %v3526_v34 = vsel %vm3098_vm1, %v3041_v20, 0.0 }
 0x19a   :  { %v3521_v21 = vadd.f32 %v3520_v55, %v3519_v29  ;;  %v6005_v14 = vpop.f32.mrb[93].mxu0  ;;  %v6007_v23 = vpop.f32.mrb[93].mxu1  ;;  %v2172_v4 = vadd.f32 %v5693_v32, %v6942_v25  ;;  %v2477_v29 = vmax.f32 %v1703_v57, 0.0  ;;  %v2924_v8 = vmul.f32 %v6945_v12, %v2476_v39 }
 0x19b   :  { %6941 = vst [vmem:[#allocation74_spill] sm:$0xff] %v6007_v23  ;;  %v3522_v2 = vsel %vm3098_vm1, %v3039_v61, 0.0  ;;  %v6014_v49 = vpop.f32.mrb[94].mxu0  ;;  %v6016_v42 = vpop.f32.mrb[94].mxu1  ;;  %v3268_v55 = vsel %vm3098_vm1, %v2922_v40, 0.0  ;;  %v2475_v25 = vmax.f32 %v1695_v44, 0.0  ;;  %v2183_v23 = vadd.f32 %v5693_v32, %v5787_v10 }
 0x19c   :  { %6943 = vst [vmem:[#allocation65_spill] sm:$0xff] %v6016_v42  ;;  %v3523_v53 = vadd.f32 %v3522_v2, %v3521_v21  ;;  %v6019_v31 = vpop.f32.mrb[95].mxu0  ;;  %v6021_v9 = vpop.f32.mrb[95].mxu1  ;;  %v3269_v61 = vadd.f32 %v3268_v55, %v3267_v62  ;;  %v2594_v13 = vmax.f32 %v2172_v4, 0.0  ;;  %v3044_v21 = vmul.f32 %v5213_v26, %v2596_v33  ;;  %v6946_v2 = vld [vmem:[#allocation80_spill] sm:$0xff]  ;;  %v6948_v44 = vld [vmem:[#allocation66_spill] sm:$0xff] }
 0x19d   :  { %6944 = vst [vmem:[#allocation75_spill] sm:$0xff] %v6021_v9  ;;  %v2923_v57 = vmul.f32 %v5281_v59, %v2475_v25  ;;  %v2175_v9 = vadd.f32 %v5693_v32, %v6946_v2  ;;  %v6947_v42 = vld [vmem:[#allocation32_spill] sm:$0xff]  ;;  %v2597_v4 = vmax.f32 %v2183_v23, 0.0  ;;  %v2196_v39 = vadd.f32 %v5693_v32, %v6948_v44  ;;  %v6949_v33 = vld [vmem:[#allocation67_spill] sm:$0xff] }
 0x19e   :  { %v3525_v6 = vadd.f32 %v3524_v1, %v3523_v53  ;;  %v3042_v40 = vmul.f32 %v5190_v18, %v2594_v13  ;;  %v2925_v20 = vmul.f32 %v6947_v42, %v2477_v29  ;;  %v2188_v13 = vadd.f32 %v5693_v32, %v6949_v33  ;;  %v6951_v18 = vld [vmem:[#allocation81_spill] sm:$0xff] }
 0x19f   :  { %v3270_v10 = vsel %vm3098_vm1, %v2923_v57, 0.0  ;;  %v2595_v53 = vmax.f32 %v2175_v9, 0.0  ;;  %v3272_v2 = vsel %vm3098_vm1, %v2924_v8, 0.0  ;;  %v3045_v23 = vmul.f32 %v5215_v27, %v2597_v4 }
 0x1a0   :  { %v3527_v62 = vadd.f32 %v3526_v34, %v3525_v6  ;;  %v3528_v1 = vsel %vm3098_vm1, %v3042_v40, 0.0  ;;  %v3271_v34 = vadd.f32 %v3270_v10, %v3269_v61  ;;  %v2600_v9 = vmax.f32 %v2196_v39, 0.0 }
 0x1a1   :  { %v6039_v55 = vpop.f32.mrb[96].mxu0  ;;  %v6041_v25 = vpop.f32.mrb[96].mxu1  ;;  %v3043_v40 = vmul.f32 %v5192_v19, %v2595_v53  ;;  %v2598_v57 = vmax.f32 %v2188_v13, 0.0  ;;  %v2199_v33 = vadd.f32 %v5693_v32, %v6951_v18  ;;  %v1716_v61 = vadd.f32 %v5693_v32, %v5913_v17 }
 0x1a2   :  { %6950 = vst [vmem:[#allocation76_spill] sm:$0xff] %v6041_v25  ;;  %v3529_v29 = vadd.f32 %v3528_v1, %v3527_v62  ;;  %v6045_v6 = vpop.f32.mrb[97].mxu0  ;;  %v6047_v44 = vpop.f32.mrb[97].mxu1  ;;  %v3273_v8 = vadd.f32 %v3272_v2, %v3271_v34  ;;  %v3532_v1 = vsel %vm3098_vm1, %v3044_v21, 0.0  ;;  %v3274_v39 = vsel %vm3098_vm1, %v2925_v20, 0.0 }
 0x1a3   :  { %v6052_v26 = vpop.f32.mrb[98].mxu0  ;;  %v6054_v25 = vpop.f32.mrb[98].mxu1  ;;  %v3530_v10 = vsel %vm3098_vm1, %v3043_v40, 0.0  ;;  %v3046_v18 = vmul.f32 %v5227_v30, %v2598_v57  ;;  %v2601_v13 = vmax.f32 %v2199_v33, 0.0  ;;  %v2191_v2 = vadd.f32 %v5693_v32, %v5819_v47 }
 0x1a4   :  { %6952 = vst [vmem:[#allocation77_spill] sm:$0xff] %v6054_v25  ;;  %v6058_v62 = vpop.f32.mrb[99].mxu0  ;;  %v6060_v4 = vpop.f32.mrb[99].mxu1  ;;  %v3531_v53 = vadd.f32 %v3530_v10, %v3529_v29  ;;  %v1708_v17 = vadd.f32 %v5693_v32, %v5922_v60  ;;  %v3534_v34 = vsel %vm3098_vm1, %v3045_v23, 0.0  ;;  %v3048_v19 = vmul.f32 %v6926_v50, %v2600_v9 }
 0x1a5   :  { %6953 = vst [vmem:[#allocation78_spill] sm:$0xff] %v6060_v4  ;;  %v3275_v27 = vadd.f32 %v3274_v39, %v3273_v8  ;;  %v2480_v4 = vmax.f32 %v1716_v61, 0.0  ;;  %v2599_v20 = vmax.f32 %v2191_v2, 0.0  ;;  %v3536_v40 = vsel %vm3098_vm1, %v3046_v18, 0.0 }
 0x1a6   :  { %v3533_v21 = vadd.f32 %v3532_v1, %v3531_v53  ;;  %v2478_v25 = vmax.f32 %v1708_v17, 0.0  ;;  %v2212_v29 = vadd.f32 %v5693_v32, %v5834_v43  ;;  %v1719_v47 = vadd.f32 %v5693_v32, %v5933_v37 }
 0x1a7   :  { %v2204_v60 = vadd.f32 %v5693_v32, %v5844_v3  ;;  %v3049_v33 = vmul.f32 %v6931_v7, %v2601_v13  ;;  %v3047_v8 = vmul.f32 %v6932_v38, %v2599_v20  ;;  %v1711_v3 = vadd.f32 %v5693_v32, %v5937_v54 }
 0x1a8   :  { %v3535_v9 = vadd.f32 %v3534_v34, %v3533_v21  ;;  %v2926_v61 = vmul.f32 %v5359_v45, %v2478_v25  ;;  %v2604_v39 = vmax.f32 %v2212_v29, 0.0  ;;  %v2481_v37 = vmax.f32 %v1719_v47, 0.0 }
 0x1a9   :  { %v6079_v57 = vpop.f32.mrb[100].mxu0  ;;  %v6081_v23 = vpop.f32.mrb[100].mxu1  ;;  %v2602_v10 = vmax.f32 %v2204_v60, 0.0  ;;  %v3538_v13 = vsel %vm3098_vm1, %v3047_v8, 0.0  ;;  %v2215_v25 = vadd.f32 %v5693_v32, %v5852_v58  ;;  %v3540_v20 = vsel %vm3098_vm1, %v3048_v19, 0.0  ;;  %v6956_v19 = vld [vmem:[#allocation44_spill] sm:$0xff] }
 0x1aa   :  { %v6086_v1 = vpop.f32.mrb[101].mxu0  ;;  %v6088_v43 = vpop.f32.mrb[101].mxu1  ;;  %v3537_v2 = vadd.f32 %v3536_v40, %v3535_v9  ;;  %v3276_v17 = vsel %vm3098_vm1, %v2926_v61, 0.0  ;;  %v2479_v60 = vmax.f32 %v1711_v3, 0.0  ;;  %v6954_v40 = vld [vmem:[#allocation69_spill] sm:$0xff]  ;;  %v3542_v8 = vsel %vm3098_vm1, %v3049_v33, 0.0 }
 0x1ab   :  { %v6092_v18 = vpop.f32.mrb[102].mxu0  ;;  %v6094_v53 = vpop.f32.mrb[102].mxu1  ;;  %v3277_v29 = vadd.f32 %v3276_v17, %v3275_v27  ;;  %v3050_v54 = vmul.f32 %v6940_v51, %v2602_v10  ;;  %v2605_v38 = vmax.f32 %v2215_v25, 0.0  ;;  %v2207_v9 = vadd.f32 %v5693_v32, %v6954_v40  ;;  %v6955_v61 = vld [vmem:[#allocation43_spill] sm:$0xff]  ;;  %v6957_v17 = vld [vmem:[#allocation38_spill] sm:$0xff] }
 0x1ac   :  { %v6100_v34 = vpop.f32.mrb[103].mxu0  ;;  %v6102_v21 = vpop.f32.mrb[103].mxu1  ;;  %v3539_v47 = vadd.f32 %v3538_v13, %v3537_v2  ;;  %v2928_v7 = vmul.f32 %v6955_v61, %v2480_v4  ;;  %v3052_v58 = vmul.f32 %v6945_v12, %v2604_v39  ;;  %v2228_v30 = vadd.f32 %v5693_v32, %v5876_v35 }
 0x1ad   :  { %v2929_v27 = vmul.f32 %v6956_v19, %v2481_v37  ;;  %v2927_v10 = vmul.f32 %v6957_v17, %v2479_v60  ;;  %v2603_v2 = vmax.f32 %v2207_v9, 0.0  ;;  %v3544_v3 = vsel %vm3098_vm1, %v3050_v54, 0.0 }
 0x1ae   :  { %v3541_v50 = vadd.f32 %v3540_v20, %v3539_v47  ;;  %v3053_v13 = vmul.f32 %v6947_v42, %v2605_v38  ;;  %v2220_v33 = vadd.f32 %v5693_v32, %v5885_v24  ;;  %v2231_v4 = vadd.f32 %v5693_v32, %v5893_v48 }
 0x1af   :  { %v3278_v37 = vsel %vm3098_vm1, %v2927_v10, 0.0  ;;  %v3051_v20 = vmul.f32 %v5281_v59, %v2603_v2  ;;  %v1732_v54 = vadd.f32 %v5693_v32, %v5959_v28  ;;  %v2608_v60 = vmax.f32 %v2228_v30, 0.0 }
 0x1b0   :  { %v3543_v35 = vadd.f32 %v3542_v8, %v3541_v50  ;;  %v3279_v24 = vadd.f32 %v3278_v37, %v3277_v29  ;;  %v2606_v40 = vmax.f32 %v2220_v33, 0.0  ;;  %v2609_v48 = vmax.f32 %v2231_v4, 0.0 }
 0x1b1   :  { %v6121_v39 = vpop.f32.mrb[104].mxu0  ;;  %v6123_v25 = vpop.f32.mrb[104].mxu1  ;;  %v3280_v50 = vsel %vm3098_vm1, %v2928_v7, 0.0  ;;  %v3546_v10 = vsel %vm3098_vm1, %v3051_v20, 0.0  ;;  %v2223_v28 = vadd.f32 %v5693_v32, %v5898_v63  ;;  %v3548_v30 = vsel %vm3098_vm1, %v3052_v58, 0.0 }
 0x1b2   :  { %v6129_v47 = vpop.f32.mrb[105].mxu0  ;;  %v6131_v38 = vpop.f32.mrb[105].mxu1  ;;  %v3545_v8 = vadd.f32 %v3544_v3, %v3543_v35  ;;  %v3282_v29 = vsel %vm3098_vm1, %v2929_v27, 0.0  ;;  %v3281_v33 = vadd.f32 %v3280_v50, %v3279_v24  ;;  %v3054_v4 = vmul.f32 %v5359_v45, %v2606_v40  ;;  %v6966_v45 = vld [vmem:[#allocation56_spill] sm:$0xff] }
 0x1b3   :  { %v6133_v9 = vpop.f32.mrb[106].mxu0  ;;  %v6135_v42 = vpop.f32.mrb[106].mxu1  ;;  %v2484_v51 = vmax.f32 %v1732_v54, 0.0  ;;  %v2607_v7 = vmax.f32 %v2223_v28, 0.0  ;;  %v1724_v3 = vadd.f32 %v5693_v32, %v5966_v22  ;;  %v3550_v35 = vsel %vm3098_vm1, %v3053_v13, 0.0  ;;  %v6960_v28 = vld [vmem:[#allocation70_spill] sm:$0xff] }
 0x1b4   :  { %v6141_v2 = vpop.f32.mrb[107].mxu0  ;;  %v6143_v59 = vpop.f32.mrb[107].mxu1  ;;  %v3547_v37 = vadd.f32 %v3546_v10, %v3545_v8  ;;  %v3056_v63 = vmul.f32 %v6955_v61, %v2608_v60  ;;  %v3057_v20 = vmul.f32 %v6956_v19, %v2609_v48  ;;  %v3283_v12 = vadd.f32 %v3282_v29, %v3281_v33  ;;  %v6959_v10 = vld [vmem:[#allocation49_spill] sm:$0xff] }
 0x1b5   :  { %6958 = vst [vmem:[#allocation79_spill] sm:$0xff] %v6143_v59  ;;  %v3055_v58 = vmul.f32 %v6957_v17, %v2607_v7  ;;  %v2482_v27 = vmax.f32 %v1724_v3, 0.0  ;;  %v2244_v24 = vadd.f32 %v5693_v32, %v5915_v11  ;;  %v3552_v54 = vsel %vm3098_vm1, %v3054_v4, 0.0 }
 0x1b6   :  { %v3549_v59 = vadd.f32 %v3548_v30, %v3547_v37  ;;  %v1735_v40 = vadd.f32 %v5693_v32, %v5973_v36  ;;  %v2236_v22 = vadd.f32 %v5693_v32, %v5924_v41  ;;  %v1727_v13 = vadd.f32 %v5693_v32, %v5980_v56 }
 0x1b7   :  { %v2932_v8 = vmul.f32 %v5455_v15, %v2484_v51  ;;  %v2930_v11 = vmul.f32 %v6959_v10, %v2482_v27  ;;  %v2247_v30 = vadd.f32 %v5693_v32, %v6960_v28  ;;  %v3554_v41 = vsel %vm3098_vm1, %v3055_v58, 0.0  ;;  %v6184_v32 = vld [vmem:[%s6729_s2] ss:$0 sm:$0xff] }
 0x1b8   :  { %v3551_v50 = vadd.f32 %v3550_v35, %v3549_v59  ;;  %v2485_v33 = vmax.f32 %v1735_v40, 0.0  ;;  %v2610_v56 = vmax.f32 %v2236_v22, 0.0  ;;  %v2483_v4 = vmax.f32 %v1727_v13, 0.0  ;;  %v6962_v35 = vld [vmem:[#allocation71_spill] sm:$0xff] }
 0x1b9   :  { %v6163_v60 = vpop.f32.mrb[108].mxu0  ;;  %v6165_v48 = vpop.f32.mrb[108].mxu1  ;;  %v3284_v51 = vsel %vm3098_vm1, %v2930_v11, 0.0  ;;  %v2612_v3 = vmax.f32 %v2244_v24, 0.0  ;;  %v2239_v27 = vadd.f32 %v6184_v32, %v6962_v35  ;;  %v3556_v22 = vsel %vm3098_vm1, %v3056_v63, 0.0  ;;  %v6965_v11 = vld [vmem:[#allocation50_spill] sm:$0xff] }
 0x1ba   :  { %v6171_v29 = vpop.f32.mrb[109].mxu0  ;;  %v6173_v36 = vpop.f32.mrb[109].mxu1  ;;  %v3553_v59 = vadd.f32 %v3552_v54, %v3551_v50  ;;  %v3558_v13 = vsel %vm3098_vm1, %v3057_v20, 0.0  ;;  %v3285_v54 = vadd.f32 %v3284_v51, %v3283_v12  ;;  %v3058_v50 = vmul.f32 %v6959_v10, %v2610_v56 }
 0x1bb   :  { %v6176_v37 = vpop.f32.mrb[110].mxu0  ;;  %v6178_v7 = vpop.f32.mrb[110].mxu1  ;;  %v2931_v28 = vmul.f32 %v6965_v11, %v2483_v4  ;;  %v2613_v17 = vmax.f32 %v2247_v30, 0.0  ;;  %v2611_v19 = vmax.f32 %v2239_v27, 0.0  ;;  %v3288_v61 = vsel %vm3098_vm1, %v2932_v8, 0.0 }
 0x1bc   :  { %6961 = vst [vmem:[#allocation80_spill] sm:$0xff] %v6178_v7  ;;  %v6188_v58 = vpop.f32.mrb[111].mxu0  ;;  %v6190_v40 = vpop.f32.mrb[111].mxu1  ;;  %v3555_v24 = vadd.f32 %v3554_v41, %v3553_v59  ;;  %v2933_v35 = vmul.f32 %v6966_v45, %v2485_v33  ;;  %v2260_v7 = vadd.f32 %v6184_v32, %v5961_v16  ;;  %v3060_v12 = vmul.f32 %v5455_v15, %v2612_v3 }
 0x1bd   :  { %6963 = vst [vmem:[#allocation66_spill] sm:$0xff] %v6188_v58  ;;  %6964 = vst [vmem:[#allocation67_spill] sm:$0xff] %v6190_v40  ;;  %v6967_v40 = vld [vmem:[#allocation72_spill] sm:$0xff]  ;;  %v3286_v20 = vsel %vm3098_vm1, %v2931_v28, 0.0  ;;  %v3059_v41 = vmul.f32 %v6965_v11, %v2611_v19  ;;  %v3560_v30 = vsel %vm3098_vm1, %v3058_v50, 0.0  ;;  %v2263_v8 = vadd.f32 %v6184_v32, %v5975_v5 }
 0x1be   :  { %v2252_v63 = vadd.f32 %v6184_v32, %v6967_v40  ;;  %v3557_v58 = vadd.f32 %v3556_v22, %v3555_v24  ;;  %v3287_v56 = vadd.f32 %v3286_v20, %v3285_v54  ;;  %v3061_v51 = vmul.f32 %v6966_v45, %v2613_v17 }
 0x1bf   :  { %v1748_v3 = vadd.f32 %v6184_v32, %v5999_v0  ;;  %v2255_v19 = vadd.f32 %v6184_v32, %v5982_v46  ;;  %v3290_v22 = vsel %vm3098_vm1, %v2933_v35, 0.0  ;;  %v3562_v54 = vsel %vm3098_vm1, %v3059_v41, 0.0 }
 0x1c0   :  { %v2614_v4 = vmax.f32 %v2252_v63, 0.0  ;;  %v3559_v59 = vadd.f32 %v3558_v13, %v3557_v58  ;;  %v3289_v5 = vadd.f32 %v3288_v61, %v3287_v56  ;;  %v2616_v50 = vmax.f32 %v2260_v7, 0.0  ;;  %v6968_v13 = vld [vmem:[#allocation61_spill] sm:$0xff] }
 0x1c1   :  { %v6208_v33 = vpop.f32.mrb[112].mxu0  ;;  %v6210_v16 = vpop.f32.mrb[112].mxu1  ;;  %v2615_v28 = vmax.f32 %v2255_v19, 0.0  ;;  %v1740_v46 = vadd.f32 %v6184_v32, %v6005_v14  ;;  %v3564_v61 = vsel %vm3098_vm1, %v3060_v12, 0.0  ;;  %v2617_v35 = vmax.f32 %v2263_v8, 0.0  ;;  %v6970_v19 = vld [vmem:[#allocation74_spill] sm:$0xff] }
 0x1c2   :  { %v6217_v27 = vpop.f32.mrb[113].mxu0  ;;  %v6219_v40 = vpop.f32.mrb[113].mxu1  ;;  %v3561_v17 = vadd.f32 %v3560_v30, %v3559_v59  ;;  %v3062_v0 = vmul.f32 %v6968_v13, %v2614_v4  ;;  %v3291_v41 = vadd.f32 %v3290_v22, %v3289_v5  ;;  %v3566_v7 = vsel %vm3098_vm1, %v3061_v51, 0.0  ;;  %v6969_v30 = vld [vmem:[#allocation62_spill] sm:$0xff]  ;;  %v6971_v12 = vld [vmem:[#allocation63_spill] sm:$0xff] }
 0x1c3   :  { %v6223_v24 = vpop.f32.mrb[114].mxu0  ;;  %v6225_v58 = vpop.f32.mrb[114].mxu1  ;;  %v2488_v11 = vmax.f32 %v1748_v3, 0.0  ;;  %v2486_v45 = vmax.f32 %v1740_v46, 0.0  ;;  %v3063_v59 = vmul.f32 %v6969_v30, %v2615_v28  ;;  %v2276_v4 = vadd.f32 %v6184_v32, %v6001_v52  ;;  %v6972_v3 = vld [vmem:[#allocation64_spill] sm:$0xff] }
 0x1c4   :  { %v6230_v63 = vpop.f32.mrb[115].mxu0  ;;  %v6232_v20 = vpop.f32.mrb[115].mxu1  ;;  %v3563_v56 = vadd.f32 %v3562_v54, %v3561_v17  ;;  %v1751_v14 = vadd.f32 %v6184_v32, %v6014_v49  ;;  %v2268_v10 = vadd.f32 %v6184_v32, %v6970_v19  ;;  %v3064_v8 = vmul.f32 %v6971_v12, %v2616_v50  ;;  %v6978_v19 = vld [vmem:[#allocation5_spill] sm:$0xff] }
 0x1c5   :  { %v3568_v22 = vsel %vm3098_vm1, %v3062_v0, 0.0  ;;  %v2934_v51 = vmul.f32 %v6968_v13, %v2486_v45  ;;  %v3065_v5 = vmul.f32 %v6972_v3, %v2617_v35  ;;  %v2620_v54 = vmax.f32 %v2276_v4, 0.0 }
 0x1c6   :  { %v3565_v15 = vadd.f32 %v3564_v61, %v3563_v56  ;;  %v2618_v17 = vmax.f32 %v2268_v10, 0.0  ;;  %v1743_v52 = vadd.f32 %v6184_v32, %v6019_v31  ;;  %v2936_v61 = vmul.f32 %v6971_v12, %v2488_v11  ;;  %v6975_v56 = vld [vmem:[#allocation65_spill] sm:$0xff]  ;;  %v6980_v12 = vld [vmem:[#allocation75_spill] sm:$0xff] }
 0x1c7   :  { %v3292_v50 = vsel %vm3098_vm1, %v2934_v51, 0.0  ;;  %v2279_v0 = vadd.f32 %v6184_v32, %v6975_v56  ;;  %v3570_v10 = vsel %vm3098_vm1, %v3063_v59, 0.0  ;;  %v2489_v31 = vmax.f32 %v1751_v14, 0.0  ;;  %v6982_v14 = vld [vmem:[#allocation6_spill] sm:$0xff] }
 0x1c8   :  { %v3567_v46 = vadd.f32 %v3566_v7, %v3565_v15  ;;  %v3293_v4 = vadd.f32 %v3292_v50, %v3291_v41  ;;  %v3066_v13 = vmul.f32 %v6978_v19, %v2618_v17  ;;  %v2487_v7 = vmax.f32 %v1743_v52, 0.0 }
 0x1c9   :  { %v6249_v28 = vpop.f32.mrb[116].mxu0  ;;  %v6251_v49 = vpop.f32.mrb[116].mxu1  ;;  %v2621_v51 = vmax.f32 %v2279_v0, 0.0  ;;  %v2271_v56 = vadd.f32 %v6184_v32, %v6980_v12  ;;  %v3572_v59 = vsel %vm3098_vm1, %v3064_v8, 0.0  ;;  %v3574_v41 = vsel %vm3098_vm1, %v3065_v5, 0.0 }
 0x1ca   :  { %6973 = vst [vmem:[#allocation81_spill] sm:$0xff] %v6249_v28  ;;  %6974 = vst [vmem:[#allocation69_spill] sm:$0xff] %v6251_v49  ;;  %v6257_v45 = vpop.f32.mrb[117].mxu0  ;;  %v6259_v35 = vpop.f32.mrb[117].mxu1  ;;  %v3569_v11 = vadd.f32 %v3568_v22, %v3567_v46  ;;  %v3068_v17 = vmul.f32 %v6982_v14, %v2620_v54  ;;  %v3296_v50 = vsel %vm3098_vm1, %v2936_v61, 0.0  ;;  %v2935_v22 = vmul.f32 %v6969_v30, %v2487_v7  ;;  %v6983_v54 = vld [vmem:[#allocation8_spill] sm:$0xff] }
 0x1cb   :  { %6976 = vst [vmem:[#allocation70_spill] sm:$0xff] %v6257_v45  ;;  %6977 = vst [vmem:[#allocation71_spill] sm:$0xff] %v6259_v35  ;;  %v6263_v28 = vpop.f32.mrb[118].mxu0  ;;  %v6265_v15 = vpop.f32.mrb[118].mxu1  ;;  %v2619_v52 = vmax.f32 %v2271_v56, 0.0  ;;  %v2937_v46 = vmul.f32 %v6972_v3, %v2489_v31  ;;  %v3582_v12 = vsel %vm3098_vm1, %v3066_v13, 0.0  ;;  %v1764_v0 = vadd.f32 %v6184_v32, %v6039_v55 }
 0x1cc   :  { %6979 = vst [vmem:[#allocation72_spill] sm:$0xff] %v6265_v15  ;;  %v6269_v49 = vpop.f32.mrb[119].mxu0  ;;  %v6271_v45 = vpop.f32.mrb[119].mxu1  ;;  %v3571_v35 = vadd.f32 %v3570_v10, %v3569_v11  ;;  %v1756_v8 = vadd.f32 %v6184_v32, %v6045_v6  ;;  %v3294_v5 = vsel %vm3098_vm1, %v2935_v22, 0.0  ;;  %v3069_v15 = vmul.f32 %v6983_v54, %v2621_v51  ;;  %v6984_v61 = vld [vmem:[#allocation7_spill] sm:$0xff]  ;;  %v6985_v56 = vld [vmem:[#allocation76_spill] sm:$0xff] }
 0x1cd   :  { %6981 = vst [vmem:[#allocation74_spill] sm:$0xff] %v6271_v45  ;;  %v3067_v10 = vmul.f32 %v6984_v61, %v2619_v52  ;;  %v3585_v11 = vsel %vm3098_vm1, %v3068_v17, 0.0  ;;  %v3295_v7 = vadd.f32 %v3294_v5, %v3293_v4  ;;  %v2292_v31 = vadd.f32 %v6184_v32, %v6985_v56 }
 0x1ce   :  { %v3573_v45 = vadd.f32 %v3572_v59, %v3571_v35  ;;  %v1767_v13 = vadd.f32 %v6184_v32, %v6052_v26  ;;  %v2490_v51 = vmax.f32 %v1756_v8, 0.0  ;;  %v2284_v59 = vadd.f32 %v6184_v32, %v6047_v44 }
 0x1cf   :  { %v3583_v35 = vsel %vm3098_vm1, %v3067_v10, 0.0  ;;  %v3297_v22 = vadd.f32 %v3296_v50, %v3295_v7  ;;  %v3298_v56 = vsel %vm3098_vm1, %v2937_v46, 0.0  ;;  %v1759_v50 = vadd.f32 %v6184_v32, %v6058_v62 }
 0x1d0   :  { %v6296_v6 = vadd.f32 %v3574_v41, %v3573_v45  ;;  %v3584_v52 = vadd.f32 %v3583_v35, %v3582_v12  ;;  %v3587_v45 = vsel %vm3098_vm1, %v3069_v15, 0.0  ;;  %v2492_v41 = vmax.f32 %v1764_v0, 0.0  ;;  %v6992_v0 = vld [vmem:[#allocation77_spill] sm:$0xff] }
 0x1d1   :  { %v6292_v55 = vpop.f32.mrb[120].mxu0  ;;  %v6294_v30 = vpop.f32.mrb[120].mxu1  ;;  %v2622_v10 = vmax.f32 %v2284_v59, 0.0  ;;  %v3299_v44 = vadd.f32 %v3298_v56, %v3297_v22  ;;  %v2938_v12 = vmul.f32 %v6978_v19, %v2490_v51  ;;  %v2624_v7 = vmax.f32 %v2292_v31, 0.0 }
 0x1d2   :  { %6986 = vst [vmem:[#allocation65_spill] sm:$0xff] %v6296_v6  ;;  %v6301_v17 = vpop.f32.mrb[121].mxu0  ;;  %v6303_v4 = vpop.f32.mrb[121].mxu1  ;;  %v3586_v3 = vadd.f32 %v3585_v11, %v3584_v52  ;;  %v2493_v35 = vmax.f32 %v1767_v13, 0.0  ;;  %v2491_v15 = vmax.f32 %v1759_v50, 0.0  ;;  %v2295_v59 = vadd.f32 %v6184_v32, %v6992_v0  ;;  %v6993_v11 = vld [vmem:[#allocation78_spill] sm:$0xff] }
 0x1d3   :  { %6987 = vst [vmem:[#allocation75_spill] sm:$0xff] %v6303_v4  ;;  %v6305_v5 = vpop.f32.mrb[122].mxu0  ;;  %v6307_v26 = vpop.f32.mrb[122].mxu1  ;;  %v3300_v46 = vrot.slane %v3299_v44, 4  ;;  %v2287_v52 = vadd.f32 %v6184_v32, %v6993_v11  ;;  %v1780_v62 = vadd.f32 %v6184_v32, %v6079_v57  ;;  %v3306_v57 = vsel %vm3098_vm1, %v2938_v12, 0.0 }
 0x1d4   :  { %6988 = vst [vmem:[#allocation76_spill] sm:$0xff] %v6305_v5  ;;  %6989 = vst [vmem:[#allocation82_spill] sm:$0xff] %v6307_v26  ;;  %v6311_v8 = vpop.f32.mrb[123].mxu0  ;;  %v6313_v6 = vpop.f32.mrb[123].mxu1  ;;  %v6991_v26 = vld [vmem:[#allocation9_spill] sm:$0xff]  ;;  %v3588_v5 = vadd.f32 %v3587_v45, %v3586_v3  ;;  %v2939_v51 = vmul.f32 %v6984_v61, %v2491_v15  ;;  %v2625_v56 = vmax.f32 %v2295_v59, 0.0  ;;  %v2941_v50 = vmul.f32 %v6983_v54, %v2493_v35 }
 0x1d5   :  { %6990 = vst [vmem:[#allocation83_spill] sm:$0xff] %v6311_v8  ;;  %v3070_v4 = vmul.f32 %v6991_v26, %v2622_v10  ;;  %v2940_v8 = vmul.f32 %v6982_v14, %v2492_v41  ;;  %v3301_v31 = vadd.f32 %v3300_v46, %v3299_v44  ;;  %v6994_v45 = vld [vmem:[#allocation11_spill] sm:$0xff]  ;;  %v2623_v41 = vmax.f32 %v2287_v52, 0.0  ;;  %v6996_v15 = vld [vmem:[#allocation12_spill] sm:$0xff]  ;;  %v6997_v59 = vld [vmem:[#allocation10_spill] sm:$0xff] }
 0x1d6   :  { %v3072_v10 = vmul.f32 %v6994_v45, %v2624_v7  ;;  %v2308_v44 = vadd.f32 %v6184_v32, %v6081_v23  ;;  %v3073_v35 = vmul.f32 %v6996_v15, %v2625_v56  ;;  %v2496_v61 = vmax.f32 %v1780_v62, 0.0 }
 0x1d7   :  { %v3589_v22 = vsel %vm3098_vm1, %v3070_v4, 0.0  ;;  %v1772_v4 = vadd.f32 %v6184_v32, %v6086_v1  ;;  %v3302_v11 = vrot.slane %v3301_v31, 2  ;;  %v3309_v54 = vsel %vm3098_vm1, %v2940_v8, 0.0 }
 0x1d8   :  { %v3590_v13 = vadd.f32 %v3589_v22, %v3588_v5  ;;  %v3307_v5 = vsel %vm3098_vm1, %v2939_v51, 0.0  ;;  %v3071_v22 = vmul.f32 %v6997_v59, %v2623_v41  ;;  %v3593_v51 = vsel %vm3098_vm1, %v3072_v10, 0.0 }
 0x1d9   :  { %v6328_v3 = vpop.f32.mrb[124].mxu0  ;;  %v3308_v7 = vadd.f32 %v3307_v5, %v3306_v57  ;;  %v3303_v1 = vadd.f32 %v3302_v11, %v3301_v31  ;;  %v2494_v12 = vmax.f32 %v1772_v4, 0.0  ;;  %v2628_v19 = vmax.f32 %v2308_v44, 0.0 }
 0x1da   :  { %v6334_v0 = vpop.f32.mrb[125].mxu0  ;;  %v3591_v23 = vsel %vm3098_vm1, %v3071_v22, 0.0  ;;  %v3311_v57 = vsel %vm3098_vm1, %v2941_v50, 0.0  ;;  %v3595_v41 = vsel %vm3098_vm1, %v3073_v35, 0.0  ;;  %v1783_v8 = vadd.f32 %v6184_v32, %v6092_v18  ;;  %v6999_v50 = vld [vmem:[#allocation15_spill] sm:$0xff] }
 0x1db   :  { %v6340_v46 = vpop.f32.mrb[126].mxu0  ;;  %v3310_v14 = vadd.f32 %v3309_v54, %v3308_v7  ;;  %v3592_v5 = vadd.f32 %v3591_v23, %v3590_v13  ;;  %v2942_v56 = vmul.f32 %v6991_v26, %v2494_v12  ;;  %v2300_v62 = vadd.f32 %v6184_v32, %v6088_v43  ;;  %v7000_v12 = vld [vmem:[#allocation13_spill] sm:$0xff] }
 0x1dc   :  { %6995 = vst [vmem:[#allocation9_spill] sm:$0xff] %v6340_v46  ;;  %v6344_v52 = vpop.f32.mrb[127].mxu0  ;;  %v3304_v46 = vrot.slane %v3303_v1, 1  ;;  %v2944_v10 = vmul.f32 %v6994_v45, %v2496_v61  ;;  %v3076_v44 = vmul.f32 %v6999_v50, %v2628_v19  ;;  %v2497_v7 = vmax.f32 %v1783_v8, 0.0 }
 0x1dd   :  { %6998 = vst [vmem:[#allocation77_spill] sm:$0xff] %v6344_v52  ;;  %v3312_v52 = vadd.f32 %v3311_v57, %v3310_v14  ;;  %v3594_v54 = vadd.f32 %v3593_v51, %v3592_v5  ;;  %v3313_v4 = vsel %vm3098_vm1, %v2942_v56, 0.0  ;;  %v2626_v35 = vmax.f32 %v2300_v62, 0.0 }
 0x1de   :  { %v3305_v31 = vadd.f32 %v3304_v46, %v3303_v1  ;;  %v1775_v43 = vadd.f32 %v6184_v32, %v6100_v34  ;;  %v2311_v46 = vadd.f32 %v6184_v32, %v6094_v53  ;;  %v2945_v1 = vmul.f32 %v6996_v15, %v2497_v7  ;;  %v7002_v7 = vld [vmem:[#allocation16_spill] sm:$0xff] }
 0x1df   :  { %v3314_v13 = vadd.f32 %v3313_v4, %v3312_v52  ;;  %v3596_v18 = vadd.f32 %v3595_v41, %v3594_v54  ;;  %v3074_v52 = vmul.f32 %v7000_v12, %v2626_v35  ;;  %v2303_v19 = vadd.f32 %v6184_v32, %v6102_v21 }
 0x1e0   :  { %v3653_v22 = vpack.c.bf16 %v3305_v31, %v3305_v31  ;;  %v1796_v51 = vadd.f32 %v6184_v32, %v6121_v39  ;;  %v2495_v5 = vmax.f32 %v1775_v43, 0.0  ;;  %v2629_v34 = vmax.f32 %v2311_v46, 0.0  ;;  %v7001_v31 = vld [vmem:[#allocation68_spill] sm:$0xff] }
 0x1e1   :  { %v6358_v11 = vpop.f32.mrb[128].mxu0  ;;  %v1788_v53 = vadd.f32 %v6184_v32, %v6129_v47  ;;  %v3317_v56 = vsel %vm3098_vm1, %v2944_v10, 0.0  ;;  %v3597_v41 = vsel %vm3098_vm1, %v3074_v52, 0.0  ;;  %v2627_v8 = vmax.f32 %v2303_v19, 0.0 }
 0x1e2   :  { %v6361_v14 = vpop.f32.mrb[129].mxu0  ;;  %v3680_v57 = vunpack.c.l.b16 %v3653_v22  ;;  %v2500_v62 = vmax.f32 %v1796_v51, 0.0  ;;  %v3601_v39 = vsel %vm3098_vm1, %v3076_v44, 0.0  ;;  %v3598_v54 = vadd.f32 %v3597_v41, %v3596_v18  ;;  %v7003_v22 = vld [vmem:[#allocation14_spill] sm:$0xff] }
 0x1e3   :  { %v6367_v61 = vpop.f32.mrb[130].mxu0  ;;  %v2943_v4 = vmul.f32 %v6997_v59, %v2495_v5  ;;  %v3077_v35 = vmul.f32 %v7002_v7, %v2629_v34  ;;  %v3075_v43 = vmul.f32 %v7003_v22, %v2627_v8  ;;  %v2498_v47 = vmax.f32 %v1788_v53, 0.0 }
 0x1e4   :  { %v6375_v23 = vpop.f32.mrb[131].mxu0  ;;  %v6383_v21 = vsel %vm3688_vm3, %v3680_v57, %v7001_v31  ;;  %v2324_v10 = vadd.f32 %v6184_v32, %v6123_v25  ;;  %v3319_v46 = vsel %vm3098_vm1, %v2945_v1, 0.0  ;;  %v1799_v19 = vadd.f32 %v6184_v32, %v6133_v9 }
 0x1e5   :  { %v3315_v52 = vsel %vm3098_vm1, %v2943_v4, 0.0  ;;  %v2316_v44 = vadd.f32 %v6184_v32, %v6131_v38  ;;  %v3599_v51 = vsel %vm3098_vm1, %v3075_v43, 0.0  ;;  %v2948_v57 = vmul.f32 %v6999_v50, %v2500_v62  ;;  %v7004_v4 = vld [vmem:[#allocation19_spill] sm:$0xff]  ;;  %v7005_v43 = vld [vmem:[#allocation17_spill] sm:$0xff] }
 0x1e6   :  { %v3316_v18 = vadd.f32 %v3315_v52, %v3314_v13  ;;  %v2946_v5 = vmul.f32 %v7000_v12, %v2498_v47  ;;  %v3600_v34 = vadd.f32 %v3599_v51, %v3598_v54  ;;  %v2632_v53 = vmax.f32 %v2324_v10, 0.0 }
 0x1e7   :  { %v2501_v25 = vmax.f32 %v1799_v19, 0.0  ;;  %v2630_v41 = vmax.f32 %v2316_v44, 0.0  ;;  %v3603_v8 = vsel %vm3098_vm1, %v3077_v35, 0.0  ;;  %v1791_v9 = vadd.f32 %v6184_v32, %v6141_v2  ;;  %v7006_v19 = vld [vmem:[#allocation79_spill] sm:$0xff] }
 0x1e8   :  { %v3318_v1 = vadd.f32 %v3317_v56, %v3316_v18  ;;  %v2327_v38 = vadd.f32 %v6184_v32, %v6135_v42  ;;  %v3602_v13 = vadd.f32 %v3601_v39, %v3600_v34  ;;  %v3321_v31 = vsel %vm3098_vm1, %v2946_v5, 0.0 }
 0x1e9   :  { %v3080_v62 = vmul.f32 %v7004_v4, %v2632_v53  ;;  %v3078_v47 = vmul.f32 %v7005_v43, %v2630_v41  ;;  %v2499_v10 = vmax.f32 %v1791_v9, 0.0  ;;  %v2319_v56 = vadd.f32 %v6184_v32, %v7006_v19  ;;  %v7007_v41 = vld [vmem:[#allocation20_spill] sm:$0xff] }
 0x1ea   :  { %v3320_v54 = vadd.f32 %v3319_v46, %v3318_v1  ;;  %v2633_v52 = vmax.f32 %v2327_v38, 0.0  ;;  %v3325_v35 = vsel %vm3098_vm1, %v2948_v57, 0.0  ;;  %v2949_v2 = vmul.f32 %v7002_v7, %v2501_v25 }
 0x1eb   :  { %v3604_v44 = vadd.f32 %v3603_v8, %v3602_v13  ;;  %v3605_v42 = vsel %vm3098_vm1, %v3078_v47, 0.0  ;;  %v3609_v18 = vsel %vm3098_vm1, %v3080_v62, 0.0  ;;  %v2947_v51 = vmul.f32 %v7003_v22, %v2499_v10  ;;  %v7008_v8 = vld [vmem:[#allocation18_spill] sm:$0xff] }
 0x1ec   :  { %v3322_v39 = vadd.f32 %v3321_v31, %v3320_v54  ;;  %v2631_v5 = vmax.f32 %v2319_v56, 0.0  ;;  %v1812_v46 = vadd.f32 %v6184_v32, %v6163_v60  ;;  %v1804_v53 = vadd.f32 %v6184_v32, %v6171_v29 }
 0x1ed   :  { %v3606_v34 = vadd.f32 %v3605_v42, %v3604_v44  ;;  %v2340_v57 = vadd.f32 %v6184_v32, %v6165_v48  ;;  %v3323_v25 = vsel %vm3098_vm1, %v2947_v51, 0.0  ;;  %v3081_v1 = vmul.f32 %v7007_v41, %v2633_v52  ;;  %v7009_v48 = vld [vmem:[#allocation66_spill] sm:$0xff] }
 0x1ee   :  { %v3079_v9 = vmul.f32 %v7008_v8, %v2631_v5  ;;  %v1815_v38 = vadd.f32 %v6184_v32, %v6176_v37  ;;  %v3324_v13 = vadd.f32 %v3323_v25, %v3322_v39  ;;  %v2504_v31 = vmax.f32 %v1812_v46, 0.0 }
 0x1ef   :  { %v2502_v62 = vmax.f32 %v1804_v53, 0.0  ;;  %v2636_v47 = vmax.f32 %v2340_v57, 0.0  ;;  %v2332_v29 = vadd.f32 %v6184_v32, %v6173_v36  ;;  %v1807_v10 = vadd.f32 %v6184_v32, %v7009_v48  ;;  %v7010_v36 = vld [vmem:[#allocation31_spill] sm:$0xff] }
 0x1f0   :  { %v3607_v60 = vsel %vm3098_vm1, %v3079_v9, 0.0  ;;  %v2505_v54 = vmax.f32 %v1815_v38, 0.0  ;;  %v3326_v19 = vadd.f32 %v3325_v35, %v3324_v13  ;;  %v2952_v56 = vmul.f32 %v7004_v4, %v2504_v31  ;;  %v7012_v31 = vld [vmem:[#allocation80_spill] sm:$0xff] }
 0x1f1   :  { %v3608_v52 = vadd.f32 %v3607_v60, %v3606_v34  ;;  %v2950_v44 = vmul.f32 %v7005_v43, %v2502_v62  ;;  %v3327_v37 = vsel %vm3098_vm1, %v2949_v2, 0.0  ;;  %v3611_v42 = vsel %vm3098_vm1, %v3081_v1, 0.0  ;;  %v7011_v34 = vld [vmem:[#allocation25_spill] sm:$0xff]  ;;  %v7013_v62 = vld [vmem:[#allocation67_spill] sm:$0xff] }
 0x1f2   :  { %v2634_v39 = vmax.f32 %v2332_v29, 0.0  ;;  %v2503_v51 = vmax.f32 %v1807_v10, 0.0  ;;  %v3328_v46 = vadd.f32 %v3327_v37, %v3326_v19  ;;  %v3084_v57 = vmul.f32 %v7010_v36, %v2636_v47 }
 0x1f3   :  { %v3610_v5 = vadd.f32 %v3609_v18, %v3608_v52  ;;  %v3329_v53 = vsel %vm3098_vm1, %v2950_v44, 0.0  ;;  %v3333_v25 = vsel %vm3098_vm1, %v2952_v56, 0.0  ;;  %v2953_v35 = vmul.f32 %v7007_v41, %v2505_v54 }
 0x1f4   :  { %v3082_v9 = vmul.f32 %v7011_v34, %v2634_v39  ;;  %v2951_v38 = vmul.f32 %v7008_v8, %v2503_v51  ;;  %v3330_v13 = vadd.f32 %v3329_v53, %v3328_v46  ;;  %v2343_v1 = vadd.f32 %v6184_v32, %v7012_v31  ;;  %v7014_v51 = vld [vmem:[#allocation32_spill] sm:$0xff]  ;;  %v7015_v46 = vld [vmem:[#allocation26_spill] sm:$0xff] }
 0x1f5   :  { %v3612_v2 = vadd.f32 %v3611_v42, %v3610_v5  ;;  %v2335_v18 = vadd.f32 %v6184_v32, %v7013_v62  ;;  %v1828_v29 = vadd.f32 %v6184_v32, %v6208_v33  ;;  %v1820_v54 = vadd.f32 %v6184_v32, %v6217_v27 }
 0x1f6   :  { %v3613_v60 = vsel %vm3098_vm1, %v3082_v9, 0.0  ;;  %v3331_v47 = vsel %vm3098_vm1, %v2951_v38, 0.0  ;;  %v2637_v19 = vmax.f32 %v2343_v1, 0.0  ;;  %v2356_v37 = vadd.f32 %v6184_v32, %v6210_v16 }
 0x1f7   :  { %v3614_v48 = vadd.f32 %v3613_v60, %v3612_v2  ;;  %v3332_v10 = vadd.f32 %v3331_v47, %v3330_v13  ;;  %v2635_v52 = vmax.f32 %v2335_v18, 0.0  ;;  %v2508_v56 = vmax.f32 %v1828_v29, 0.0  ;;  %v7016_v60 = vld [vmem:[#allocation37_spill] sm:$0xff]  ;;  %v7017_v29 = vld [vmem:[#allocation43_spill] sm:$0xff] }
 0x1f8   :  { %v2506_v44 = vmax.f32 %v1820_v54, 0.0  ;;  %v1831_v42 = vadd.f32 %v6184_v32, %v6223_v24  ;;  %v3085_v5 = vmul.f32 %v7014_v51, %v2637_v19  ;;  %v2348_v27 = vadd.f32 %v6184_v32, %v6219_v40 }
 0x1f9   :  { %v3334_v39 = vadd.f32 %v3333_v25, %v3332_v10  ;;  %v3083_v33 = vmul.f32 %v7015_v46, %v2635_v52  ;;  %v3617_v53 = vsel %vm3098_vm1, %v3084_v57, 0.0  ;;  %v3335_v9 = vsel %vm3098_vm1, %v2953_v35, 0.0 }
 0x1fa   :  { %v2954_v38 = vmul.f32 %v7011_v34, %v2506_v44  ;;  %v2640_v13 = vmax.f32 %v2356_v37, 0.0  ;;  %v2509_v31 = vmax.f32 %v1831_v42, 0.0  ;;  %v2638_v24 = vmax.f32 %v2348_v27, 0.0  ;;  %v7018_v44 = vld [vmem:[#allocation81_spill] sm:$0xff] }
 0x1fb   :  { %v3615_v16 = vsel %vm3098_vm1, %v3083_v33, 0.0  ;;  %v3336_v2 = vadd.f32 %v3335_v9, %v3334_v39  ;;  %v2956_v1 = vmul.f32 %v7010_v36, %v2508_v56  ;;  %v3619_v18 = vsel %vm3098_vm1, %v3085_v5, 0.0  ;;  %v7019_v5 = vld [vmem:[#allocation70_spill] sm:$0xff] }
 0x1fc   :  { %v3616_v25 = vadd.f32 %v3615_v16, %v3614_v48  ;;  %v3337_v62 = vsel %vm3098_vm1, %v2954_v38, 0.0  ;;  %v3086_v57 = vmul.f32 %v7016_v60, %v2638_v24  ;;  %v1823_v35 = vadd.f32 %v6184_v32, %v6230_v63 }
 0x1fd   :  { %v3338_v40 = vadd.f32 %v3337_v62, %v3336_v2  ;;  %v3088_v54 = vmul.f32 %v7017_v29, %v2640_v13  ;;  %v2359_v10 = vadd.f32 %v6184_v32, %v6225_v58  ;;  %v2351_v48 = vadd.f32 %v6184_v32, %v6232_v20  ;;  %v7021_v13 = vld [vmem:[#allocation44_spill] sm:$0xff]  ;;  %v7022_v2 = vld [vmem:[#allocation38_spill] sm:$0xff] }
 0x1fe   :  { %v3618_v47 = vadd.f32 %v3617_v53, %v3616_v25  ;;  %v2957_v19 = vmul.f32 %v7014_v51, %v2509_v31  ;;  %v3621_v52 = vsel %vm3098_vm1, %v3086_v57, 0.0  ;;  %v2507_v56 = vmax.f32 %v1823_v35, 0.0  ;;  %v7020_v53 = vld [vmem:[#allocation69_spill] sm:$0xff] }
 0x1ff   :  { %v1844_v37 = vadd.f32 %v6184_v32, %v7018_v44  ;;  %v2641_v39 = vmax.f32 %v2359_v10, 0.0  ;;  %v2639_v63 = vmax.f32 %v2351_v48, 0.0  ;;  %v1836_v33 = vadd.f32 %v6184_v32, %v7019_v5 }
 0x200   :  { %v3620_v42 = vadd.f32 %v3619_v18, %v3618_v47  ;;  %v2955_v27 = vmul.f32 %v7015_v46, %v2507_v56  ;;  %v2372_v20 = vadd.f32 %v6184_v32, %v7020_v53  ;;  %v1847_v9 = vadd.f32 %v6184_v32, %v6263_v28 }
 0x201   :  { %v2512_v58 = vmax.f32 %v1844_v37, 0.0  ;;  %v3089_v16 = vmul.f32 %v7021_v13, %v2641_v39  ;;  %v3087_v31 = vmul.f32 %v7022_v2, %v2639_v63  ;;  %v2510_v24 = vmax.f32 %v1836_v33, 0.0  ;;  %v7024_v39 = vld [vmem:[#allocation71_spill] sm:$0xff] }
 0x202   :  { %v3622_v38 = vadd.f32 %v3621_v52, %v3620_v42  ;;  %v3341_v25 = vsel %vm3098_vm1, %v2956_v1, 0.0  ;;  %v3339_v62 = vsel %vm3098_vm1, %v2955_v27, 0.0  ;;  %v2644_v18 = vmax.f32 %v2372_v20, 0.0  ;;  %v7023_v1 = vld [vmem:[#allocation55_spill] sm:$0xff] }
 0x203   :  { %v2513_v57 = vmax.f32 %v1847_v9, 0.0  ;;  %v3625_v35 = vsel %vm3098_vm1, %v3088_v54, 0.0  ;;  %v3340_v47 = vadd.f32 %v3339_v62, %v3338_v40  ;;  %v3623_v10 = vsel %vm3098_vm1, %v3087_v31, 0.0  ;;  %v7026_v9 = vld [vmem:[#allocation74_spill] sm:$0xff]  ;;  %v7027_v62 = vld [vmem:[#allocation49_spill] sm:$0xff] }
 0x204   :  { %v2958_v48 = vmul.f32 %v7016_v60, %v2510_v24  ;;  %v3343_v28 = vsel %vm3098_vm1, %v2957_v19, 0.0  ;;  %v3627_v52 = vsel %vm3098_vm1, %v3089_v16, 0.0  ;;  %v3624_v56 = vadd.f32 %v3623_v10, %v3622_v38  ;;  %v7025_v19 = vld [vmem:[#allocation72_spill] sm:$0xff] }
 0x205   :  { %v2960_v44 = vmul.f32 %v7017_v29, %v2512_v58  ;;  %v3342_v37 = vadd.f32 %v3341_v25, %v3340_v47  ;;  %v3092_v42 = vmul.f32 %v7023_v1, %v2644_v18  ;;  %v2364_v63 = vadd.f32 %v6184_v32, %v7024_v39  ;;  %v7028_v47 = vld [vmem:[#allocation56_spill] sm:$0xff] }
 0x206   :  { %v1839_v40 = vadd.f32 %v6184_v32, %v6269_v49  ;;  %v3626_v54 = vadd.f32 %v3625_v35, %v3624_v56  ;;  %v3345_v5 = vsel %vm3098_vm1, %v2958_v48, 0.0  ;;  %v2961_v33 = vmul.f32 %v7021_v13, %v2513_v57 }
 0x207   :  { %v2375_v27 = vadd.f32 %v6184_v32, %v7025_v19  ;;  %v3344_v53 = vadd.f32 %v3343_v28, %v3342_v37  ;;  %v2642_v20 = vmax.f32 %v2364_v63, 0.0  ;;  %v2367_v38 = vadd.f32 %v6184_v32, %v7026_v9  ;;  %v7029_v37 = vld [vmem:[#allocation50_spill] sm:$0xff] }
 0x208   :  { %v2511_v58 = vmax.f32 %v1839_v40, 0.0  ;;  %v3628_v16 = vadd.f32 %v3627_v52, %v3626_v54  ;;  %v1860_v24 = vadd.f32 %v6184_v32, %v6292_v55  ;;  %v1852_v49 = vadd.f32 %v6184_v32, %v6301_v17  ;;  %v7030_v17 = vld [vmem:[#allocation76_spill] sm:$0xff] }
 0x209   :  { %v2645_v31 = vmax.f32 %v2375_v27, 0.0  ;;  %v3346_v25 = vadd.f32 %v3345_v5, %v3344_v53  ;;  %v3090_v18 = vmul.f32 %v7027_v62, %v2642_v20  ;;  %v2643_v35 = vmax.f32 %v2367_v38, 0.0 }
 0x20a   :  { %v2959_v57 = vmul.f32 %v7022_v2, %v2511_v58  ;;  %v2516_v48 = vmax.f32 %v1860_v24, 0.0  ;;  %v2514_v28 = vmax.f32 %v1852_v49, 0.0  ;;  %v2388_v52 = vadd.f32 %v6184_v32, %v6294_v30 }
 0x20b   :  { %v3093_v10 = vmul.f32 %v7028_v47, %v2645_v31  ;;  %v3629_v56 = vsel %vm3098_vm1, %v3090_v18, 0.0  ;;  %v3091_v39 = vmul.f32 %v7029_v37, %v2643_v35  ;;  %v1863_v63 = vadd.f32 %v6184_v32, %v7030_v17  ;;  %v7031_v31 = vld [vmem:[#allocation75_spill] sm:$0xff]  ;;  %v7035_v17 = vld [vmem:[#allocation61_spill] sm:$0xff] }
 0x20c   :  { %v3347_v55 = vsel %vm3098_vm1, %v2959_v57, 0.0  ;;  %v3349_v40 = vsel %vm3098_vm1, %v2960_v44, 0.0  ;;  %v3633_v54 = vsel %vm3098_vm1, %v3092_v42, 0.0  ;;  %v3630_v5 = vadd.f32 %v3629_v56, %v3628_v16  ;;  %v7032_v16 = vld [vmem:[#allocation83_spill] sm:$0xff] }
 0x20d   :  { %v3348_v19 = vadd.f32 %v3347_v55, %v3346_v25  ;;  %v3631_v27 = vsel %vm3098_vm1, %v3091_v39, 0.0  ;;  %v2962_v53 = vmul.f32 %v7027_v62, %v2514_v28  ;;  %v2648_v30 = vmax.f32 %v2388_v52, 0.0  ;;  %v7033_v28 = vld [vmem:[#allocation82_spill] sm:$0xff]  ;;  %v7034_v52 = vld [vmem:[#allocation63_spill] sm:$0xff] }
 0x20e   :  { %v2517_v20 = vmax.f32 %v1863_v63, 0.0  ;;  %v3351_v58 = vsel %vm3098_vm1, %v2961_v33, 0.0  ;;  %v3632_v38 = vadd.f32 %v3631_v27, %v3630_v5  ;;  %v2380_v24 = vadd.f32 %v6184_v32, %v7031_v31 }
 0x20f   :  { %v3350_v9 = vadd.f32 %v3349_v40, %v3348_v19  ;;  %v3635_v49 = vsel %vm3098_vm1, %v3093_v10, 0.0  ;;  %v2964_v44 = vmul.f32 %v7023_v1, %v2516_v48  ;;  %v3353_v42 = vsel %vm3098_vm1, %v2962_v53, 0.0 }
 0x210   :  { %v1855_v25 = vadd.f32 %v6184_v32, %v7032_v16  ;;  %v3634_v18 = vadd.f32 %v3633_v54, %v3632_v38  ;;  %v2646_v35 = vmax.f32 %v2380_v24, 0.0  ;;  %v2391_v33 = vadd.f32 %v6184_v32, %v7033_v28  ;;  %v7038_v38 = vld [vmem:[#allocation77_spill] sm:$0xff] }
 0x211   :  { %v3352_v57 = vadd.f32 %v3351_v58, %v3350_v9  ;;  %v3096_v56 = vmul.f32 %v7034_v52, %v2648_v30  ;;  %v2965_v55 = vmul.f32 %v7028_v47, %v2517_v20  ;;  %v2383_v10 = vadd.f32 %v6184_v32, %v6313_v6  ;;  %v7036_v30 = vld [vmem:[#allocation22_spill] sm:$0xff]  ;;  %v7037_v6 = vld [vmem:[#allocation64_spill] sm:$0xff] }
 0x212   :  { %v2515_v39 = vmax.f32 %v1855_v25, 0.0  ;;  %v3094_v63 = vmul.f32 %v7035_v17, %v2646_v35  ;;  %v3636_v40 = vadd.f32 %v3635_v49, %v3634_v18  ;;  %v2649_v5 = vmax.f32 %v2391_v33, 0.0  ;;  %v7040_v25 = vld [vmem:[#allocation9_spill] sm:$0xff] }
 0x213   :  { %v3354_v48 = vadd.f32 %v3353_v42, %v3352_v57  ;;  %v2647_v19 = vmax.f32 %v2383_v10, 0.0  ;;  %v1876_v27 = vadd.f32 %v6184_v32, %v6328_v3  ;;  %v1868_v53 = vadd.f32 %v6184_v32, %v6334_v0  ;;  %v7039_v42 = vld [vmem:[#allocation62_spill] sm:$0xff] }
 0x214   :  { %v2963_v54 = vmul.f32 %v7029_v37, %v2515_v39  ;;  %v1900_v20 = vadd.f32 %v6184_v32, %v7036_v30  ;;  %v3637_v58 = vsel %vm3098_vm1, %v3094_v63, 0.0  ;;  %v3097_v9 = vmul.f32 %v7037_v6, %v2649_v5 }
 0x215   :  { %v1871_v31 = vadd.f32 %v6184_v32, %v7038_v38  ;;  %v3638_v24 = vadd.f32 %v3637_v58, %v3636_v40  ;;  %v3095_v16 = vmul.f32 %v7039_v42, %v2647_v19  ;;  %v1879_v3 = vadd.f32 %v6184_v32, %v7040_v25 }
 0x216   :  { %v3355_v49 = vsel %vm3098_vm1, %v2963_v54, 0.0  ;;  %v3357_v0 = vsel %vm3098_vm1, %v2964_v44, 0.0  ;;  %v2520_v57 = vmax.f32 %v1876_v27, 0.0  ;;  %v2518_v35 = vmax.f32 %v1868_v53, 0.0 }
 0x217   :  { %v3356_v18 = vadd.f32 %v3355_v49, %v3354_v48  ;;  %v3641_v28 = vsel %vm3098_vm1, %v3096_v56, 0.0  ;;  %v3359_v33 = vsel %vm3098_vm1, %v2965_v55, 0.0  ;;  %v3639_v39 = vsel %vm3098_vm1, %v3095_v16, 0.0 }
 0x218   :  { %v2519_v10 = vmax.f32 %v1871_v31, 0.0  ;;  %v3643_v40 = vsel %vm3098_vm1, %v3097_v9, 0.0  ;;  %v3640_v5 = vadd.f32 %v3639_v39, %v3638_v24  ;;  %v2966_v54 = vmul.f32 %v7035_v17, %v2518_v35 }
 0x219   :  { %v3358_v63 = vadd.f32 %v3357_v0, %v3356_v18  ;;  %v2521_v19 = vmax.f32 %v1879_v3, 0.0  ;;  %v1892_v44 = vadd.f32 %v6184_v32, %v6358_v11  ;;  %v1884_v56 = vadd.f32 %v6184_v32, %v6361_v14  ;;  %v7041_v14 = vld [vmem:[#allocation24_spill] sm:$0xff]  ;;  %v7043_v18 = vld [vmem:[#allocation5_spill] sm:$0xff] }
 0x21a   :  { %v2967_v30 = vmul.f32 %v7039_v42, %v2519_v10  ;;  %v3642_v48 = vadd.f32 %v3641_v28, %v3640_v5  ;;  %v2968_v55 = vmul.f32 %v7034_v52, %v2520_v57  ;;  %v3361_v53 = vsel %vm3098_vm1, %v2966_v54, 0.0  ;;  %v7046_v5 = vld [vmem:[#allocation7_spill] sm:$0xff] }
 0x21b   :  { %v3360_v27 = vadd.f32 %v3359_v33, %v3358_v63  ;;  %v2524_v9 = vmax.f32 %v1892_v44, 0.0  ;;  %v2522_v38 = vmax.f32 %v1884_v56, 0.0  ;;  %v1895_v31 = vadd.f32 %v6184_v32, %v6367_v61  ;;  %v7044_v61 = vld [vmem:[#allocation21_spill] sm:$0xff]  ;;  %v7045_v63 = vld [vmem:[#allocation6_spill] sm:$0xff] }
 0x21c   :  { %v3363_v58 = vsel %vm3098_vm1, %v2967_v30, 0.0  ;;  %v6570_v24 = vadd.f32 %v3643_v40, %v3642_v48  ;;  %v1887_v11 = vadd.f32 %v6184_v32, %v6375_v23  ;;  %v1903_v16 = vadd.f32 %v6184_v32, %v7041_v14 }
 0x21d   :  { %v3362_v49 = vadd.f32 %v3361_v53, %v3360_v27  ;;  %v2969_v25 = vmul.f32 %v7037_v6, %v2521_v19  ;;  %v7042_v3 = vmov 0.0   ;;  %v2970_v57 = vmul.f32 %v7043_v18, %v2522_v38  ;;  %v7047_v19 = vld [vmem:[#allocation23_spill] sm:$0xff]  ;;  %v7048_v53 = vld [vmem:[#allocation8_spill] sm:$0xff] }
 0x21e   :  { %4444 = vmatprep.mubr.msk.bf16.mxu1 %vm4626_vm4, %v7042_v3  ;;  %v2525_v35 = vmax.f32 %v1895_v31, 0.0  ;;  %v2523_v28 = vmax.f32 %v1887_v11, 0.0  ;;  %v1908_v33 = vadd.f32 %v6184_v32, %v7044_v61  ;;  %v3365_v39 = vsel %vm3098_vm1, %v2968_v55, 0.0 }
 0x21f   :  { %v3364_v0 = vadd.f32 %v3363_v58, %v3362_v49  ;;  %v2526_v10 = vmax.f32 %v1900_v20, 0.0  ;;  %v2972_v40 = vmul.f32 %v7045_v63, %v2524_v9  ;;  %v1911_v30 = vadd.f32 %v6184_v32, %v7047_v19  ;;  %v7049_v9 = vld [vmem:[#allocation28_spill] sm:$0xff]  ;;  %v7052_v63 = vld [vmem:[#allocation29_spill] sm:$0xff] }
 0x220   :  { %v2971_v54 = vmul.f32 %v7046_v5, %v2523_v28  ;;  %v2527_v44 = vmax.f32 %v1903_v16, 0.0  ;;  %v3367_v56 = vsel %vm3098_vm1, %v2969_v25, 0.0  ;;  %v3375_v27 = vsel %vm3098_vm1, %v2970_v57, 0.0  ;;  %v7051_v28 = vld [vmem:[#allocation27_spill] sm:$0xff] }
 0x221   :  { %v3366_v23 = vadd.f32 %v3365_v39, %v3364_v0  ;;  %v2973_v58 = vmul.f32 %v7048_v53, %v2525_v35  ;;  %v2528_v55 = vmax.f32 %v1908_v33, 0.0  ;;  %v2974_v31 = vmul.f32 %v6991_v26, %v2526_v10  ;;  %v7050_v0 = vld [vmem:[#allocation30_spill] sm:$0xff] }
 0x222   :  { %v3376_v38 = vsel %vm3098_vm1, %v2971_v54, 0.0  ;;  %v1916_v49 = vadd.f32 %v6184_v32, %v7049_v9  ;;  %v3378_v14 = vsel %vm3098_vm1, %v2972_v40, 0.0  ;;  %v2529_v16 = vmax.f32 %v1911_v30, 0.0 }
 0x223   :  { %v3368_v48 = vadd.f32 %v3367_v56, %v3366_v23  ;;  %v3377_v20 = vadd.f32 %v3376_v38, %v3375_v27  ;;  %v2975_v25 = vmul.f32 %v6997_v59, %v2527_v44  ;;  %v1919_v18 = vadd.f32 %v6184_v32, %v7050_v0  ;;  %v7053_v27 = vld [vmem:[#allocation34_spill] sm:$0xff] }
 0x224   :  { %v3380_v35 = vsel %vm3098_vm1, %v2973_v58, 0.0  ;;  %v1924_v61 = vadd.f32 %v6184_v32, %v7051_v28  ;;  %v2976_v33 = vmul.f32 %v6994_v45, %v2528_v55  ;;  %v3382_v39 = vsel %vm3098_vm1, %v2974_v31, 0.0  ;;  %v7054_v31 = vld [vmem:[#allocation36_spill] sm:$0xff] }
 0x225   :  { %v3369_v11 = vrot.slane %v3368_v48, 4  ;;  %v3379_v3 = vadd.f32 %v3378_v14, %v3377_v20  ;;  %v2530_v10 = vmax.f32 %v1916_v49, 0.0  ;;  %v1927_v40 = vadd.f32 %v6184_v32, %v7052_v63 }
 0x226   :  { %v2977_v5 = vmul.f32 %v6996_v15, %v2529_v16  ;;  %v3384_v54 = vsel %vm3098_vm1, %v2975_v25, 0.0  ;;  %v2531_v19 = vmax.f32 %v1919_v18, 0.0  ;;  %v2532_v44 = vmax.f32 %v1924_v61, 0.0 }
 0x227   :  { %v3370_v57 = vadd.f32 %v3369_v11, %v3368_v48  ;;  %v3381_v26 = vadd.f32 %v3380_v35, %v3379_v3  ;;  %v3386_v48 = vsel %vm3098_vm1, %v2976_v33, 0.0  ;;  %v2978_v45 = vmul.f32 %v7000_v12, %v2530_v10  ;;  %v7055_v12 = vld [vmem:[#allocation33_spill] sm:$0xff]  ;;  %v7056_v35 = vld [vmem:[#allocation35_spill] sm:$0xff] }
 0x228   :  { %v1932_v53 = vadd.f32 %v6184_v32, %v7053_v27  ;;  %v2533_v38 = vmax.f32 %v1927_v40, 0.0  ;;  %v3388_v20 = vsel %vm3098_vm1, %v2977_v5, 0.0  ;;  %v2979_v15 = vmul.f32 %v7003_v22, %v2531_v19  ;;  %v6634_v19 = vld [vmem:[%s6729_s2] ss:$0 sm:$0xff] }
 0x229   :  { %v3371_v23 = vrot.slane %v3370_v57, 2  ;;  %v3383_v59 = vadd.f32 %v3382_v39, %v3381_v26  ;;  %v1935_v9 = vadd.f32 %v6184_v32, %v7054_v31  ;;  %v2980_v11 = vmul.f32 %v6999_v50, %v2532_v44 }
 0x22a   :  { %v3390_v16 = vsel %vm3098_vm1, %v2978_v45, 0.0  ;;  %v1940_v3 = vadd.f32 %v6184_v32, %v7055_v12  ;;  %v2534_v25 = vmax.f32 %v1932_v53, 0.0  ;;  %v2981_v18 = vmul.f32 %v7002_v7, %v2533_v38  ;;  %v7062_v12 = vld [vmem:[#allocation48_spill] sm:$0xff] }
 0x22b   :  { %v3372_v30 = vadd.f32 %v3371_v23, %v3370_v57  ;;  %v3385_v56 = vadd.f32 %v3384_v54, %v3383_v59  ;;  %v3392_v22 = vsel %vm3098_vm1, %v2979_v15, 0.0  ;;  %v1943_v28 = vadd.f32 %v6184_v32, %v7056_v35  ;;  %v7057_v23 = vld [vmem:[#allocation40_spill] sm:$0xff] }
 0x22c   :  { %v2535_v61 = vmax.f32 %v1935_v9, 0.0  ;;  %v3394_v50 = vsel %vm3098_vm1, %v2980_v11, 0.0  ;;  %v2536_v39 = vmax.f32 %v1940_v3, 0.0  ;;  %v2982_v10 = vmul.f32 %v7005_v43, %v2534_v25  ;;  %v7061_v9 = vld [vmem:[#allocation46_spill] sm:$0xff] }
 0x22d   :  { %v3373_v58 = vrot.slane %v3372_v30, 1  ;;  %v3387_v55 = vadd.f32 %v3386_v48, %v3385_v56  ;;  %v1948_v63 = vadd.f32 %v6184_v32, %v7057_v23  ;;  %v3396_v59 = vsel %vm3098_vm1, %v2981_v18, 0.0  ;;  %v7059_v56 = vld [vmem:[#allocation39_spill] sm:$0xff]  ;;  %v7065_v23 = vld [vmem:[#allocation52_spill] sm:$0xff] }
 0x22e   :  { %v2537_v5 = vmax.f32 %v1943_v28, 0.0  ;;  %v2983_v54 = vmul.f32 %v7008_v8, %v2535_v61  ;;  %v2984_v32 = vmul.f32 %v7004_v4, %v2536_v39  ;;  %v1956_v48 = vadd.f32 %v6634_v19, %v7059_v56 }
 0x22f   :  { %v3374_v49 = vadd.f32 %v3373_v58, %v3372_v30  ;;  %v3389_v14 = vadd.f32 %v3388_v20, %v3387_v55  ;;  %v7058_v30 = vld [vmem:[#allocation42_spill] sm:$0xff]  ;;  %v2538_v45 = vmax.f32 %v1948_v63, 0.0  ;;  %v7060_v58 = vld [vmem:[#allocation41_spill] sm:$0xff]  ;;  %v1967_v3 = vadd.f32 %v6634_v19, %v7062_v12 }
 0x230   :  { %v1951_v43 = vadd.f32 %v6634_v19, %v7058_v30  ;;  %v2985_v8 = vmul.f32 %v7007_v41, %v2537_v5  ;;  %v3400_v53 = vsel %vm3098_vm1, %v2983_v54, 0.0  ;;  %v1959_v38 = vadd.f32 %v6634_v19, %v7060_v58  ;;  %v7066_v54 = vld [vmem:[#allocation54_spill] sm:$0xff]  ;;  %v7071_v12 = vld [vmem:[#allocation57_spill] sm:$0xff] }
 0x231   :  { %v3654_v0 = vpack.c.bf16 %v3374_v49, %v3374_v49  ;;  %v3391_v57 = vadd.f32 %v3390_v16, %v3389_v14  ;;  %v3402_v15 = vsel %vm3098_vm1, %v2984_v32, 0.0  ;;  %v2540_v31 = vmax.f32 %v1956_v48, 0.0 }
 0x232   :  { %v2539_v55 = vmax.f32 %v1951_v43, 0.0  ;;  %v2986_v4 = vmul.f32 %v7011_v34, %v2538_v45  ;;  %v1964_v49 = vadd.f32 %v6634_v19, %v7061_v9  ;;  %v3404_v14 = vsel %vm3098_vm1, %v2985_v8, 0.0  ;;  %v7068_v8 = vld [vmem:[#allocation53_spill] sm:$0xff] }
 0x233   :  { %v3681_v26 = vunpack.c.l.b16 %v3654_v0  ;;  %v3393_v33 = vadd.f32 %v3392_v22, %v3391_v57  ;;  %v2541_v16 = vmax.f32 %v1959_v38, 0.0  ;;  %v2988_v0 = vmul.f32 %v7010_v36, %v2540_v31  ;;  %v7063_v57 = vld [vmem:[#allocation45_spill] sm:$0xff] }
 0x234   :  { %v2987_v41 = vmul.f32 %v7015_v46, %v2539_v55  ;;  %v3406_v18 = vsel %vm3098_vm1, %v2986_v4, 0.0  ;;  %v1972_v34 = vadd.f32 %v6634_v19, %v7063_v57  ;;  %v2542_v22 = vmax.f32 %v1964_v49, 0.0  ;;  %v7070_v49 = vld [vmem:[#allocation60_spill] sm:$0xff]  ;;  %v7072_v57 = vld [vmem:[#allocation59_spill] sm:$0xff] }
 0x235   :  { %v6627_v7 = vsel %vm3690_vm5, %v3681_v26, %v6383_v21  ;;  %v3395_v40 = vadd.f32 %v3394_v50, %v3393_v33  ;;  %v3398_v21 = vsel %vm3098_vm1, %v2982_v10, 0.0  ;;  %v2989_v28 = vmul.f32 %v7014_v51, %v2541_v16  ;;  %v7064_v26 = vld [vmem:[#allocation47_spill] sm:$0xff] }
 0x236   :  { %v3408_v61 = vsel %vm3098_vm1, %v2987_v41, 0.0  ;;  %v1975_v46 = vadd.f32 %v6634_v19, %v7064_v26  ;;  %v2543_v50 = vmax.f32 %v1967_v3, 0.0  ;;  %v3410_v39 = vsel %vm3098_vm1, %v2988_v0, 0.0 }
 0x237   :  { %v3397_v44 = vadd.f32 %v3396_v59, %v3395_v40  ;;  %v2544_v10 = vmax.f32 %v1972_v34, 0.0  ;;  %v2990_v36 = vmul.f32 %v7016_v60, %v2542_v22  ;;  %v1980_v63 = vadd.f32 %v6634_v19, %v7065_v23 }
 0x238   :  { %v3412_v59 = vsel %vm3098_vm1, %v2989_v28, 0.0  ;;  %v2545_v5 = vmax.f32 %v1975_v46, 0.0  ;;  %v2991_v51 = vmul.f32 %v7022_v2, %v2543_v50  ;;  %v1983_v30 = vadd.f32 %v6634_v19, %v7066_v54  ;;  %v7074_v46 = vld [vmem:[#allocation65_spill] sm:$0xff] }
 0x239   :  { %v3399_v27 = vadd.f32 %v3398_v21, %v3397_v44  ;;  %v2992_v44 = vmul.f32 %v7017_v29, %v2544_v10  ;;  %v3414_v32 = vsel %vm3098_vm1, %v2990_v36, 0.0  ;;  %v7067_v21 = vld [vmem:[#allocation51_spill] sm:$0xff]  ;;  %v2546_v56 = vmax.f32 %v1980_v63, 0.0 }
 0x23a   :  { %v1988_v60 = vadd.f32 %v6634_v19, %v7067_v21  ;;  %v2993_v45 = vmul.f32 %v7021_v13, %v2545_v5  ;;  %v1991_v2 = vadd.f32 %v6634_v19, %v7068_v8  ;;  %v3576_v50 = vrot.slane %v7074_v46, 4 }
 0x23b   :  { %v3401_v20 = vadd.f32 %v3400_v53, %v3399_v27  ;;  %v3416_v27 = vsel %vm3098_vm1, %v2991_v51, 0.0  ;;  %v2547_v53 = vmax.f32 %v1983_v30, 0.0  ;;  %v3418_v38 = vsel %vm3098_vm1, %v2992_v44, 0.0 }
 0x23c   :  { %v2548_v55 = vmax.f32 %v1988_v60, 0.0  ;;  %v2994_v29 = vmul.f32 %v7027_v62, %v2546_v56  ;;  %v3420_v4 = vsel %vm3098_vm1, %v2993_v45, 0.0  ;;  %v2549_v9 = vmax.f32 %v1991_v2, 0.0 }
 0x23d   :  { %v3403_v11 = vadd.f32 %v3402_v15, %v3401_v20  ;;  %v7069_v20 = vld [vmem:[#allocation58_spill] sm:$0xff]  ;;  %v2995_v13 = vmul.f32 %v7029_v37, %v2547_v53  ;;  %v2004_v62 = vadd.f32 %v6634_v19, %v7071_v12  ;;  %v2007_v37 = vadd.f32 %v6634_v19, %v7072_v57 }
 0x23e   :  { %v1996_v15 = vadd.f32 %v6634_v19, %v7069_v20  ;;  %v2996_v16 = vmul.f32 %v7023_v1, %v2548_v55  ;;  %v3422_v41 = vsel %vm3098_vm1, %v2994_v29, 0.0  ;;  %v2997_v0 = vmul.f32 %v7028_v47, %v2549_v9 }
 0x23f   :  { %v3405_v25 = vadd.f32 %v3404_v14, %v3403_v11  ;;  %v1999_v11 = vadd.f32 %v6634_v19, %v7070_v49  ;;  %v2552_v28 = vmax.f32 %v2004_v62, 0.0  ;;  %v2553_v47 = vmax.f32 %v2007_v37, 0.0 }
 0x240   :  { %v2550_v3 = vmax.f32 %v1996_v15, 0.0  ;;  %v3645_v36 = vrot.slane %v6570_v24, 4 }
 0x241   :  { %v3407_v35 = vadd.f32 %v3406_v18, %v3405_v25  ;;  %v3424_v18 = vsel %vm3098_vm1, %v2995_v13, 0.0  ;;  %v2551_v34 = vmax.f32 %v1999_v11, 0.0  ;;  %v3000_v23 = vmul.f32 %v7034_v52, %v2552_v28 }
 0x242   :  { %v2998_v1 = vmul.f32 %v7035_v17, %v2550_v3  ;;  %v3577_v17 = vadd.f32 %v3576_v50, %v7074_v46  ;;  %v3001_v5 = vmul.f32 %v7037_v6, %v2553_v47  ;;  %v3646_v54 = vadd.f32 %v3645_v36, %v6570_v24 }
 0x243   :  { %v3409_v33 = vadd.f32 %v3408_v61, %v3407_v35  ;;  %v3426_v35 = vsel %vm3098_vm1, %v2996_v16, 0.0  ;;  %v7073_v61 = vld [vmem:[#allocation73_spill] sm:$0xff]  ;;  %v2999_v10 = vmul.f32 %v7039_v42, %v2551_v34  ;;  %v3434_v42 = vsel %vm3098_vm1, %v3000_v23, 0.0 }
 0x244   :  { %v3507_v26 = vrot.slane %v7073_v61, 4  ;;  %v3430_v63 = vsel %vm3098_vm1, %v2998_v1, 0.0  ;;  %v3578_v44 = vrot.slane %v3577_v17, 2  ;;  %v3436_v52 = vsel %vm3098_vm1, %v3001_v5, 0.0 }
 0x245   :  { %v3411_v40 = vadd.f32 %v3410_v39, %v3409_v33  ;;  %v3428_v39 = vsel %vm3098_vm1, %v2997_v0, 0.0  ;;  %v3432_v51 = vsel %vm3098_vm1, %v2999_v10, 0.0  ;;  %v3647_v21 = vrot.slane %v3646_v54, 2  ;;  %v4040_v0 = vld [vmem:[%s6732_s5] ss:$0 sm:$0xff]  ;;  %s4600_s5 = scalar_lea.vmem %s3773_s27, 128 }
 0x246   :  { %p4601_p0 = scmp.ne.s32.totalorder %s3773_s27, %s4600_s5  ;;  %p4606_p2 = scmp.lt.s32.totalorder %s4600_s5, %s4600_s5 }
 0x247   :  { %v3413_v43 = vadd.f32 %v3412_v59, %v3411_v40  ;;  %v3508_v40 = vadd.f32 %v3507_v26, %v7073_v61 }
 0x248   :  { %p4607_p3 = por %p4606_p2, %p4605_p1 }
 0x249   :  { %v3415_v48 = vadd.f32 %v3414_v32, %v3413_v43  ;;  %v3509_v43 = vrot.slane %v3508_v40, 2 }
 0x24a   :  { %p4608_p4 = pnand %p4607_p3, %p4601_p0 }
 0x24b   :  { %v3417_v58 = vadd.f32 %v3416_v27, %v3415_v48  ;;  %v3510_v56 = vadd.f32 %v3509_v43, %v3508_v40  ;;  %v3579_v48 = vadd.f32 %v3578_v44, %v3577_v17  ;;  %v3648_v27 = vadd.f32 %v3647_v21, %v3646_v54 }
 0x24d   :  { %v3419_v31 = vadd.f32 %v3418_v38, %v3417_v58  ;;  %v3511_v6 = vrot.slane %v3510_v56, 1  ;;  %v3580_v2 = vrot.slane %v3579_v48, 1  ;;  %v3649_v58 = vrot.slane %v3648_v27, 1 }
 0x24f   :  { %v3421_v14 = vadd.f32 %v3420_v4, %v3419_v31  ;;  %v3512_v38 = vadd.f32 %v3511_v6, %v3510_v56  ;;  %v3581_v55 = vadd.f32 %v3580_v2, %v3579_v48  ;;  %v3650_v20 = vadd.f32 %v3649_v58, %v3648_v27 }
 0x251   :  { %v3423_v25 = vadd.f32 %v3422_v41, %v3421_v14  ;;  %v3656_v31 = vpack.c.bf16 %v3512_v38, %v3512_v38  ;;  %v3657_v4 = vpack.c.bf16 %v3581_v55, %v3581_v55  ;;  %v3658_v13 = vpack.c.bf16 %v3650_v20, %v3650_v20 }
 0x253   :  { %v3425_v22 = vadd.f32 %v3424_v18, %v3423_v25  ;;  %v3683_v11 = vunpack.c.l.b16 %v3656_v31  ;;  %v3684_v14 = vunpack.c.l.b16 %v3657_v4  ;;  %v3685_v41 = vunpack.c.l.b16 %v3658_v13 }
 0x255   :  { %v3427_v33 = vadd.f32 %v3426_v35, %v3425_v22 }
 0x257   :  { %v3429_v19 = vadd.f32 %v3428_v39, %v3427_v33 }
 0x259   :  { %v3431_v59 = vadd.f32 %v3430_v63, %v3429_v19 }
 0x25b   :  { %v3433_v30 = vadd.f32 %v3432_v51, %v3431_v59 }
 0x25d   :  { %v3435_v32 = vadd.f32 %v3434_v42, %v3433_v30 }
 0x25f   :  { %v3437_v60 = vadd.f32 %v3436_v52, %v3435_v32 }
 0x261   :  { %v3438_v45 = vrot.slane %v3437_v60, 4 }
 0x263   :  { %v3439_v8 = vadd.f32 %v3438_v45, %v3437_v60 }
 0x265   :  { %v3440_v53 = vrot.slane %v3439_v8, 2 }
 0x267   :  { %v3441_v24 = vadd.f32 %v3440_v53, %v3439_v8 }
 0x269   :  { %v3442_v29 = vrot.slane %v3441_v24, 1 }
 0x26b   :  { %v3443_v15 = vadd.f32 %v3442_v29, %v3441_v24 }
 0x26d   :  { %v3655_v9 = vpack.c.bf16 %v3443_v15, %v3443_v15 }
 0x26f   :  { %v3682_v49 = vunpack.c.l.b16 %v3655_v9 }
 0x271   :  { %v3693_v16 = vsel %vm3692_vm6, %v3682_v49, %v6627_v7 }
 0x272   :  { %v3695_v12 = vsel %vm3694_vm7, %v3683_v11, %v3693_v16 }
 0x273   :  { %v3697_v62 = vsel %vm3696_vm8, %v3684_v14, %v3695_v12 }
 0x274   :  { %v3699_v3 = vsel %vm3698_vm9, %v3685_v41, %v3697_v62 }
 0x275   :  { %v3700_v25 = vpack.c.b16 %v3699_v3, %v3699_v3 }
 0x277   :  { %4445 = vmatmul.mubr.msk.bf16.vlgmr.msra.gmra.mrb[124].mxu1 %vm3098_vm1, %v3700_v25 }
 0x34a   :  { %v3750_v18 = vpop.f32.mrb[124].mxu1 }
 0x34b   :  { %v3751_v57 = vadd.f32 %v4040_v0, %v3750_v18  ;;  %v4446_v37 = vpop.f32.mrb[125].mxu1 }
 0x34c   :  { %v3753_v34 = vpop.f32.mrb[126].mxu1 }
 0x34d   :  { %3756 = vmax.xlane.f32.xlu0 %v3751_v57  ;;  %v4447_v22 = vpop.f32.mrb[127].mxu1 }
 0x3da   :  { %v3757_v35 = vpop.xlane.xlu0 %3756 }
 0x3db   :  { %v3758_v7 = vsub.f32 %v3751_v57, %v3757_v35 }
 0x3dd   :  { %v3759_v28 = vmul.f32 1.442695, %v3758_v7 }
 0x3df   :  { %4593 = vpow2.f32 %v3759_v28 }
 0x3e9   :  { %v4594_v1 = vpop.eup %4593 }
 0x3ea   :  { %3761 = vadd.xlane.f32.xlu1 %v4594_v1 }
 0x477   :  { %v3762_v61 = vpop.xlane.xlu1 %3761 }
 0x478   :  { %4595 = vrcp.f32 %v3762_v61 }
 0x482   :  { %v4596_v26 = vpop.eup %4595 }
 0x483   :  { %v3764_v46 = vmul.f32 %v4596_v26, %v4594_v1 }
 0x485   :  { %3765 = vst [vmem:[#allocation2] sm:$0xff] %v3764_v46 }
 0x486   :  { %4611 = shalt.err (!%p4608_p4)
}
 0x487   :  { %s4612_s30 = scalar_lea.hbm %s6733_s6, 128 }
 0x488   :  { %p4613_p5 = scmp.ne.s32.totalorder %s6733_s6, %s4612_s30  ;;  %p4616_p6 = scmp.lt.u32.totalorder %s4612_s30, %s6733_s6 }
 0x48a   :  { %p4618_p7 = pnand %p4616_p6, %p4613_p5 }
 0x48c   :  { %4621 = shalt.err (!%p4618_p7)
}
 0x48d   :  { %3775 = dma.vmem_to_hbm [thread:$0]  %s3773_s27, 128, %s6733_s6, [#allocation3]  }
 0x48e   :  { %4622 = dma.done.wait [#allocation3], 128  }
 0x48f   :  { %4623 = vsyncadd [#allocation3], 4294967168 }
 0x490   :  { %3779 = vsyncpa [#allocation3], 1 }

</bundles_post_ra>
